<compile_context>
chip_gen: v5e
topology: v5e:2x2
jax: 0.10.0
libtpu: 0.0.40
codegen_flags: <defaults>
</compile_context>

<pallas_src>
import numpy as np
import jax
import jax.numpy as jnp
from jax.experimental import pallas as pl
from jax.experimental.pallas import tpu as pltpu


# ----------------------------- Pallas kernel ------------------------------- #
def _make_conv_kernel(n_views, KT, KH, KW, Ci, Co, Wp, HWo, TB, dilation):
    """One grid step computes TB output frames: a single (Co, K) @ (K, TB*HWo) matmul."""
    taps = [(kt, kh, kw) for kt in range(KT) for kh in range(KH) for kw in range(KW)]

    def kernel(*refs):
        x_refs = refs[:n_views]            # n_views refs, each (Ci, Hp2*Wp)   bf16
        w_ref = refs[n_views]              # (Co, KT*KH*KW*Ci)                 bf16
        b_ref = refs[n_views + 1]          # (Co, 1)                           f32
        o_ref = refs[n_views + 2]          # (Co, TB*HWo)                      bf16
        col_ref = refs[n_views + 3]        # (K, TB*HWo) VMEM scratch          bf16

        # Stage every tap of every output frame in this block into one contiguous
        # (K, N) slab (fused im2col in VMEM; every row/column is overwritten each step).
        for j in range(TB):
            for idx, (kt, kh, kw) in enumerate(taps):
                off = kh * dilation * Wp + kw * dilation        # flat-pixel tap offset
                col_ref[idx * Ci:(idx + 1) * Ci, j * HWo:(j + 1) * HWo] = \
                    x_refs[j + kt][:, off:off + HWo]

        # Single stacked-K MXU matmul with f32 accumulation, then one lane-dense store.
        acc = jnp.dot(w_ref[...], col_ref[...], preferred_element_type=jnp.float32)
        o_ref[...] = (acc + b_ref[...]).astype(o_ref.dtype)

    return kernel


# --------------------------- CausalConv3d forward --------------------------- #
def causal_conv3d(x, weight, bias, *, padding=1, stride=1, dilation=1,
                  time_stride=1, time_dilation=1, frames_per_step=None,
                  compute_dtype=jnp.bfloat16):
    """Forward pass matching CausalConv3d (pad_mode='constant').

    x:      (B, Cin, T, H, W)   (NCDHW, same as PyTorch)
    weight: (Cout, Cin, KT, KH, KW)
    bias:   (Cout,)
    """
    B, Ci, T, H, W = x.shape
    Co, Ci_w, KT, KH, KW = weight.shape
    assert Ci == Ci_w
    if stride != 1:
        # TODO(synk): spatial stride > 1 breaks the flat-offset tap trick; not implemented.
        raise NotImplementedError("fused kernel supports spatial stride == 1 only")
    if time_stride != 1 or time_dilation != 1:
        # TODO(synk): general time_stride/time_dilation need a different frame-view schedule.
        raise NotImplementedError("fused kernel supports time_stride == time_dilation == 1")

    time_pad = time_dilation * (KT - 1) + (1 - time_stride)     # = KT - 1 here
    p = padding
    Wp = W + 2 * p
    Hp = H + 2 * p
    # Extra zero rows at the bottom so every tap's flat window stays in bounds
    # (garbage columns are computed and sliced off after the kernel).
    extra_h = -(-dilation * (KW - 1) // Wp)                      # ceil
    Hp2 = Hp + extra_h
    H_out = Hp - dilation * (KH - 1)
    W_out = Wp - dilation * (KW - 1)
    HWo = H_out * Wp                                             # lane-dense output width/frame
    HWf = Hp2 * Wp                                               # flattened padded frame pixels
    T_out = T                                                    # ts = 1

    # --- single fused prep pass: spatial zero pad + layout + bf16 cast ----------------
    # Causal time padding is NOT materialized; it is handled by clamping the source frame
    # index inside the BlockSpec index maps below.
    xp = jnp.pad(x, ((0, 0), (0, 0), (0, 0), (p, p + extra_h), (p, p)))
    xprep = jnp.transpose(xp, (0, 2, 1, 3, 4)).reshape(B, T, Ci, HWf).astype(compute_dtype)

    # --- choose TB (output frames per grid step) so the matmul N is >= ~256 lanes ------
    if frames_per_step is None:
        TB = max(1, min(T_out, -(-256 // HWo)))
        TB = min(TB, 8)
    else:
        TB = max(1, min(int(frames_per_step), T_out))
    nTb = -(-T_out // TB)                                        # grid blocks along time
    n_views = TB + KT - 1                                        # single-frame input views/step
    n_taps = KT * KH * KW
    K = n_taps * Ci                                              # stacked contraction depth
    N = TB * HWo                                                 # matmul N / output tile width

    # Weights: (Co,Ci,KT,KH,KW) -> (Co, KT*KH*KW*Ci); column order matches the staging loop.
    w2 = jnp.transpose(weight, (0, 2, 3, 4, 1)).reshape(Co, K).astype(compute_dtype)
    bcol = bias.reshape(Co, 1).astype(jnp.float32)

    # Input index maps: view v of step (b, t) is padded-time frame g = t*TB + v, whose
    # source frame is clamp(g - time_pad, 0, T-1)  (causal replication pad + tail padding).
    def make_in_map(v):
        def idx(b, t):
            g = t * TB + v
            src = jnp.maximum(jnp.minimum(g - time_pad, T - 1), 0)
            return (b, src, 0, 0)
        return idx

    in_specs = [pl.BlockSpec((None, None, Ci, HWf), make_in_map(v)) for v in range(n_views)]
    in_specs += [
        pl.BlockSpec((Co, K), lambda b, t: (0, 0)),              # weights, resident
        pl.BlockSpec((Co, 1), lambda b, t: (0, 0)),              # bias, resident
    ]
    out_spec = pl.BlockSpec((None, None, Co, N), lambda b, t: (b, t, 0, 0))

    kernel = _make_conv_kernel(n_views, KT, KH, KW, Ci, Co, Wp, HWo, TB, dilation)

    # --- VMEM budget from the actual tiles (+2x headroom), capped for v7x's 64 MiB ----
    isz = jnp.dtype(compute_dtype).itemsize
    vmem_needed = (2 * n_views * Ci * HWf * isz                  # input frame views, 2 buffers
                   + 2 * (Co * K * isz + Co * 4)                 # weights + bias
                   + 2 * Co * N * isz                            # output tile, 2 buffers
                   + K * N * isz)                                # im2col scratch
    vmem_limit = int(min(64 * 1024 * 1024, max(2 * vmem_needed, 32 * 1024 * 1024)))

    flops = int(2 * B * nTb * Co * K * N)
    bytes_accessed = int(B * nTb * n_views * Ci * HWf * isz      # (TB+KT-1)/TB re-read factor
                         + Co * K * isz + Co * 4
                         + B * nTb * Co * N * isz)

    out = pl.pallas_call(
        kernel,
        out_shape=jax.ShapeDtypeStruct((B, nTb, Co, N), compute_dtype),
        grid_spec=pltpu.PrefetchScalarGridSpec(
            num_scalar_prefetch=0,
            grid=(B, nTb),
            in_specs=in_specs,
            out_specs=out_spec,
            scratch_shapes=[pltpu.VMEM((K, N), compute_dtype)],
        ),
        compiler_params=pltpu.CompilerParams(
            # both grid axes independent -> megacore sharding on v7x's 2 TensorCores
            dimension_semantics=("parallel", "parallel"),
            vmem_limit_bytes=vmem_limit,
        ),
        cost_estimate=pl.CostEstimate(flops=flops, transcendentals=0,
                                      bytes_accessed=bytes_accessed),
    )(*([xprep] * n_views), w2, bcol)

    # Single output-sized pass: drop garbage columns / tail frames, back to NCDHW f32.
    out = out.reshape(B, nTb, Co, TB, H_out, Wp)
    out = jnp.transpose(out, (0, 2, 1, 3, 4, 5)).reshape(B, Co, nTb * TB, H_out, Wp)
    out = out[:, :, :T_out, :, :W_out].astype(jnp.float32)
    return out                                                    # (B, Co, T_out, H_out, W_out)


# --------------------------------- main ------------------------------------ #
if __name__ == "__main__":
    key = jax.random.PRNGKey(0)
    k_x, k_w, k_b = jax.random.split(key, 3)

    # Small shapes consistent with the module: chan_in=4, chan_out=8, kernel=3
    B, Ci, Co, T, H, W = 2, 4, 8, 4, 8, 8
    KT = KH = KW = 3

    x = jax.random.normal(k_x, (B, Ci, T, H, W), dtype=jnp.float32)

    # Deterministic parameter init (mirrors nn.Conv3d default bounds: 1/sqrt(fan_in))
    fan_in = Ci * KT * KH * KW
    bound = 1.0 / np.sqrt(fan_in)
    weight = jax.random.uniform(k_w, (Co, Ci, KT, KH, KW),
                                minval=-bound, maxval=bound, dtype=jnp.float32)
    bias = jax.random.uniform(k_b, (Co,), minval=-bound, maxval=bound,
                              dtype=jnp.float32)

    fwd = jax.jit(causal_conv3d)
    y = jax.block_until_ready(fwd(x, weight, bias))

    # Reference: XLA conv on the causally/spatially padded input, same bf16 operands.
    time_pad = KT - 1
    xp_ref = jnp.concatenate(
        [jnp.repeat(x[:, :, :1], time_pad, axis=2), x], axis=2)
    xp_ref = jnp.pad(xp_ref, ((0, 0), (0, 0), (0, 0), (1, 1), (1, 1)))
    y_ref = jax.lax.conv_general_dilated(
        xp_ref.astype(jnp.bfloat16), weight.astype(jnp.bfloat16),
        window_strides=(1, 1, 1), padding="VALID",
        dimension_numbers=("NCDHW", "OIDHW", "NCDHW"),
        preferred_element_type=jnp.float32,
    ) + bias.reshape(1, Co, 1, 1, 1)

    assert y.shape == (B, Co, T, H, W), y.shape
    np.testing.assert_allclose(np.asarray(y), np.asarray(y_ref),
                               rtol=2e-2, atol=2e-2)
    print("KERNEL_OK")
</pallas_src>

<mosaic_0001>
module attributes {stable_mosaic.version = 11 : i64} {
  func.func @kernel(%arg0: i32, %arg1: i32, %arg2: memref<1x1x4x110xbf16, #tpu.memory_space<vmem>>, %arg3: memref<1x1x4x110xbf16, #tpu.memory_space<vmem>>, %arg4: memref<1x1x4x110xbf16, #tpu.memory_space<vmem>>, %arg5: memref<1x1x4x110xbf16, #tpu.memory_space<vmem>>, %arg6: memref<1x1x4x110xbf16, #tpu.memory_space<vmem>>, %arg7: memref<1x1x4x110xbf16, #tpu.memory_space<vmem>>, %arg8: memref<8x108xbf16, #tpu.memory_space<vmem>>, %arg9: memref<8x1xf32, #tpu.memory_space<vmem>>, %arg10: memref<1x1x8x320xbf16, #tpu.memory_space<vmem>>, %arg11: memref<108x320xbf16, #tpu.memory_space<vmem>>) attributes {dimension_semantics = [#tpu.dimension_semantics<parallel>, #tpu.dimension_semantics<parallel>], iteration_bounds = array<i64: 2, 1>, scalar_prefetch = 0 : i64, scratch_operands = 1 : i64, tpu.core_type = #tpu.core_type<tc>, window_params = [{transform_indices = @transform_0, window_bounds = array<i64: 1, 1, 4, 110>}, {transform_indices = @transform_1, window_bounds = array<i64: 1, 1, 4, 110>}, {transform_indices = @transform_2, window_bounds = array<i64: 1, 1, 4, 110>}, {transform_indices = @transform_3, window_bounds = array<i64: 1, 1, 4, 110>}, {transform_indices = @transform_4, window_bounds = array<i64: 1, 1, 4, 110>}, {transform_indices = @transform_5, window_bounds = array<i64: 1, 1, 4, 110>}, {pipeline_mode = #tpu.pipeline_mode<synchronous>, transform_indices = @transform_6, window_bounds = array<i64: 8, 108>}, {pipeline_mode = #tpu.pipeline_mode<synchronous>, transform_indices = @transform_7, window_bounds = array<i64: 8, 1>}, {transform_indices = @transform_8, window_bounds = array<i64: 1, 1, 8, 320>}]} {
    %c0 = arith.constant 0 : index
    %c0_0 = arith.constant 0 : index
    %c0_1 = arith.constant 0 : index
    %c0_2 = arith.constant 0 : index
    %0 = vector.load %arg2[%c0, %c0_0, %c0_1, %c0_2] : memref<1x1x4x110xbf16, #tpu.memory_space<vmem>>, vector<1x1x4x80xbf16>
    %1 = vector.shape_cast %0 : vector<1x1x4x80xbf16> to vector<4x80xbf16>
    %c0_3 = arith.constant 0 : index
    %c0_4 = arith.constant 0 : index
    %2 = vector.load %arg11[%c0_3, %c0_4] : memref<108x320xbf16, #tpu.memory_space<vmem>>, vector<4x80xbf16>
    tpu.vector_store %arg11[%c0_3, %c0_4], %1 {strides = array<i32>} : memref<108x320xbf16, #tpu.memory_space<vmem>>, vector<4x80xbf16>,
    %c0_5 = arith.constant 0 : index
    %c0_6 = arith.constant 0 : index
    %c0_7 = arith.constant 0 : index
    %c1 = arith.constant 1 : index
    %3 = vector.load %arg2[%c0_5, %c0_6, %c0_7, %c1] : memref<1x1x4x110xbf16, #tpu.memory_space<vmem>>, vector<1x1x4x80xbf16>
    %4 = vector.shape_cast %3 : vector<1x1x4x80xbf16> to vector<4x80xbf16>
    %c4 = arith.constant 4 : index
    %c0_8 = arith.constant 0 : index
    %5 = vector.load %arg11[%c4, %c0_8] : memref<108x320xbf16, #tpu.memory_space<vmem>>, vector<4x80xbf16>
    tpu.vector_store %arg11[%c4, %c0_8], %4 {strides = array<i32>} : memref<108x320xbf16, #tpu.memory_space<vmem>>, vector<4x80xbf16>,
    %c0_9 = arith.constant 0 : index
    %c0_10 = arith.constant 0 : index
    %c0_11 = arith.constant 0 : index
    %c2 = arith.constant 2 : index
    %6 = vector.load %arg2[%c0_9, %c0_10, %c0_11, %c2] : memref<1x1x4x110xbf16, #tpu.memory_space<vmem>>, vector<1x1x4x80xbf16>
    %7 = vector.shape_cast %6 : vector<1x1x4x80xbf16> to vector<4x80xbf16>
    %c8 = arith.constant 8 : index
    %c0_12 = arith.constant 0 : index
    %8 = vector.load %arg11[%c8, %c0_12] : memref<108x320xbf16, #tpu.memory_space<vmem>>, vector<4x80xbf16>
    tpu.vector_store %arg11[%c8, %c0_12], %7 {strides = array<i32>} : memref<108x320xbf16, #tpu.memory_space<vmem>>, vector<4x80xbf16>,
    %c0_13 = arith.constant 0 : index
    %c0_14 = arith.constant 0 : index
    %c0_15 = arith.constant 0 : index
    %c10 = arith.constant 10 : index
    %9 = vector.load %arg2[%c0_13, %c0_14, %c0_15, %c10] : memref<1x1x4x110xbf16, #tpu.memory_space<vmem>>, vector<1x1x4x80xbf16>
    %10 = vector.shape_cast %9 : vector<1x1x4x80xbf16> to vector<4x80xbf16>
    %c12 = arith.constant 12 : index
    %c0_16 = arith.constant 0 : index
    %11 = vector.load %arg11[%c12, %c0_16] : memref<108x320xbf16, #tpu.memory_space<vmem>>, vector<4x80xbf16>
    tpu.vector_store %arg11[%c12, %c0_16], %10 {strides = array<i32>} : memref<108x320xbf16, #tpu.memory_space<vmem>>, vector<4x80xbf16>,
    %c0_17 = arith.constant 0 : index
    %c0_18 = arith.constant 0 : index
    %c0_19 = arith.constant 0 : index
    %c11 = arith.constant 11 : index
    %12 = vector.load %arg2[%c0_17, %c0_18, %c0_19, %c11] : memref<1x1x4x110xbf16, #tpu.memory_space<vmem>>, vector<1x1x4x80xbf16>
    %13 = vector.shape_cast %12 : vector<1x1x4x80xbf16> to vector<4x80xbf16>
    %c16 = arith.constant 16 : index
    %c0_20 = arith.constant 0 : index
    %14 = vector.load %arg11[%c16, %c0_20] : memref<108x320xbf16, #tpu.memory_space<vmem>>, vector<4x80xbf16>
    tpu.vector_store %arg11[%c16, %c0_20], %13 {strides = array<i32>} : memref<108x320xbf16, #tpu.memory_space<vmem>>, vector<4x80xbf16>,
    %c0_21 = arith.constant 0 : index
    %c0_22 = arith.constant 0 : index
    %c0_23 = arith.constant 0 : index
    %c12_24 = arith.constant 12 : index
    %15 = vector.load %arg2[%c0_21, %c0_22, %c0_23, %c12_24] : memref<1x1x4x110xbf16, #tpu.memory_space<vmem>>, vector<1x1x4x80xbf16>
    %16 = vector.shape_cast %15 : vector<1x1x4x80xbf16> to vector<4x80xbf16>
    %c20 = arith.constant 20 : index
    %c0_25 = arith.constant 0 : index
    %17 = vector.load %arg11[%c20, %c0_25] : memref<108x320xbf16, #tpu.memory_space<vmem>>, vector<4x80xbf16>
    tpu.vector_store %arg11[%c20, %c0_25], %16 {strides = array<i32>} : memref<108x320xbf16, #tpu.memory_space<vmem>>, vector<4x80xbf16>,
    %c0_26 = arith.constant 0 : index
    %c0_27 = arith.constant 0 : index
    %c0_28 = arith.constant 0 : index
    %c20_29 = arith.constant 20 : index
    %18 = vector.load %arg2[%c0_26, %c0_27, %c0_28, %c20_29] : memref<1x1x4x110xbf16, #tpu.memory_space<vmem>>, vector<1x1x4x80xbf16>
    %19 = vector.shape_cast %18 : vector<1x1x4x80xbf16> to vector<4x80xbf16>
    %c24 = arith.constant 24 : index
    %c0_30 = arith.constant 0 : index
    %20 = vector.load %arg11[%c24, %c0_30] : memref<108x320xbf16, #tpu.memory_space<vmem>>, vector<4x80xbf16>
    tpu.vector_store %arg11[%c24, %c0_30], %19 {strides = array<i32>} : memref<108x320xbf16, #tpu.memory_space<vmem>>, vector<4x80xbf16>,
    %c0_31 = arith.constant 0 : index
    %c0_32 = arith.constant 0 : index
    %c0_33 = arith.constant 0 : index
    %c21 = arith.constant 21 : index
    %21 = vector.load %arg2[%c0_31, %c0_32, %c0_33, %c21] : memref<1x1x4x110xbf16, #tpu.memory_space<vmem>>, vector<1x1x4x80xbf16>
    %22 = vector.shape_cast %21 : vector<1x1x4x80xbf16> to vector<4x80xbf16>
    %c28 = arith.constant 28 : index
    %c0_34 = arith.constant 0 : index
    %23 = vector.load %arg11[%c28, %c0_34] : memref<108x320xbf16, #tpu.memory_space<vmem>>, vector<4x80xbf16>
    tpu.vector_store %arg11[%c28, %c0_34], %22 {strides = array<i32>} : memref<108x320xbf16, #tpu.memory_space<vmem>>, vector<4x80xbf16>,
    %c0_35 = arith.constant 0 : index
    %c0_36 = arith.constant 0 : index
    %c0_37 = arith.constant 0 : index
    %c22 = arith.constant 22 : index
    %24 = vector.load %arg2[%c0_35, %c0_36, %c0_37, %c22] : memref<1x1x4x110xbf16, #tpu.memory_space<vmem>>, vector<1x1x4x80xbf16>
    %25 = vector.shape_cast %24 : vector<1x1x4x80xbf16> to vector<4x80xbf16>
    %c32 = arith.constant 32 : index
    %c0_38 = arith.constant 0 : index
    %26 = vector.load %arg11[%c32, %c0_38] : memref<108x320xbf16, #tpu.memory_space<vmem>>, vector<4x80xbf16>
    tpu.vector_store %arg11[%c32, %c0_38], %25 {strides = array<i32>} : memref<108x320xbf16, #tpu.memory_space<vmem>>, vector<4x80xbf16>,
    %c0_39 = arith.constant 0 : index
    %c0_40 = arith.constant 0 : index
    %c0_41 = arith.constant 0 : index
    %c0_42 = arith.constant 0 : index
    %27 = vector.load %arg3[%c0_39, %c0_40, %c0_41, %c0_42] : memref<1x1x4x110xbf16, #tpu.memory_space<vmem>>, vector<1x1x4x80xbf16>
    %28 = vector.shape_cast %27 : vector<1x1x4x80xbf16> to vector<4x80xbf16>
    %c36 = arith.constant 36 : index
    %c0_43 = arith.constant 0 : index
    %29 = vector.load %arg11[%c36, %c0_43] : memref<108x320xbf16, #tpu.memory_space<vmem>>, vector<4x80xbf16>
    tpu.vector_store %arg11[%c36, %c0_43], %28 {strides = array<i32>} : memref<108x320xbf16, #tpu.memory_space<vmem>>, vector<4x80xbf16>,
    %c0_44 = arith.constant 0 : index
    %c0_45 = arith.constant 0 : index
    %c0_46 = arith.constant 0 : index
    %c1_47 = arith.constant 1 : index
    %30 = vector.load %arg3[%c0_44, %c0_45, %c0_46, %c1_47] : memref<1x1x4x110xbf16, #tpu.memory_space<vmem>>, vector<1x1x4x80xbf16>
    %31 = vector.shape_cast %30 : vector<1x1x4x80xbf16> to vector<4x80xbf16>
    %c40 = arith.constant 40 : index
    %c0_48 = arith.constant 0 : index
    %32 = vector.load %arg11[%c40, %c0_48] : memref<108x320xbf16, #tpu.memory_space<vmem>>, vector<4x80xbf16>
    tpu.vector_store %arg11[%c40, %c0_48], %31 {strides = array<i32>} : memref<108x320xbf16, #tpu.memory_space<vmem>>, vector<4x80xbf16>,
    %c0_49 = arith.constant 0 : index
    %c0_50 = arith.constant 0 : index
    %c0_51 = arith.constant 0 : index
    %c2_52 = arith.constant 2 : index
    %33 = vector.load %arg3[%c0_49, %c0_50, %c0_51, %c2_52] : memref<1x1x4x110xbf16, #tpu.memory_space<vmem>>, vector<1x1x4x80xbf16>
    %34 = vector.shape_cast %33 : vector<1x1x4x80xbf16> to vector<4x80xbf16>
    %c44 = arith.constant 44 : index
    %c0_53 = arith.constant 0 : index
    %35 = vector.load %arg11[%c44, %c0_53] : memref<108x320xbf16, #tpu.memory_space<vmem>>, vector<4x80xbf16>
    tpu.vector_store %arg11[%c44, %c0_53], %34 {strides = array<i32>} : memref<108x320xbf16, #tpu.memory_space<vmem>>, vector<4x80xbf16>,
    %c0_54 = arith.constant 0 : index
    %c0_55 = arith.constant 0 : index
    %c0_56 = arith.constant 0 : index
    %c10_57 = arith.constant 10 : index
    %36 = vector.load %arg3[%c0_54, %c0_55, %c0_56, %c10_57] : memref<1x1x4x110xbf16, #tpu.memory_space<vmem>>, vector<1x1x4x80xbf16>
    %37 = vector.shape_cast %36 : vector<1x1x4x80xbf16> to vector<4x80xbf16>
    %c48 = arith.constant 48 : index
    %c0_58 = arith.constant 0 : index
    %38 = vector.load %arg11[%c48, %c0_58] : memref<108x320xbf16, #tpu.memory_space<vmem>>, vector<4x80xbf16>
    tpu.vector_store %arg11[%c48, %c0_58], %37 {strides = array<i32>} : memref<108x320xbf16, #tpu.memory_space<vmem>>, vector<4x80xbf16>,
    %c0_59 = arith.constant 0 : index
    %c0_60 = arith.constant 0 : index
    %c0_61 = arith.constant 0 : index
    %c11_62 = arith.constant 11 : index
    %39 = vector.load %arg3[%c0_59, %c0_60, %c0_61, %c11_62] : memref<1x1x4x110xbf16, #tpu.memory_space<vmem>>, vector<1x1x4x80xbf16>
    %40 = vector.shape_cast %39 : vector<1x1x4x80xbf16> to vector<4x80xbf16>
    %c52 = arith.constant 52 : index
    %c0_63 = arith.constant 0 : index
    %41 = vector.load %arg11[%c52, %c0_63] : memref<108x320xbf16, #tpu.memory_space<vmem>>, vector<4x80xbf16>
    tpu.vector_store %arg11[%c52, %c0_63], %40 {strides = array<i32>} : memref<108x320xbf16, #tpu.memory_space<vmem>>, vector<4x80xbf16>,
    %c0_64 = arith.constant 0 : index
    %c0_65 = arith.constant 0 : index
    %c0_66 = arith.constant 0 : index
    %c12_67 = arith.constant 12 : index
    %42 = vector.load %arg3[%c0_64, %c0_65, %c0_66, %c12_67] : memref<1x1x4x110xbf16, #tpu.memory_space<vmem>>, vector<1x1x4x80xbf16>
    %43 = vector.shape_cast %42 : vector<1x1x4x80xbf16> to vector<4x80xbf16>
    %c56 = arith.constant 56 : index
    %c0_68 = arith.constant 0 : index
    %44 = vector.load %arg11[%c56, %c0_68] : memref<108x320xbf16, #tpu.memory_space<vmem>>, vector<4x80xbf16>
    tpu.vector_store %arg11[%c56, %c0_68], %43 {strides = array<i32>} : memref<108x320xbf16, #tpu.memory_space<vmem>>, vector<4x80xbf16>,
    %c0_69 = arith.constant 0 : index
    %c0_70 = arith.constant 0 : index
    %c0_71 = arith.constant 0 : index
    %c20_72 = arith.constant 20 : index
    %45 = vector.load %arg3[%c0_69, %c0_70, %c0_71, %c20_72] : memref<1x1x4x110xbf16, #tpu.memory_space<vmem>>, vector<1x1x4x80xbf16>
    %46 = vector.shape_cast %45 : vector<1x1x4x80xbf16> to vector<4x80xbf16>
    %c60 = arith.constant 60 : index
    %c0_73 = arith.constant 0 : index
    %47 = vector.load %arg11[%c60, %c0_73] : memref<108x320xbf16, #tpu.memory_space<vmem>>, vector<4x80xbf16>
    tpu.vector_store %arg11[%c60, %c0_73], %46 {strides = array<i32>} : memref<108x320xbf16, #tpu.memory_space<vmem>>, vector<4x80xbf16>,
    %c0_74 = arith.constant 0 : index
    %c0_75 = arith.constant 0 : index
    %c0_76 = arith.constant 0 : index
    %c21_77 = arith.constant 21 : index
    %48 = vector.load %arg3[%c0_74, %c0_75, %c0_76, %c21_77] : memref<1x1x4x110xbf16, #tpu.memory_space<vmem>>, vector<1x1x4x80xbf16>
    %49 = vector.shape_cast %48 : vector<1x1x4x80xbf16> to vector<4x80xbf16>
    %c64 = arith.constant 64 : index
    %c0_78 = arith.constant 0 : index
    %50 = vector.load %arg11[%c64, %c0_78] : memref<108x320xbf16, #tpu.memory_space<vmem>>, vector<4x80xbf16>
    tpu.vector_store %arg11[%c64, %c0_78], %49 {strides = array<i32>} : memref<108x320xbf16, #tpu.memory_space<vmem>>, vector<4x80xbf16>,
    %c0_79 = arith.constant 0 : index
    %c0_80 = arith.constant 0 : index
    %c0_81 = arith.constant 0 : index
    %c22_82 = arith.constant 22 : index
    %51 = vector.load %arg3[%c0_79, %c0_80, %c0_81, %c22_82] : memref<1x1x4x110xbf16, #tpu.memory_space<vmem>>, vector<1x1x4x80xbf16>
    %52 = vector.shape_cast %51 : vector<1x1x4x80xbf16> to vector<4x80xbf16>
    %c68 = arith.constant 68 : index
    %c0_83 = arith.constant 0 : index
    %53 = vector.load %arg11[%c68, %c0_83] : memref<108x320xbf16, #tpu.memory_space<vmem>>, vector<4x80xbf16>
    tpu.vector_store %arg11[%c68, %c0_83], %52 {strides = array<i32>} : memref<108x320xbf16, #tpu.memory_space<vmem>>, vector<4x80xbf16>,
    %c0_84 = arith.constant 0 : index
    %c0_85 = arith.constant 0 : index
    %c0_86 = arith.constant 0 : index
    %c0_87 = arith.constant 0 : index
    %54 = vector.load %arg4[%c0_84, %c0_85, %c0_86, %c0_87] : memref<1x1x4x110xbf16, #tpu.memory_space<vmem>>, vector<1x1x4x80xbf16>
    %55 = vector.shape_cast %54 : vector<1x1x4x80xbf16> to vector<4x80xbf16>
    %c72 = arith.constant 72 : index
    %c0_88 = arith.constant 0 : index
    %56 = vector.load %arg11[%c72, %c0_88] : memref<108x320xbf16, #tpu.memory_space<vmem>>, vector<4x80xbf16>
    tpu.vector_store %arg11[%c72, %c0_88], %55 {strides = array<i32>} : memref<108x320xbf16, #tpu.memory_space<vmem>>, vector<4x80xbf16>,
    %c0_89 = arith.constant 0 : index
    %c0_90 = arith.constant 0 : index
    %c0_91 = arith.constant 0 : index
    %c1_92 = arith.constant 1 : index
    %57 = vector.load %arg4[%c0_89, %c0_90, %c0_91, %c1_92] : memref<1x1x4x110xbf16, #tpu.memory_space<vmem>>, vector<1x1x4x80xbf16>
    %58 = vector.shape_cast %57 : vector<1x1x4x80xbf16> to vector<4x80xbf16>
    %c76 = arith.constant 76 : index
    %c0_93 = arith.constant 0 : index
    %59 = vector.load %arg11[%c76, %c0_93] : memref<108x320xbf16, #tpu.memory_space<vmem>>, vector<4x80xbf16>
    tpu.vector_store %arg11[%c76, %c0_93], %58 {strides = array<i32>} : memref<108x320xbf16, #tpu.memory_space<vmem>>, vector<4x80xbf16>,
    %c0_94 = arith.constant 0 : index
    %c0_95 = arith.constant 0 : index
    %c0_96 = arith.constant 0 : index
    %c2_97 = arith.constant 2 : index
    %60 = vector.load %arg4[%c0_94, %c0_95, %c0_96, %c2_97] : memref<1x1x4x110xbf16, #tpu.memory_space<vmem>>, vector<1x1x4x80xbf16>
    %61 = vector.shape_cast %60 : vector<1x1x4x80xbf16> to vector<4x80xbf16>
    %c80 = arith.constant 80 : index
    %c0_98 = arith.constant 0 : index
    %62 = vector.load %arg11[%c80, %c0_98] : memref<108x320xbf16, #tpu.memory_space<vmem>>, vector<4x80xbf16>
    tpu.vector_store %arg11[%c80, %c0_98], %61 {strides = array<i32>} : memref<108x320xbf16, #tpu.memory_space<vmem>>, vector<4x80xbf16>,
    %c0_99 = arith.constant 0 : index
    %c0_100 = arith.constant 0 : index
    %c0_101 = arith.constant 0 : index
    %c10_102 = arith.constant 10 : index
    %63 = vector.load %arg4[%c0_99, %c0_100, %c0_101, %c10_102] : memref<1x1x4x110xbf16, #tpu.memory_space<vmem>>, vector<1x1x4x80xbf16>
    %64 = vector.shape_cast %63 : vector<1x1x4x80xbf16> to vector<4x80xbf16>
    %c84 = arith.constant 84 : index
    %c0_103 = arith.constant 0 : index
    %65 = vector.load %arg11[%c84, %c0_103] : memref<108x320xbf16, #tpu.memory_space<vmem>>, vector<4x80xbf16>
    tpu.vector_store %arg11[%c84, %c0_103], %64 {strides = array<i32>} : memref<108x320xbf16, #tpu.memory_space<vmem>>, vector<4x80xbf16>,
    %c0_104 = arith.constant 0 : index
    %c0_105 = arith.constant 0 : index
    %c0_106 = arith.constant 0 : index
    %c11_107 = arith.constant 11 : index
    %66 = vector.load %arg4[%c0_104, %c0_105, %c0_106, %c11_107] : memref<1x1x4x110xbf16, #tpu.memory_space<vmem>>, vector<1x1x4x80xbf16>
    %67 = vector.shape_cast %66 : vector<1x1x4x80xbf16> to vector<4x80xbf16>
    %c88 = arith.constant 88 : index
    %c0_108 = arith.constant 0 : index
    %68 = vector.load %arg11[%c88, %c0_108] : memref<108x320xbf16, #tpu.memory_space<vmem>>, vector<4x80xbf16>
    tpu.vector_store %arg11[%c88, %c0_108], %67 {strides = array<i32>} : memref<108x320xbf16, #tpu.memory_space<vmem>>, vector<4x80xbf16>,
    %c0_109 = arith.constant 0 : index
    %c0_110 = arith.constant 0 : index
    %c0_111 = arith.constant 0 : index
    %c12_112 = arith.constant 12 : index
    %69 = vector.load %arg4[%c0_109, %c0_110, %c0_111, %c12_112] : memref<1x1x4x110xbf16, #tpu.memory_space<vmem>>, vector<1x1x4x80xbf16>
    %70 = vector.shape_cast %69 : vector<1x1x4x80xbf16> to vector<4x80xbf16>
    %c92 = arith.constant 92 : index
    %c0_113 = arith.constant 0 : index
    %71 = vector.load %arg11[%c92, %c0_113] : memref<108x320xbf16, #tpu.memory_space<vmem>>, vector<4x80xbf16>
    tpu.vector_store %arg11[%c92, %c0_113], %70 {strides = array<i32>} : memref<108x320xbf16, #tpu.memory_space<vmem>>, vector<4x80xbf16>,
    %c0_114 = arith.constant 0 : index
    %c0_115 = arith.constant 0 : index
    %c0_116 = arith.constant 0 : index
    %c20_117 = arith.constant 20 : index
    %72 = vector.load %arg4[%c0_114, %c0_115, %c0_116, %c20_117] : memref<1x1x4x110xbf16, #tpu.memory_space<vmem>>, vector<1x1x4x80xbf16>
    %73 = vector.shape_cast %72 : vector<1x1x4x80xbf16> to vector<4x80xbf16>
    %c96 = arith.constant 96 : index
    %c0_118 = arith.constant 0 : index
    %74 = vector.load %arg11[%c96, %c0_118] : memref<108x320xbf16, #tpu.memory_space<vmem>>, vector<4x80xbf16>
    tpu.vector_store %arg11[%c96, %c0_118], %73 {strides = array<i32>} : memref<108x320xbf16, #tpu.memory_space<vmem>>, vector<4x80xbf16>,
    %c0_119 = arith.constant 0 : index
    %c0_120 = arith.constant 0 : index
    %c0_121 = arith.constant 0 : index
    %c21_122 = arith.constant 21 : index
    %75 = vector.load %arg4[%c0_119, %c0_120, %c0_121, %c21_122] : memref<1x1x4x110xbf16, #tpu.memory_space<vmem>>, vector<1x1x4x80xbf16>
    %76 = vector.shape_cast %75 : vector<1x1x4x80xbf16> to vector<4x80xbf16>
    %c100 = arith.constant 100 : index
    %c0_123 = arith.constant 0 : index
    %77 = vector.load %arg11[%c100, %c0_123] : memref<108x320xbf16, #tpu.memory_space<vmem>>, vector<4x80xbf16>
    tpu.vector_store %arg11[%c100, %c0_123], %76 {strides = array<i32>} : memref<108x320xbf16, #tpu.memory_space<vmem>>, vector<4x80xbf16>,
    %c0_124 = arith.constant 0 : index
    %c0_125 = arith.constant 0 : index
    %c0_126 = arith.constant 0 : index
    %c22_127 = arith.constant 22 : index
    %78 = vector.load %arg4[%c0_124, %c0_125, %c0_126, %c22_127] : memref<1x1x4x110xbf16, #tpu.memory_space<vmem>>, vector<1x1x4x80xbf16>
    %79 = vector.shape_cast %78 : vector<1x1x4x80xbf16> to vector<4x80xbf16>
    %c104 = arith.constant 104 : index
    %c0_128 = arith.constant 0 : index
    %80 = vector.load %arg11[%c104, %c0_128] : memref<108x320xbf16, #tpu.memory_space<vmem>>, vector<4x80xbf16>
    tpu.vector_store %arg11[%c104, %c0_128], %79 {strides = array<i32>} : memref<108x320xbf16, #tpu.memory_space<vmem>>, vector<4x80xbf16>,
    %c0_129 = arith.constant 0 : index
    %c0_130 = arith.constant 0 : index
    %c0_131 = arith.constant 0 : index
    %c0_132 = arith.constant 0 : index
    %81 = vector.load %arg3[%c0_129, %c0_130, %c0_131, %c0_132] : memref<1x1x4x110xbf16, #tpu.memory_space<vmem>>, vector<1x1x4x80xbf16>
    %82 = vector.shape_cast %81 : vector<1x1x4x80xbf16> to vector<4x80xbf16>
    %c0_133 = arith.constant 0 : index
    %c80_134 = arith.constant 80 : index
    %83 = vector.load %arg11[%c0_133, %c80_134] : memref<108x320xbf16, #tpu.memory_space<vmem>>, vector<4x80xbf16>
    tpu.vector_store %arg11[%c0_133, %c80_134], %82 {strides = array<i32>} : memref<108x320xbf16, #tpu.memory_space<vmem>>, vector<4x80xbf16>,
    %c0_135 = arith.constant 0 : index
    %c0_136 = arith.constant 0 : index
    %c0_137 = arith.constant 0 : index
    %c1_138 = arith.constant 1 : index
    %84 = vector.load %arg3[%c0_135, %c0_136, %c0_137, %c1_138] : memref<1x1x4x110xbf16, #tpu.memory_space<vmem>>, vector<1x1x4x80xbf16>
    %85 = vector.shape_cast %84 : vector<1x1x4x80xbf16> to vector<4x80xbf16>
    %c4_139 = arith.constant 4 : index
    %c80_140 = arith.constant 80 : index
    %86 = vector.load %arg11[%c4_139, %c80_140] : memref<108x320xbf16, #tpu.memory_space<vmem>>, vector<4x80xbf16>
    tpu.vector_store %arg11[%c4_139, %c80_140], %85 {strides = array<i32>} : memref<108x320xbf16, #tpu.memory_space<vmem>>, vector<4x80xbf16>,
    %c0_141 = arith.constant 0 : index
    %c0_142 = arith.constant 0 : index
    %c0_143 = arith.constant 0 : index
    %c2_144 = arith.constant 2 : index
    %87 = vector.load %arg3[%c0_141, %c0_142, %c0_143, %c2_144] : memref<1x1x4x110xbf16, #tpu.memory_space<vmem>>, vector<1x1x4x80xbf16>
    %88 = vector.shape_cast %87 : vector<1x1x4x80xbf16> to vector<4x80xbf16>
    %c8_145 = arith.constant 8 : index
    %c80_146 = arith.constant 80 : index
    %89 = vector.load %arg11[%c8_145, %c80_146] : memref<108x320xbf16, #tpu.memory_space<vmem>>, vector<4x80xbf16>
    tpu.vector_store %arg11[%c8_145, %c80_146], %88 {strides = array<i32>} : memref<108x320xbf16, #tpu.memory_space<vmem>>, vector<4x80xbf16>,
    %c0_147 = arith.constant 0 : index
    %c0_148 = arith.constant 0 : index
    %c0_149 = arith.constant 0 : index
    %c10_150 = arith.constant 10 : index
    %90 = vector.load %arg3[%c0_147, %c0_148, %c0_149, %c10_150] : memref<1x1x4x110xbf16, #tpu.memory_space<vmem>>, vector<1x1x4x80xbf16>
    %91 = vector.shape_cast %90 : vector<1x1x4x80xbf16> to vector<4x80xbf16>
    %c12_151 = arith.constant 12 : index
    %c80_152 = arith.constant 80 : index
    %92 = vector.load %arg11[%c12_151, %c80_152] : memref<108x320xbf16, #tpu.memory_space<vmem>>, vector<4x80xbf16>
    tpu.vector_store %arg11[%c12_151, %c80_152], %91 {strides = array<i32>} : memref<108x320xbf16, #tpu.memory_space<vmem>>, vector<4x80xbf16>,
    %c0_153 = arith.constant 0 : index
    %c0_154 = arith.constant 0 : index
    %c0_155 = arith.constant 0 : index
    %c11_156 = arith.constant 11 : index
    %93 = vector.load %arg3[%c0_153, %c0_154, %c0_155, %c11_156] : memref<1x1x4x110xbf16, #tpu.memory_space<vmem>>, vector<1x1x4x80xbf16>
    %94 = vector.shape_cast %93 : vector<1x1x4x80xbf16> to vector<4x80xbf16>
    %c16_157 = arith.constant 16 : index
    %c80_158 = arith.constant 80 : index
    %95 = vector.load %arg11[%c16_157, %c80_158] : memref<108x320xbf16, #tpu.memory_space<vmem>>, vector<4x80xbf16>
    tpu.vector_store %arg11[%c16_157, %c80_158], %94 {strides = array<i32>} : memref<108x320xbf16, #tpu.memory_space<vmem>>, vector<4x80xbf16>,
    %c0_159 = arith.constant 0 : index
    %c0_160 = arith.constant 0 : index
    %c0_161 = arith.constant 0 : index
    %c12_162 = arith.constant 12 : index
    %96 = vector.load %arg3[%c0_159, %c0_160, %c0_161, %c12_162] : memref<1x1x4x110xbf16, #tpu.memory_space<vmem>>, vector<1x1x4x80xbf16>
    %97 = vector.shape_cast %96 : vector<1x1x4x80xbf16> to vector<4x80xbf16>
    %c20_163 = arith.constant 20 : index
    %c80_164 = arith.constant 80 : index
    %98 = vector.load %arg11[%c20_163, %c80_164] : memref<108x320xbf16, #tpu.memory_space<vmem>>, vector<4x80xbf16>
    tpu.vector_store %arg11[%c20_163, %c80_164], %97 {strides = array<i32>} : memref<108x320xbf16, #tpu.memory_space<vmem>>, vector<4x80xbf16>,
    %c0_165 = arith.constant 0 : index
    %c0_166 = arith.constant 0 : index
    %c0_167 = arith.constant 0 : index
    %c20_168 = arith.constant 20 : index
    %99 = vector.load %arg3[%c0_165, %c0_166, %c0_167, %c20_168] : memref<1x1x4x110xbf16, #tpu.memory_space<vmem>>, vector<1x1x4x80xbf16>
    %100 = vector.shape_cast %99 : vector<1x1x4x80xbf16> to vector<4x80xbf16>
    %c24_169 = arith.constant 24 : index
    %c80_170 = arith.constant 80 : index
    %101 = vector.load %arg11[%c24_169, %c80_170] : memref<108x320xbf16, #tpu.memory_space<vmem>>, vector<4x80xbf16>
    tpu.vector_store %arg11[%c24_169, %c80_170], %100 {strides = array<i32>} : memref<108x320xbf16, #tpu.memory_space<vmem>>, vector<4x80xbf16>,
    %c0_171 = arith.constant 0 : index
    %c0_172 = arith.constant 0 : index
    %c0_173 = arith.constant 0 : index
    %c21_174 = arith.constant 21 : index
    %102 = vector.load %arg3[%c0_171, %c0_172, %c0_173, %c21_174] : memref<1x1x4x110xbf16, #tpu.memory_space<vmem>>, vector<1x1x4x80xbf16>
    %103 = vector.shape_cast %102 : vector<1x1x4x80xbf16> to vector<4x80xbf16>
    %c28_175 = arith.constant 28 : index
    %c80_176 = arith.constant 80 : index
    %104 = vector.load %arg11[%c28_175, %c80_176] : memref<108x320xbf16, #tpu.memory_space<vmem>>, vector<4x80xbf16>
    tpu.vector_store %arg11[%c28_175, %c80_176], %103 {strides = array<i32>} : memref<108x320xbf16, #tpu.memory_space<vmem>>, vector<4x80xbf16>,
    %c0_177 = arith.constant 0 : index
    %c0_178 = arith.constant 0 : index
    %c0_179 = arith.constant 0 : index
    %c22_180 = arith.constant 22 : index
    %105 = vector.load %arg3[%c0_177, %c0_178, %c0_179, %c22_180] : memref<1x1x4x110xbf16, #tpu.memory_space<vmem>>, vector<1x1x4x80xbf16>
    %106 = vector.shape_cast %105 : vector<1x1x4x80xbf16> to vector<4x80xbf16>
    %c32_181 = arith.constant 32 : index
    %c80_182 = arith.constant 80 : index
    %107 = vector.load %arg11[%c32_181, %c80_182] : memref<108x320xbf16, #tpu.memory_space<vmem>>, vector<4x80xbf16>
    tpu.vector_store %arg11[%c32_181, %c80_182], %106 {strides = array<i32>} : memref<108x320xbf16, #tpu.memory_space<vmem>>, vector<4x80xbf16>,
    %c0_183 = arith.constant 0 : index
    %c0_184 = arith.constant 0 : index
    %c0_185 = arith.constant 0 : index
    %c0_186 = arith.constant 0 : index
    %108 = vector.load %arg4[%c0_183, %c0_184, %c0_185, %c0_186] : memref<1x1x4x110xbf16, #tpu.memory_space<vmem>>, vector<1x1x4x80xbf16>
    %109 = vector.shape_cast %108 : vector<1x1x4x80xbf16> to vector<4x80xbf16>
    %c36_187 = arith.constant 36 : index
    %c80_188 = arith.constant 80 : index
    %110 = vector.load %arg11[%c36_187, %c80_188] : memref<108x320xbf16, #tpu.memory_space<vmem>>, vector<4x80xbf16>
    tpu.vector_store %arg11[%c36_187, %c80_188], %109 {strides = array<i32>} : memref<108x320xbf16, #tpu.memory_space<vmem>>, vector<4x80xbf16>,
    %c0_189 = arith.constant 0 : index
    %c0_190 = arith.constant 0 : index
    %c0_191 = arith.constant 0 : index
    %c1_192 = arith.constant 1 : index
    %111 = vector.load %arg4[%c0_189, %c0_190, %c0_191, %c1_192] : memref<1x1x4x110xbf16, #tpu.memory_space<vmem>>, vector<1x1x4x80xbf16>
    %112 = vector.shape_cast %111 : vector<1x1x4x80xbf16> to vector<4x80xbf16>
    %c40_193 = arith.constant 40 : index
    %c80_194 = arith.constant 80 : index
    %113 = vector.load %arg11[%c40_193, %c80_194] : memref<108x320xbf16, #tpu.memory_space<vmem>>, vector<4x80xbf16>
    tpu.vector_store %arg11[%c40_193, %c80_194], %112 {strides = array<i32>} : memref<108x320xbf16, #tpu.memory_space<vmem>>, vector<4x80xbf16>,
    %c0_195 = arith.constant 0 : index
    %c0_196 = arith.constant 0 : index
    %c0_197 = arith.constant 0 : index
    %c2_198 = arith.constant 2 : index
    %114 = vector.load %arg4[%c0_195, %c0_196, %c0_197, %c2_198] : memref<1x1x4x110xbf16, #tpu.memory_space<vmem>>, vector<1x1x4x80xbf16>
    %115 = vector.shape_cast %114 : vector<1x1x4x80xbf16> to vector<4x80xbf16>
    %c44_199 = arith.constant 44 : index
    %c80_200 = arith.constant 80 : index
    %116 = vector.load %arg11[%c44_199, %c80_200] : memref<108x320xbf16, #tpu.memory_space<vmem>>, vector<4x80xbf16>
    tpu.vector_store %arg11[%c44_199, %c80_200], %115 {strides = array<i32>} : memref<108x320xbf16, #tpu.memory_space<vmem>>, vector<4x80xbf16>,
    %c0_201 = arith.constant 0 : index
    %c0_202 = arith.constant 0 : index
    %c0_203 = arith.constant 0 : index
    %c10_204 = arith.constant 10 : index
    %117 = vector.load %arg4[%c0_201, %c0_202, %c0_203, %c10_204] : memref<1x1x4x110xbf16, #tpu.memory_space<vmem>>, vector<1x1x4x80xbf16>
    %118 = vector.shape_cast %117 : vector<1x1x4x80xbf16> to vector<4x80xbf16>
    %c48_205 = arith.constant 48 : index
    %c80_206 = arith.constant 80 : index
    %119 = vector.load %arg11[%c48_205, %c80_206] : memref<108x320xbf16, #tpu.memory_space<vmem>>, vector<4x80xbf16>
    tpu.vector_store %arg11[%c48_205, %c80_206], %118 {strides = array<i32>} : memref<108x320xbf16, #tpu.memory_space<vmem>>, vector<4x80xbf16>,
    %c0_207 = arith.constant 0 : index
    %c0_208 = arith.constant 0 : index
    %c0_209 = arith.constant 0 : index
    %c11_210 = arith.constant 11 : index
    %120 = vector.load %arg4[%c0_207, %c0_208, %c0_209, %c11_210] : memref<1x1x4x110xbf16, #tpu.memory_space<vmem>>, vector<1x1x4x80xbf16>
    %121 = vector.shape_cast %120 : vector<1x1x4x80xbf16> to vector<4x80xbf16>
    %c52_211 = arith.constant 52 : index
    %c80_212 = arith.constant 80 : index
    %122 = vector.load %arg11[%c52_211, %c80_212] : memref<108x320xbf16, #tpu.memory_space<vmem>>, vector<4x80xbf16>
    tpu.vector_store %arg11[%c52_211, %c80_212], %121 {strides = array<i32>} : memref<108x320xbf16, #tpu.memory_space<vmem>>, vector<4x80xbf16>,
    %c0_213 = arith.constant 0 : index
    %c0_214 = arith.constant 0 : index
    %c0_215 = arith.constant 0 : index
    %c12_216 = arith.constant 12 : index
    %123 = vector.load %arg4[%c0_213, %c0_214, %c0_215, %c12_216] : memref<1x1x4x110xbf16, #tpu.memory_space<vmem>>, vector<1x1x4x80xbf16>
    %124 = vector.shape_cast %123 : vector<1x1x4x80xbf16> to vector<4x80xbf16>
    %c56_217 = arith.constant 56 : index
    %c80_218 = arith.constant 80 : index
    %125 = vector.load %arg11[%c56_217, %c80_218] : memref<108x320xbf16, #tpu.memory_space<vmem>>, vector<4x80xbf16>
    tpu.vector_store %arg11[%c56_217, %c80_218], %124 {strides = array<i32>} : memref<108x320xbf16, #tpu.memory_space<vmem>>, vector<4x80xbf16>,
    %c0_219 = arith.constant 0 : index
    %c0_220 = arith.constant 0 : index
    %c0_221 = arith.constant 0 : index
    %c20_222 = arith.constant 20 : index
    %126 = vector.load %arg4[%c0_219, %c0_220, %c0_221, %c20_222] : memref<1x1x4x110xbf16, #tpu.memory_space<vmem>>, vector<1x1x4x80xbf16>
    %127 = vector.shape_cast %126 : vector<1x1x4x80xbf16> to vector<4x80xbf16>
    %c60_223 = arith.constant 60 : index
    %c80_224 = arith.constant 80 : index
    %128 = vector.load %arg11[%c60_223, %c80_224] : memref<108x320xbf16, #tpu.memory_space<vmem>>, vector<4x80xbf16>
    tpu.vector_store %arg11[%c60_223, %c80_224], %127 {strides = array<i32>} : memref<108x320xbf16, #tpu.memory_space<vmem>>, vector<4x80xbf16>,
    %c0_225 = arith.constant 0 : index
    %c0_226 = arith.constant 0 : index
    %c0_227 = arith.constant 0 : index
    %c21_228 = arith.constant 21 : index
    %129 = vector.load %arg4[%c0_225, %c0_226, %c0_227, %c21_228] : memref<1x1x4x110xbf16, #tpu.memory_space<vmem>>, vector<1x1x4x80xbf16>
    %130 = vector.shape_cast %129 : vector<1x1x4x80xbf16> to vector<4x80xbf16>
    %c64_229 = arith.constant 64 : index
    %c80_230 = arith.constant 80 : index
    %131 = vector.load %arg11[%c64_229, %c80_230] : memref<108x320xbf16, #tpu.memory_space<vmem>>, vector<4x80xbf16>
    tpu.vector_store %arg11[%c64_229, %c80_230], %130 {strides = array<i32>} : memref<108x320xbf16, #tpu.memory_space<vmem>>, vector<4x80xbf16>,
    %c0_231 = arith.constant 0 : index
    %c0_232 = arith.constant 0 : index
    %c0_233 = arith.constant 0 : index
    %c22_234 = arith.constant 22 : index
    %132 = vector.load %arg4[%c0_231, %c0_232, %c0_233, %c22_234] : memref<1x1x4x110xbf16, #tpu.memory_space<vmem>>, vector<1x1x4x80xbf16>
    %133 = vector.shape_cast %132 : vector<1x1x4x80xbf16> to vector<4x80xbf16>
    %c68_235 = arith.constant 68 : index
    %c80_236 = arith.constant 80 : index
    %134 = vector.load %arg11[%c68_235, %c80_236] : memref<108x320xbf16, #tpu.memory_space<vmem>>, vector<4x80xbf16>
    tpu.vector_store %arg11[%c68_235, %c80_236], %133 {strides = array<i32>} : memref<108x320xbf16, #tpu.memory_space<vmem>>, vector<4x80xbf16>,
    %c0_237 = arith.constant 0 : index
    %c0_238 = arith.constant 0 : index
    %c0_239 = arith.constant 0 : index
    %c0_240 = arith.constant 0 : index
    %135 = vector.load %arg5[%c0_237, %c0_238, %c0_239, %c0_240] : memref<1x1x4x110xbf16, #tpu.memory_space<vmem>>, vector<1x1x4x80xbf16>
    %136 = vector.shape_cast %135 : vector<1x1x4x80xbf16> to vector<4x80xbf16>
    %c72_241 = arith.constant 72 : index
    %c80_242 = arith.constant 80 : index
    %137 = vector.load %arg11[%c72_241, %c80_242] : memref<108x320xbf16, #tpu.memory_space<vmem>>, vector<4x80xbf16>
    tpu.vector_store %arg11[%c72_241, %c80_242], %136 {strides = array<i32>} : memref<108x320xbf16, #tpu.memory_space<vmem>>, vector<4x80xbf16>,
    %c0_243 = arith.constant 0 : index
    %c0_244 = arith.constant 0 : index
    %c0_245 = arith.constant 0 : index
    %c1_246 = arith.constant 1 : index
    %138 = vector.load %arg5[%c0_243, %c0_244, %c0_245, %c1_246] : memref<1x1x4x110xbf16, #tpu.memory_space<vmem>>, vector<1x1x4x80xbf16>
    %139 = vector.shape_cast %138 : vector<1x1x4x80xbf16> to vector<4x80xbf16>
    %c76_247 = arith.constant 76 : index
    %c80_248 = arith.constant 80 : index
    %140 = vector.load %arg11[%c76_247, %c80_248] : memref<108x320xbf16, #tpu.memory_space<vmem>>, vector<4x80xbf16>
    tpu.vector_store %arg11[%c76_247, %c80_248], %139 {strides = array<i32>} : memref<108x320xbf16, #tpu.memory_space<vmem>>, vector<4x80xbf16>,
    %c0_249 = arith.constant 0 : index
    %c0_250 = arith.constant 0 : index
    %c0_251 = arith.constant 0 : index
    %c2_252 = arith.constant 2 : index
    %141 = vector.load %arg5[%c0_249, %c0_250, %c0_251, %c2_252] : memref<1x1x4x110xbf16, #tpu.memory_space<vmem>>, vector<1x1x4x80xbf16>
    %142 = vector.shape_cast %141 : vector<1x1x4x80xbf16> to vector<4x80xbf16>
    %c80_253 = arith.constant 80 : index
    %c80_254 = arith.constant 80 : index
    %143 = vector.load %arg11[%c80_253, %c80_254] : memref<108x320xbf16, #tpu.memory_space<vmem>>, vector<4x80xbf16>
    tpu.vector_store %arg11[%c80_253, %c80_254], %142 {strides = array<i32>} : memref<108x320xbf16, #tpu.memory_space<vmem>>, vector<4x80xbf16>,
    %c0_255 = arith.constant 0 : index
    %c0_256 = arith.constant 0 : index
    %c0_257 = arith.constant 0 : index
    %c10_258 = arith.constant 10 : index
    %144 = vector.load %arg5[%c0_255, %c0_256, %c0_257, %c10_258] : memref<1x1x4x110xbf16, #tpu.memory_space<vmem>>, vector<1x1x4x80xbf16>
    %145 = vector.shape_cast %144 : vector<1x1x4x80xbf16> to vector<4x80xbf16>
    %c84_259 = arith.constant 84 : index
    %c80_260 = arith.constant 80 : index
    %146 = vector.load %arg11[%c84_259, %c80_260] : memref<108x320xbf16, #tpu.memory_space<vmem>>, vector<4x80xbf16>
    tpu.vector_store %arg11[%c84_259, %c80_260], %145 {strides = array<i32>} : memref<108x320xbf16, #tpu.memory_space<vmem>>, vector<4x80xbf16>,
    %c0_261 = arith.constant 0 : index
    %c0_262 = arith.constant 0 : index
    %c0_263 = arith.constant 0 : index
    %c11_264 = arith.constant 11 : index
    %147 = vector.load %arg5[%c0_261, %c0_262, %c0_263, %c11_264] : memref<1x1x4x110xbf16, #tpu.memory_space<vmem>>, vector<1x1x4x80xbf16>
    %148 = vector.shape_cast %147 : vector<1x1x4x80xbf16> to vector<4x80xbf16>
    %c88_265 = arith.constant 88 : index
    %c80_266 = arith.constant 80 : index
    %149 = vector.load %arg11[%c88_265, %c80_266] : memref<108x320xbf16, #tpu.memory_space<vmem>>, vector<4x80xbf16>
    tpu.vector_store %arg11[%c88_265, %c80_266], %148 {strides = array<i32>} : memref<108x320xbf16, #tpu.memory_space<vmem>>, vector<4x80xbf16>,
    %c0_267 = arith.constant 0 : index
    %c0_268 = arith.constant 0 : index
    %c0_269 = arith.constant 0 : index
    %c12_270 = arith.constant 12 : index
    %150 = vector.load %arg5[%c0_267, %c0_268, %c0_269, %c12_270] : memref<1x1x4x110xbf16, #tpu.memory_space<vmem>>, vector<1x1x4x80xbf16>
    %151 = vector.shape_cast %150 : vector<1x1x4x80xbf16> to vector<4x80xbf16>
    %c92_271 = arith.constant 92 : index
    %c80_272 = arith.constant 80 : index
    %152 = vector.load %arg11[%c92_271, %c80_272] : memref<108x320xbf16, #tpu.memory_space<vmem>>, vector<4x80xbf16>
    tpu.vector_store %arg11[%c92_271, %c80_272], %151 {strides = array<i32>} : memref<108x320xbf16, #tpu.memory_space<vmem>>, vector<4x80xbf16>,
    %c0_273 = arith.constant 0 : index
    %c0_274 = arith.constant 0 : index
    %c0_275 = arith.constant 0 : index
    %c20_276 = arith.constant 20 : index
    %153 = vector.load %arg5[%c0_273, %c0_274, %c0_275, %c20_276] : memref<1x1x4x110xbf16, #tpu.memory_space<vmem>>, vector<1x1x4x80xbf16>
    %154 = vector.shape_cast %153 : vector<1x1x4x80xbf16> to vector<4x80xbf16>
    %c96_277 = arith.constant 96 : index
    %c80_278 = arith.constant 80 : index
    %155 = vector.load %arg11[%c96_277, %c80_278] : memref<108x320xbf16, #tpu.memory_space<vmem>>, vector<4x80xbf16>
    tpu.vector_store %arg11[%c96_277, %c80_278], %154 {strides = array<i32>} : memref<108x320xbf16, #tpu.memory_space<vmem>>, vector<4x80xbf16>,
    %c0_279 = arith.constant 0 : index
    %c0_280 = arith.constant 0 : index
    %c0_281 = arith.constant 0 : index
    %c21_282 = arith.constant 21 : index
    %156 = vector.load %arg5[%c0_279, %c0_280, %c0_281, %c21_282] : memref<1x1x4x110xbf16, #tpu.memory_space<vmem>>, vector<1x1x4x80xbf16>
    %157 = vector.shape_cast %156 : vector<1x1x4x80xbf16> to vector<4x80xbf16>
    %c100_283 = arith.constant 100 : index
    %c80_284 = arith.constant 80 : index
    %158 = vector.load %arg11[%c100_283, %c80_284] : memref<108x320xbf16, #tpu.memory_space<vmem>>, vector<4x80xbf16>
    tpu.vector_store %arg11[%c100_283, %c80_284], %157 {strides = array<i32>} : memref<108x320xbf16, #tpu.memory_space<vmem>>, vector<4x80xbf16>,
    %c0_285 = arith.constant 0 : index
    %c0_286 = arith.constant 0 : index
    %c0_287 = arith.constant 0 : index
    %c22_288 = arith.constant 22 : index
    %159 = vector.load %arg5[%c0_285, %c0_286, %c0_287, %c22_288] : memref<1x1x4x110xbf16, #tpu.memory_space<vmem>>, vector<1x1x4x80xbf16>
    %160 = vector.shape_cast %159 : vector<1x1x4x80xbf16> to vector<4x80xbf16>
    %c104_289 = arith.constant 104 : index
    %c80_290 = arith.constant 80 : index
    %161 = vector.load %arg11[%c104_289, %c80_290] : memref<108x320xbf16, #tpu.memory_space<vmem>>, vector<4x80xbf16>
    tpu.vector_store %arg11[%c104_289, %c80_290], %160 {strides = array<i32>} : memref<108x320xbf16, #tpu.memory_space<vmem>>, vector<4x80xbf16>,
    %c0_291 = arith.constant 0 : index
    %c0_292 = arith.constant 0 : index
    %c0_293 = arith.constant 0 : index
    %c0_294 = arith.constant 0 : index
    %162 = vector.load %arg4[%c0_291, %c0_292, %c0_293, %c0_294] : memref<1x1x4x110xbf16, #tpu.memory_space<vmem>>, vector<1x1x4x80xbf16>
    %163 = vector.shape_cast %162 : vector<1x1x4x80xbf16> to vector<4x80xbf16>
    %c0_295 = arith.constant 0 : index
    %c160 = arith.constant 160 : index
    %164 = vector.load %arg11[%c0_295, %c160] : memref<108x320xbf16, #tpu.memory_space<vmem>>, vector<4x80xbf16>
    tpu.vector_store %arg11[%c0_295, %c160], %163 {strides = array<i32>} : memref<108x320xbf16, #tpu.memory_space<vmem>>, vector<4x80xbf16>,
    %c0_296 = arith.constant 0 : index
    %c0_297 = arith.constant 0 : index
    %c0_298 = arith.constant 0 : index
    %c1_299 = arith.constant 1 : index
    %165 = vector.load %arg4[%c0_296, %c0_297, %c0_298, %c1_299] : memref<1x1x4x110xbf16, #tpu.memory_space<vmem>>, vector<1x1x4x80xbf16>
    %166 = vector.shape_cast %165 : vector<1x1x4x80xbf16> to vector<4x80xbf16>
    %c4_300 = arith.constant 4 : index
    %c160_301 = arith.constant 160 : index
    %167 = vector.load %arg11[%c4_300, %c160_301] : memref<108x320xbf16, #tpu.memory_space<vmem>>, vector<4x80xbf16>
    tpu.vector_store %arg11[%c4_300, %c160_301], %166 {strides = array<i32>} : memref<108x320xbf16, #tpu.memory_space<vmem>>, vector<4x80xbf16>,
    %c0_302 = arith.constant 0 : index
    %c0_303 = arith.constant 0 : index
    %c0_304 = arith.constant 0 : index
    %c2_305 = arith.constant 2 : index
    %168 = vector.load %arg4[%c0_302, %c0_303, %c0_304, %c2_305] : memref<1x1x4x110xbf16, #tpu.memory_space<vmem>>, vector<1x1x4x80xbf16>
    %169 = vector.shape_cast %168 : vector<1x1x4x80xbf16> to vector<4x80xbf16>
    %c8_306 = arith.constant 8 : index
    %c160_307 = arith.constant 160 : index
    %170 = vector.load %arg11[%c8_306, %c160_307] : memref<108x320xbf16, #tpu.memory_space<vmem>>, vector<4x80xbf16>
    tpu.vector_store %arg11[%c8_306, %c160_307], %169 {strides = array<i32>} : memref<108x320xbf16, #tpu.memory_space<vmem>>, vector<4x80xbf16>,
    %c0_308 = arith.constant 0 : index
    %c0_309 = arith.constant 0 : index
    %c0_310 = arith.constant 0 : index
    %c10_311 = arith.constant 10 : index
    %171 = vector.load %arg4[%c0_308, %c0_309, %c0_310, %c10_311] : memref<1x1x4x110xbf16, #tpu.memory_space<vmem>>, vector<1x1x4x80xbf16>
    %172 = vector.shape_cast %171 : vector<1x1x4x80xbf16> to vector<4x80xbf16>
    %c12_312 = arith.constant 12 : index
    %c160_313 = arith.constant 160 : index
    %173 = vector.load %arg11[%c12_312, %c160_313] : memref<108x320xbf16, #tpu.memory_space<vmem>>, vector<4x80xbf16>
    tpu.vector_store %arg11[%c12_312, %c160_313], %172 {strides = array<i32>} : memref<108x320xbf16, #tpu.memory_space<vmem>>, vector<4x80xbf16>,
    %c0_314 = arith.constant 0 : index
    %c0_315 = arith.constant 0 : index
    %c0_316 = arith.constant 0 : index
    %c11_317 = arith.constant 11 : index
    %174 = vector.load %arg4[%c0_314, %c0_315, %c0_316, %c11_317] : memref<1x1x4x110xbf16, #tpu.memory_space<vmem>>, vector<1x1x4x80xbf16>
    %175 = vector.shape_cast %174 : vector<1x1x4x80xbf16> to vector<4x80xbf16>
    %c16_318 = arith.constant 16 : index
    %c160_319 = arith.constant 160 : index
    %176 = vector.load %arg11[%c16_318, %c160_319] : memref<108x320xbf16, #tpu.memory_space<vmem>>, vector<4x80xbf16>
    tpu.vector_store %arg11[%c16_318, %c160_319], %175 {strides = array<i32>} : memref<108x320xbf16, #tpu.memory_space<vmem>>, vector<4x80xbf16>,
    %c0_320 = arith.constant 0 : index
    %c0_321 = arith.constant 0 : index
    %c0_322 = arith.constant 0 : index
    %c12_323 = arith.constant 12 : index
    %177 = vector.load %arg4[%c0_320, %c0_321, %c0_322, %c12_323] : memref<1x1x4x110xbf16, #tpu.memory_space<vmem>>, vector<1x1x4x80xbf16>
    %178 = vector.shape_cast %177 : vector<1x1x4x80xbf16> to vector<4x80xbf16>
    %c20_324 = arith.constant 20 : index
    %c160_325 = arith.constant 160 : index
    %179 = vector.load %arg11[%c20_324, %c160_325] : memref<108x320xbf16, #tpu.memory_space<vmem>>, vector<4x80xbf16>
    tpu.vector_store %arg11[%c20_324, %c160_325], %178 {strides = array<i32>} : memref<108x320xbf16, #tpu.memory_space<vmem>>, vector<4x80xbf16>,
    %c0_326 = arith.constant 0 : index
    %c0_327 = arith.constant 0 : index
    %c0_328 = arith.constant 0 : index
    %c20_329 = arith.constant 20 : index
    %180 = vector.load %arg4[%c0_326, %c0_327, %c0_328, %c20_329] : memref<1x1x4x110xbf16, #tpu.memory_space<vmem>>, vector<1x1x4x80xbf16>
    %181 = vector.shape_cast %180 : vector<1x1x4x80xbf16> to vector<4x80xbf16>
    %c24_330 = arith.constant 24 : index
    %c160_331 = arith.constant 160 : index
    %182 = vector.load %arg11[%c24_330, %c160_331] : memref<108x320xbf16, #tpu.memory_space<vmem>>, vector<4x80xbf16>
    tpu.vector_store %arg11[%c24_330, %c160_331], %181 {strides = array<i32>} : memref<108x320xbf16, #tpu.memory_space<vmem>>, vector<4x80xbf16>,
    %c0_332 = arith.constant 0 : index
    %c0_333 = arith.constant 0 : index
    %c0_334 = arith.constant 0 : index
    %c21_335 = arith.constant 21 : index
    %183 = vector.load %arg4[%c0_332, %c0_333, %c0_334, %c21_335] : memref<1x1x4x110xbf16, #tpu.memory_space<vmem>>, vector<1x1x4x80xbf16>
    %184 = vector.shape_cast %183 : vector<1x1x4x80xbf16> to vector<4x80xbf16>
    %c28_336 = arith.constant 28 : index
    %c160_337 = arith.constant 160 : index
    %185 = vector.load %arg11[%c28_336, %c160_337] : memref<108x320xbf16, #tpu.memory_space<vmem>>, vector<4x80xbf16>
    tpu.vector_store %arg11[%c28_336, %c160_337], %184 {strides = array<i32>} : memref<108x320xbf16, #tpu.memory_space<vmem>>, vector<4x80xbf16>,
    %c0_338 = arith.constant 0 : index
    %c0_339 = arith.constant 0 : index
    %c0_340 = arith.constant 0 : index
    %c22_341 = arith.constant 22 : index
    %186 = vector.load %arg4[%c0_338, %c0_339, %c0_340, %c22_341] : memref<1x1x4x110xbf16, #tpu.memory_space<vmem>>, vector<1x1x4x80xbf16>
    %187 = vector.shape_cast %186 : vector<1x1x4x80xbf16> to vector<4x80xbf16>
    %c32_342 = arith.constant 32 : index
    %c160_343 = arith.constant 160 : index
    %188 = vector.load %arg11[%c32_342, %c160_343] : memref<108x320xbf16, #tpu.memory_space<vmem>>, vector<4x80xbf16>
    tpu.vector_store %arg11[%c32_342, %c160_343], %187 {strides = array<i32>} : memref<108x320xbf16, #tpu.memory_space<vmem>>, vector<4x80xbf16>,
    %c0_344 = arith.constant 0 : index
    %c0_345 = arith.constant 0 : index
    %c0_346 = arith.constant 0 : index
    %c0_347 = arith.constant 0 : index
    %189 = vector.load %arg5[%c0_344, %c0_345, %c0_346, %c0_347] : memref<1x1x4x110xbf16, #tpu.memory_space<vmem>>, vector<1x1x4x80xbf16>
    %190 = vector.shape_cast %189 : vector<1x1x4x80xbf16> to vector<4x80xbf16>
    %c36_348 = arith.constant 36 : index
    %c160_349 = arith.constant 160 : index
    %191 = vector.load %arg11[%c36_348, %c160_349] : memref<108x320xbf16, #tpu.memory_space<vmem>>, vector<4x80xbf16>
    tpu.vector_store %arg11[%c36_348, %c160_349], %190 {strides = array<i32>} : memref<108x320xbf16, #tpu.memory_space<vmem>>, vector<4x80xbf16>,
    %c0_350 = arith.constant 0 : index
    %c0_351 = arith.constant 0 : index
    %c0_352 = arith.constant 0 : index
    %c1_353 = arith.constant 1 : index
    %192 = vector.load %arg5[%c0_350, %c0_351, %c0_352, %c1_353] : memref<1x1x4x110xbf16, #tpu.memory_space<vmem>>, vector<1x1x4x80xbf16>
    %193 = vector.shape_cast %192 : vector<1x1x4x80xbf16> to vector<4x80xbf16>
    %c40_354 = arith.constant 40 : index
    %c160_355 = arith.constant 160 : index
    %194 = vector.load %arg11[%c40_354, %c160_355] : memref<108x320xbf16, #tpu.memory_space<vmem>>, vector<4x80xbf16>
    tpu.vector_store %arg11[%c40_354, %c160_355], %193 {strides = array<i32>} : memref<108x320xbf16, #tpu.memory_space<vmem>>, vector<4x80xbf16>,
    %c0_356 = arith.constant 0 : index
    %c0_357 = arith.constant 0 : index
    %c0_358 = arith.constant 0 : index
    %c2_359 = arith.constant 2 : index
    %195 = vector.load %arg5[%c0_356, %c0_357, %c0_358, %c2_359] : memref<1x1x4x110xbf16, #tpu.memory_space<vmem>>, vector<1x1x4x80xbf16>
    %196 = vector.shape_cast %195 : vector<1x1x4x80xbf16> to vector<4x80xbf16>
    %c44_360 = arith.constant 44 : index
    %c160_361 = arith.constant 160 : index
    %197 = vector.load %arg11[%c44_360, %c160_361] : memref<108x320xbf16, #tpu.memory_space<vmem>>, vector<4x80xbf16>
    tpu.vector_store %arg11[%c44_360, %c160_361], %196 {strides = array<i32>} : memref<108x320xbf16, #tpu.memory_space<vmem>>, vector<4x80xbf16>,
    %c0_362 = arith.constant 0 : index
    %c0_363 = arith.constant 0 : index
    %c0_364 = arith.constant 0 : index
    %c10_365 = arith.constant 10 : index
    %198 = vector.load %arg5[%c0_362, %c0_363, %c0_364, %c10_365] : memref<1x1x4x110xbf16, #tpu.memory_space<vmem>>, vector<1x1x4x80xbf16>
    %199 = vector.shape_cast %198 : vector<1x1x4x80xbf16> to vector<4x80xbf16>
    %c48_366 = arith.constant 48 : index
    %c160_367 = arith.constant 160 : index
    %200 = vector.load %arg11[%c48_366, %c160_367] : memref<108x320xbf16, #tpu.memory_space<vmem>>, vector<4x80xbf16>
    tpu.vector_store %arg11[%c48_366, %c160_367], %199 {strides = array<i32>} : memref<108x320xbf16, #tpu.memory_space<vmem>>, vector<4x80xbf16>,
    %c0_368 = arith.constant 0 : index
    %c0_369 = arith.constant 0 : index
    %c0_370 = arith.constant 0 : index
    %c11_371 = arith.constant 11 : index
    %201 = vector.load %arg5[%c0_368, %c0_369, %c0_370, %c11_371] : memref<1x1x4x110xbf16, #tpu.memory_space<vmem>>, vector<1x1x4x80xbf16>
    %202 = vector.shape_cast %201 : vector<1x1x4x80xbf16> to vector<4x80xbf16>
    %c52_372 = arith.constant 52 : index
    %c160_373 = arith.constant 160 : index
    %203 = vector.load %arg11[%c52_372, %c160_373] : memref<108x320xbf16, #tpu.memory_space<vmem>>, vector<4x80xbf16>
    tpu.vector_store %arg11[%c52_372, %c160_373], %202 {strides = array<i32>} : memref<108x320xbf16, #tpu.memory_space<vmem>>, vector<4x80xbf16>,
    %c0_374 = arith.constant 0 : index
    %c0_375 = arith.constant 0 : index
    %c0_376 = arith.constant 0 : index
    %c12_377 = arith.constant 12 : index
    %204 = vector.load %arg5[%c0_374, %c0_375, %c0_376, %c12_377] : memref<1x1x4x110xbf16, #tpu.memory_space<vmem>>, vector<1x1x4x80xbf16>
    %205 = vector.shape_cast %204 : vector<1x1x4x80xbf16> to vector<4x80xbf16>
    %c56_378 = arith.constant 56 : index
    %c160_379 = arith.constant 160 : index
    %206 = vector.load %arg11[%c56_378, %c160_379] : memref<108x320xbf16, #tpu.memory_space<vmem>>, vector<4x80xbf16>
    tpu.vector_store %arg11[%c56_378, %c160_379], %205 {strides = array<i32>} : memref<108x320xbf16, #tpu.memory_space<vmem>>, vector<4x80xbf16>,
    %c0_380 = arith.constant 0 : index
    %c0_381 = arith.constant 0 : index
    %c0_382 = arith.constant 0 : index
    %c20_383 = arith.constant 20 : index
    %207 = vector.load %arg5[%c0_380, %c0_381, %c0_382, %c20_383] : memref<1x1x4x110xbf16, #tpu.memory_space<vmem>>, vector<1x1x4x80xbf16>
    %208 = vector.shape_cast %207 : vector<1x1x4x80xbf16> to vector<4x80xbf16>
    %c60_384 = arith.constant 60 : index
    %c160_385 = arith.constant 160 : index
    %209 = vector.load %arg11[%c60_384, %c160_385] : memref<108x320xbf16, #tpu.memory_space<vmem>>, vector<4x80xbf16>
    tpu.vector_store %arg11[%c60_384, %c160_385], %208 {strides = array<i32>} : memref<108x320xbf16, #tpu.memory_space<vmem>>, vector<4x80xbf16>,
    %c0_386 = arith.constant 0 : index
    %c0_387 = arith.constant 0 : index
    %c0_388 = arith.constant 0 : index
    %c21_389 = arith.constant 21 : index
    %210 = vector.load %arg5[%c0_386, %c0_387, %c0_388, %c21_389] : memref<1x1x4x110xbf16, #tpu.memory_space<vmem>>, vector<1x1x4x80xbf16>
    %211 = vector.shape_cast %210 : vector<1x1x4x80xbf16> to vector<4x80xbf16>
    %c64_390 = arith.constant 64 : index
    %c160_391 = arith.constant 160 : index
    %212 = vector.load %arg11[%c64_390, %c160_391] : memref<108x320xbf16, #tpu.memory_space<vmem>>, vector<4x80xbf16>
    tpu.vector_store %arg11[%c64_390, %c160_391], %211 {strides = array<i32>} : memref<108x320xbf16, #tpu.memory_space<vmem>>, vector<4x80xbf16>,
    %c0_392 = arith.constant 0 : index
    %c0_393 = arith.constant 0 : index
    %c0_394 = arith.constant 0 : index
    %c22_395 = arith.constant 22 : index
    %213 = vector.load %arg5[%c0_392, %c0_393, %c0_394, %c22_395] : memref<1x1x4x110xbf16, #tpu.memory_space<vmem>>, vector<1x1x4x80xbf16>
    %214 = vector.shape_cast %213 : vector<1x1x4x80xbf16> to vector<4x80xbf16>
    %c68_396 = arith.constant 68 : index
    %c160_397 = arith.constant 160 : index
    %215 = vector.load %arg11[%c68_396, %c160_397] : memref<108x320xbf16, #tpu.memory_space<vmem>>, vector<4x80xbf16>
    tpu.vector_store %arg11[%c68_396, %c160_397], %214 {strides = array<i32>} : memref<108x320xbf16, #tpu.memory_space<vmem>>, vector<4x80xbf16>,
    %c0_398 = arith.constant 0 : index
    %c0_399 = arith.constant 0 : index
    %c0_400 = arith.constant 0 : index
    %c0_401 = arith.constant 0 : index
    %216 = vector.load %arg6[%c0_398, %c0_399, %c0_400, %c0_401] : memref<1x1x4x110xbf16, #tpu.memory_space<vmem>>, vector<1x1x4x80xbf16>
    %217 = vector.shape_cast %216 : vector<1x1x4x80xbf16> to vector<4x80xbf16>
    %c72_402 = arith.constant 72 : index
    %c160_403 = arith.constant 160 : index
    %218 = vector.load %arg11[%c72_402, %c160_403] : memref<108x320xbf16, #tpu.memory_space<vmem>>, vector<4x80xbf16>
    tpu.vector_store %arg11[%c72_402, %c160_403], %217 {strides = array<i32>} : memref<108x320xbf16, #tpu.memory_space<vmem>>, vector<4x80xbf16>,
    %c0_404 = arith.constant 0 : index
    %c0_405 = arith.constant 0 : index
    %c0_406 = arith.constant 0 : index
    %c1_407 = arith.constant 1 : index
    %219 = vector.load %arg6[%c0_404, %c0_405, %c0_406, %c1_407] : memref<1x1x4x110xbf16, #tpu.memory_space<vmem>>, vector<1x1x4x80xbf16>
    %220 = vector.shape_cast %219 : vector<1x1x4x80xbf16> to vector<4x80xbf16>
    %c76_408 = arith.constant 76 : index
    %c160_409 = arith.constant 160 : index
    %221 = vector.load %arg11[%c76_408, %c160_409] : memref<108x320xbf16, #tpu.memory_space<vmem>>, vector<4x80xbf16>
    tpu.vector_store %arg11[%c76_408, %c160_409], %220 {strides = array<i32>} : memref<108x320xbf16, #tpu.memory_space<vmem>>, vector<4x80xbf16>,
    %c0_410 = arith.constant 0 : index
    %c0_411 = arith.constant 0 : index
    %c0_412 = arith.constant 0 : index
    %c2_413 = arith.constant 2 : index
    %222 = vector.load %arg6[%c0_410, %c0_411, %c0_412, %c2_413] : memref<1x1x4x110xbf16, #tpu.memory_space<vmem>>, vector<1x1x4x80xbf16>
    %223 = vector.shape_cast %222 : vector<1x1x4x80xbf16> to vector<4x80xbf16>
    %c80_414 = arith.constant 80 : index
    %c160_415 = arith.constant 160 : index
    %224 = vector.load %arg11[%c80_414, %c160_415] : memref<108x320xbf16, #tpu.memory_space<vmem>>, vector<4x80xbf16>
    tpu.vector_store %arg11[%c80_414, %c160_415], %223 {strides = array<i32>} : memref<108x320xbf16, #tpu.memory_space<vmem>>, vector<4x80xbf16>,
    %c0_416 = arith.constant 0 : index
    %c0_417 = arith.constant 0 : index
    %c0_418 = arith.constant 0 : index
    %c10_419 = arith.constant 10 : index
    %225 = vector.load %arg6[%c0_416, %c0_417, %c0_418, %c10_419] : memref<1x1x4x110xbf16, #tpu.memory_space<vmem>>, vector<1x1x4x80xbf16>
    %226 = vector.shape_cast %225 : vector<1x1x4x80xbf16> to vector<4x80xbf16>
    %c84_420 = arith.constant 84 : index
    %c160_421 = arith.constant 160 : index
    %227 = vector.load %arg11[%c84_420, %c160_421] : memref<108x320xbf16, #tpu.memory_space<vmem>>, vector<4x80xbf16>
    tpu.vector_store %arg11[%c84_420, %c160_421], %226 {strides = array<i32>} : memref<108x320xbf16, #tpu.memory_space<vmem>>, vector<4x80xbf16>,
    %c0_422 = arith.constant 0 : index
    %c0_423 = arith.constant 0 : index
    %c0_424 = arith.constant 0 : index
    %c11_425 = arith.constant 11 : index
    %228 = vector.load %arg6[%c0_422, %c0_423, %c0_424, %c11_425] : memref<1x1x4x110xbf16, #tpu.memory_space<vmem>>, vector<1x1x4x80xbf16>
    %229 = vector.shape_cast %228 : vector<1x1x4x80xbf16> to vector<4x80xbf16>
    %c88_426 = arith.constant 88 : index
    %c160_427 = arith.constant 160 : index
    %230 = vector.load %arg11[%c88_426, %c160_427] : memref<108x320xbf16, #tpu.memory_space<vmem>>, vector<4x80xbf16>
    tpu.vector_store %arg11[%c88_426, %c160_427], %229 {strides = array<i32>} : memref<108x320xbf16, #tpu.memory_space<vmem>>, vector<4x80xbf16>,
    %c0_428 = arith.constant 0 : index
    %c0_429 = arith.constant 0 : index
    %c0_430 = arith.constant 0 : index
    %c12_431 = arith.constant 12 : index
    %231 = vector.load %arg6[%c0_428, %c0_429, %c0_430, %c12_431] : memref<1x1x4x110xbf16, #tpu.memory_space<vmem>>, vector<1x1x4x80xbf16>
    %232 = vector.shape_cast %231 : vector<1x1x4x80xbf16> to vector<4x80xbf16>
    %c92_432 = arith.constant 92 : index
    %c160_433 = arith.constant 160 : index
    %233 = vector.load %arg11[%c92_432, %c160_433] : memref<108x320xbf16, #tpu.memory_space<vmem>>, vector<4x80xbf16>
    tpu.vector_store %arg11[%c92_432, %c160_433], %232 {strides = array<i32>} : memref<108x320xbf16, #tpu.memory_space<vmem>>, vector<4x80xbf16>,
    %c0_434 = arith.constant 0 : index
    %c0_435 = arith.constant 0 : index
    %c0_436 = arith.constant 0 : index
    %c20_437 = arith.constant 20 : index
    %234 = vector.load %arg6[%c0_434, %c0_435, %c0_436, %c20_437] : memref<1x1x4x110xbf16, #tpu.memory_space<vmem>>, vector<1x1x4x80xbf16>
    %235 = vector.shape_cast %234 : vector<1x1x4x80xbf16> to vector<4x80xbf16>
    %c96_438 = arith.constant 96 : index
    %c160_439 = arith.constant 160 : index
    %236 = vector.load %arg11[%c96_438, %c160_439] : memref<108x320xbf16, #tpu.memory_space<vmem>>, vector<4x80xbf16>
    tpu.vector_store %arg11[%c96_438, %c160_439], %235 {strides = array<i32>} : memref<108x320xbf16, #tpu.memory_space<vmem>>, vector<4x80xbf16>,
    %c0_440 = arith.constant 0 : index
    %c0_441 = arith.constant 0 : index
    %c0_442 = arith.constant 0 : index
    %c21_443 = arith.constant 21 : index
    %237 = vector.load %arg6[%c0_440, %c0_441, %c0_442, %c21_443] : memref<1x1x4x110xbf16, #tpu.memory_space<vmem>>, vector<1x1x4x80xbf16>
    %238 = vector.shape_cast %237 : vector<1x1x4x80xbf16> to vector<4x80xbf16>
    %c100_444 = arith.constant 100 : index
    %c160_445 = arith.constant 160 : index
    %239 = vector.load %arg11[%c100_444, %c160_445] : memref<108x320xbf16, #tpu.memory_space<vmem>>, vector<4x80xbf16>
    tpu.vector_store %arg11[%c100_444, %c160_445], %238 {strides = array<i32>} : memref<108x320xbf16, #tpu.memory_space<vmem>>, vector<4x80xbf16>,
    %c0_446 = arith.constant 0 : index
    %c0_447 = arith.constant 0 : index
    %c0_448 = arith.constant 0 : index
    %c22_449 = arith.constant 22 : index
    %240 = vector.load %arg6[%c0_446, %c0_447, %c0_448, %c22_449] : memref<1x1x4x110xbf16, #tpu.memory_space<vmem>>, vector<1x1x4x80xbf16>
    %241 = vector.shape_cast %240 : vector<1x1x4x80xbf16> to vector<4x80xbf16>
    %c104_450 = arith.constant 104 : index
    %c160_451 = arith.constant 160 : index
    %242 = vector.load %arg11[%c104_450, %c160_451] : memref<108x320xbf16, #tpu.memory_space<vmem>>, vector<4x80xbf16>
    tpu.vector_store %arg11[%c104_450, %c160_451], %241 {strides = array<i32>} : memref<108x320xbf16, #tpu.memory_space<vmem>>, vector<4x80xbf16>,
    %c0_452 = arith.constant 0 : index
    %c0_453 = arith.constant 0 : index
    %c0_454 = arith.constant 0 : index
    %c0_455 = arith.constant 0 : index
    %243 = vector.load %arg5[%c0_452, %c0_453, %c0_454, %c0_455] : memref<1x1x4x110xbf16, #tpu.memory_space<vmem>>, vector<1x1x4x80xbf16>
    %244 = vector.shape_cast %243 : vector<1x1x4x80xbf16> to vector<4x80xbf16>
    %c0_456 = arith.constant 0 : index
    %c240 = arith.constant 240 : index
    %245 = vector.load %arg11[%c0_456, %c240] : memref<108x320xbf16, #tpu.memory_space<vmem>>, vector<4x80xbf16>
    tpu.vector_store %arg11[%c0_456, %c240], %244 {strides = array<i32>} : memref<108x320xbf16, #tpu.memory_space<vmem>>, vector<4x80xbf16>,
    %c0_457 = arith.constant 0 : index
    %c0_458 = arith.constant 0 : index
    %c0_459 = arith.constant 0 : index
    %c1_460 = arith.constant 1 : index
    %246 = vector.load %arg5[%c0_457, %c0_458, %c0_459, %c1_460] : memref<1x1x4x110xbf16, #tpu.memory_space<vmem>>, vector<1x1x4x80xbf16>
    %247 = vector.shape_cast %246 : vector<1x1x4x80xbf16> to vector<4x80xbf16>
    %c4_461 = arith.constant 4 : index
    %c240_462 = arith.constant 240 : index
    %248 = vector.load %arg11[%c4_461, %c240_462] : memref<108x320xbf16, #tpu.memory_space<vmem>>, vector<4x80xbf16>
    tpu.vector_store %arg11[%c4_461, %c240_462], %247 {strides = array<i32>} : memref<108x320xbf16, #tpu.memory_space<vmem>>, vector<4x80xbf16>,
    %c0_463 = arith.constant 0 : index
    %c0_464 = arith.constant 0 : index
    %c0_465 = arith.constant 0 : index
    %c2_466 = arith.constant 2 : index
    %249 = vector.load %arg5[%c0_463, %c0_464, %c0_465, %c2_466] : memref<1x1x4x110xbf16, #tpu.memory_space<vmem>>, vector<1x1x4x80xbf16>
    %250 = vector.shape_cast %249 : vector<1x1x4x80xbf16> to vector<4x80xbf16>
    %c8_467 = arith.constant 8 : index
    %c240_468 = arith.constant 240 : index
    %251 = vector.load %arg11[%c8_467, %c240_468] : memref<108x320xbf16, #tpu.memory_space<vmem>>, vector<4x80xbf16>
    tpu.vector_store %arg11[%c8_467, %c240_468], %250 {strides = array<i32>} : memref<108x320xbf16, #tpu.memory_space<vmem>>, vector<4x80xbf16>,
    %c0_469 = arith.constant 0 : index
    %c0_470 = arith.constant 0 : index
    %c0_471 = arith.constant 0 : index
    %c10_472 = arith.constant 10 : index
    %252 = vector.load %arg5[%c0_469, %c0_470, %c0_471, %c10_472] : memref<1x1x4x110xbf16, #tpu.memory_space<vmem>>, vector<1x1x4x80xbf16>
    %253 = vector.shape_cast %252 : vector<1x1x4x80xbf16> to vector<4x80xbf16>
    %c12_473 = arith.constant 12 : index
    %c240_474 = arith.constant 240 : index
    %254 = vector.load %arg11[%c12_473, %c240_474] : memref<108x320xbf16, #tpu.memory_space<vmem>>, vector<4x80xbf16>
    tpu.vector_store %arg11[%c12_473, %c240_474], %253 {strides = array<i32>} : memref<108x320xbf16, #tpu.memory_space<vmem>>, vector<4x80xbf16>,
    %c0_475 = arith.constant 0 : index
    %c0_476 = arith.constant 0 : index
    %c0_477 = arith.constant 0 : index
    %c11_478 = arith.constant 11 : index
    %255 = vector.load %arg5[%c0_475, %c0_476, %c0_477, %c11_478] : memref<1x1x4x110xbf16, #tpu.memory_space<vmem>>, vector<1x1x4x80xbf16>
    %256 = vector.shape_cast %255 : vector<1x1x4x80xbf16> to vector<4x80xbf16>
    %c16_479 = arith.constant 16 : index
    %c240_480 = arith.constant 240 : index
    %257 = vector.load %arg11[%c16_479, %c240_480] : memref<108x320xbf16, #tpu.memory_space<vmem>>, vector<4x80xbf16>
    tpu.vector_store %arg11[%c16_479, %c240_480], %256 {strides = array<i32>} : memref<108x320xbf16, #tpu.memory_space<vmem>>, vector<4x80xbf16>,
    %c0_481 = arith.constant 0 : index
    %c0_482 = arith.constant 0 : index
    %c0_483 = arith.constant 0 : index
    %c12_484 = arith.constant 12 : index
    %258 = vector.load %arg5[%c0_481, %c0_482, %c0_483, %c12_484] : memref<1x1x4x110xbf16, #tpu.memory_space<vmem>>, vector<1x1x4x80xbf16>
    %259 = vector.shape_cast %258 : vector<1x1x4x80xbf16> to vector<4x80xbf16>
    %c20_485 = arith.constant 20 : index
    %c240_486 = arith.constant 240 : index
    %260 = vector.load %arg11[%c20_485, %c240_486] : memref<108x320xbf16, #tpu.memory_space<vmem>>, vector<4x80xbf16>
    tpu.vector_store %arg11[%c20_485, %c240_486], %259 {strides = array<i32>} : memref<108x320xbf16, #tpu.memory_space<vmem>>, vector<4x80xbf16>,
    %c0_487 = arith.constant 0 : index
    %c0_488 = arith.constant 0 : index
    %c0_489 = arith.constant 0 : index
    %c20_490 = arith.constant 20 : index
    %261 = vector.load %arg5[%c0_487, %c0_488, %c0_489, %c20_490] : memref<1x1x4x110xbf16, #tpu.memory_space<vmem>>, vector<1x1x4x80xbf16>
    %262 = vector.shape_cast %261 : vector<1x1x4x80xbf16> to vector<4x80xbf16>
    %c24_491 = arith.constant 24 : index
    %c240_492 = arith.constant 240 : index
    %263 = vector.load %arg11[%c24_491, %c240_492] : memref<108x320xbf16, #tpu.memory_space<vmem>>, vector<4x80xbf16>
    tpu.vector_store %arg11[%c24_491, %c240_492], %262 {strides = array<i32>} : memref<108x320xbf16, #tpu.memory_space<vmem>>, vector<4x80xbf16>,
    %c0_493 = arith.constant 0 : index
    %c0_494 = arith.constant 0 : index
    %c0_495 = arith.constant 0 : index
    %c21_496 = arith.constant 21 : index
    %264 = vector.load %arg5[%c0_493, %c0_494, %c0_495, %c21_496] : memref<1x1x4x110xbf16, #tpu.memory_space<vmem>>, vector<1x1x4x80xbf16>
    %265 = vector.shape_cast %264 : vector<1x1x4x80xbf16> to vector<4x80xbf16>
    %c28_497 = arith.constant 28 : index
    %c240_498 = arith.constant 240 : index
    %266 = vector.load %arg11[%c28_497, %c240_498] : memref<108x320xbf16, #tpu.memory_space<vmem>>, vector<4x80xbf16>
    tpu.vector_store %arg11[%c28_497, %c240_498], %265 {strides = array<i32>} : memref<108x320xbf16, #tpu.memory_space<vmem>>, vector<4x80xbf16>,
    %c0_499 = arith.constant 0 : index
    %c0_500 = arith.constant 0 : index
    %c0_501 = arith.constant 0 : index
    %c22_502 = arith.constant 22 : index
    %267 = vector.load %arg5[%c0_499, %c0_500, %c0_501, %c22_502] : memref<1x1x4x110xbf16, #tpu.memory_space<vmem>>, vector<1x1x4x80xbf16>
    %268 = vector.shape_cast %267 : vector<1x1x4x80xbf16> to vector<4x80xbf16>
    %c32_503 = arith.constant 32 : index
    %c240_504 = arith.constant 240 : index
    %269 = vector.load %arg11[%c32_503, %c240_504] : memref<108x320xbf16, #tpu.memory_space<vmem>>, vector<4x80xbf16>
    tpu.vector_store %arg11[%c32_503, %c240_504], %268 {strides = array<i32>} : memref<108x320xbf16, #tpu.memory_space<vmem>>, vector<4x80xbf16>,
    %c0_505 = arith.constant 0 : index
    %c0_506 = arith.constant 0 : index
    %c0_507 = arith.constant 0 : index
    %c0_508 = arith.constant 0 : index
    %270 = vector.load %arg6[%c0_505, %c0_506, %c0_507, %c0_508] : memref<1x1x4x110xbf16, #tpu.memory_space<vmem>>, vector<1x1x4x80xbf16>
    %271 = vector.shape_cast %270 : vector<1x1x4x80xbf16> to vector<4x80xbf16>
    %c36_509 = arith.constant 36 : index
    %c240_510 = arith.constant 240 : index
    %272 = vector.load %arg11[%c36_509, %c240_510] : memref<108x320xbf16, #tpu.memory_space<vmem>>, vector<4x80xbf16>
    tpu.vector_store %arg11[%c36_509, %c240_510], %271 {strides = array<i32>} : memref<108x320xbf16, #tpu.memory_space<vmem>>, vector<4x80xbf16>,
    %c0_511 = arith.constant 0 : index
    %c0_512 = arith.constant 0 : index
    %c0_513 = arith.constant 0 : index
    %c1_514 = arith.constant 1 : index
    %273 = vector.load %arg6[%c0_511, %c0_512, %c0_513, %c1_514] : memref<1x1x4x110xbf16, #tpu.memory_space<vmem>>, vector<1x1x4x80xbf16>
    %274 = vector.shape_cast %273 : vector<1x1x4x80xbf16> to vector<4x80xbf16>
    %c40_515 = arith.constant 40 : index
    %c240_516 = arith.constant 240 : index
    %275 = vector.load %arg11[%c40_515, %c240_516] : memref<108x320xbf16, #tpu.memory_space<vmem>>, vector<4x80xbf16>
    tpu.vector_store %arg11[%c40_515, %c240_516], %274 {strides = array<i32>} : memref<108x320xbf16, #tpu.memory_space<vmem>>, vector<4x80xbf16>,
    %c0_517 = arith.constant 0 : index
    %c0_518 = arith.constant 0 : index
    %c0_519 = arith.constant 0 : index
    %c2_520 = arith.constant 2 : index
    %276 = vector.load %arg6[%c0_517, %c0_518, %c0_519, %c2_520] : memref<1x1x4x110xbf16, #tpu.memory_space<vmem>>, vector<1x1x4x80xbf16>
    %277 = vector.shape_cast %276 : vector<1x1x4x80xbf16> to vector<4x80xbf16>
    %c44_521 = arith.constant 44 : index
    %c240_522 = arith.constant 240 : index
    %278 = vector.load %arg11[%c44_521, %c240_522] : memref<108x320xbf16, #tpu.memory_space<vmem>>, vector<4x80xbf16>
    tpu.vector_store %arg11[%c44_521, %c240_522], %277 {strides = array<i32>} : memref<108x320xbf16, #tpu.memory_space<vmem>>, vector<4x80xbf16>,
    %c0_523 = arith.constant 0 : index
    %c0_524 = arith.constant 0 : index
    %c0_525 = arith.constant 0 : index
    %c10_526 = arith.constant 10 : index
    %279 = vector.load %arg6[%c0_523, %c0_524, %c0_525, %c10_526] : memref<1x1x4x110xbf16, #tpu.memory_space<vmem>>, vector<1x1x4x80xbf16>
    %280 = vector.shape_cast %279 : vector<1x1x4x80xbf16> to vector<4x80xbf16>
    %c48_527 = arith.constant 48 : index
    %c240_528 = arith.constant 240 : index
    %281 = vector.load %arg11[%c48_527, %c240_528] : memref<108x320xbf16, #tpu.memory_space<vmem>>, vector<4x80xbf16>
    tpu.vector_store %arg11[%c48_527, %c240_528], %280 {strides = array<i32>} : memref<108x320xbf16, #tpu.memory_space<vmem>>, vector<4x80xbf16>,
    %c0_529 = arith.constant 0 : index
    %c0_530 = arith.constant 0 : index
    %c0_531 = arith.constant 0 : index
    %c11_532 = arith.constant 11 : index
    %282 = vector.load %arg6[%c0_529, %c0_530, %c0_531, %c11_532] : memref<1x1x4x110xbf16, #tpu.memory_space<vmem>>, vector<1x1x4x80xbf16>
    %283 = vector.shape_cast %282 : vector<1x1x4x80xbf16> to vector<4x80xbf16>
    %c52_533 = arith.constant 52 : index
    %c240_534 = arith.constant 240 : index
    %284 = vector.load %arg11[%c52_533, %c240_534] : memref<108x320xbf16, #tpu.memory_space<vmem>>, vector<4x80xbf16>
    tpu.vector_store %arg11[%c52_533, %c240_534], %283 {strides = array<i32>} : memref<108x320xbf16, #tpu.memory_space<vmem>>, vector<4x80xbf16>,
    %c0_535 = arith.constant 0 : index
    %c0_536 = arith.constant 0 : index
    %c0_537 = arith.constant 0 : index
    %c12_538 = arith.constant 12 : index
    %285 = vector.load %arg6[%c0_535, %c0_536, %c0_537, %c12_538] : memref<1x1x4x110xbf16, #tpu.memory_space<vmem>>, vector<1x1x4x80xbf16>
    %286 = vector.shape_cast %285 : vector<1x1x4x80xbf16> to vector<4x80xbf16>
    %c56_539 = arith.constant 56 : index
    %c240_540 = arith.constant 240 : index
    %287 = vector.load %arg11[%c56_539, %c240_540] : memref<108x320xbf16, #tpu.memory_space<vmem>>, vector<4x80xbf16>
    tpu.vector_store %arg11[%c56_539, %c240_540], %286 {strides = array<i32>} : memref<108x320xbf16, #tpu.memory_space<vmem>>, vector<4x80xbf16>,
    %c0_541 = arith.constant 0 : index
    %c0_542 = arith.constant 0 : index
    %c0_543 = arith.constant 0 : index
    %c20_544 = arith.constant 20 : index
    %288 = vector.load %arg6[%c0_541, %c0_542, %c0_543, %c20_544] : memref<1x1x4x110xbf16, #tpu.memory_space<vmem>>, vector<1x1x4x80xbf16>
    %289 = vector.shape_cast %288 : vector<1x1x4x80xbf16> to vector<4x80xbf16>
    %c60_545 = arith.constant 60 : index
    %c240_546 = arith.constant 240 : index
    %290 = vector.load %arg11[%c60_545, %c240_546] : memref<108x320xbf16, #tpu.memory_space<vmem>>, vector<4x80xbf16>
    tpu.vector_store %arg11[%c60_545, %c240_546], %289 {strides = array<i32>} : memref<108x320xbf16, #tpu.memory_space<vmem>>, vector<4x80xbf16>,
    %c0_547 = arith.constant 0 : index
    %c0_548 = arith.constant 0 : index
    %c0_549 = arith.constant 0 : index
    %c21_550 = arith.constant 21 : index
    %291 = vector.load %arg6[%c0_547, %c0_548, %c0_549, %c21_550] : memref<1x1x4x110xbf16, #tpu.memory_space<vmem>>, vector<1x1x4x80xbf16>
    %292 = vector.shape_cast %291 : vector<1x1x4x80xbf16> to vector<4x80xbf16>
    %c64_551 = arith.constant 64 : index
    %c240_552 = arith.constant 240 : index
    %293 = vector.load %arg11[%c64_551, %c240_552] : memref<108x320xbf16, #tpu.memory_space<vmem>>, vector<4x80xbf16>
    tpu.vector_store %arg11[%c64_551, %c240_552], %292 {strides = array<i32>} : memref<108x320xbf16, #tpu.memory_space<vmem>>, vector<4x80xbf16>,
    %c0_553 = arith.constant 0 : index
    %c0_554 = arith.constant 0 : index
    %c0_555 = arith.constant 0 : index
    %c22_556 = arith.constant 22 : index
    %294 = vector.load %arg6[%c0_553, %c0_554, %c0_555, %c22_556] : memref<1x1x4x110xbf16, #tpu.memory_space<vmem>>, vector<1x1x4x80xbf16>
    %295 = vector.shape_cast %294 : vector<1x1x4x80xbf16> to vector<4x80xbf16>
    %c68_557 = arith.constant 68 : index
    %c240_558 = arith.constant 240 : index
    %296 = vector.load %arg11[%c68_557, %c240_558] : memref<108x320xbf16, #tpu.memory_space<vmem>>, vector<4x80xbf16>
    tpu.vector_store %arg11[%c68_557, %c240_558], %295 {strides = array<i32>} : memref<108x320xbf16, #tpu.memory_space<vmem>>, vector<4x80xbf16>,
    %c0_559 = arith.constant 0 : index
    %c0_560 = arith.constant 0 : index
    %c0_561 = arith.constant 0 : index
    %c0_562 = arith.constant 0 : index
    %297 = vector.load %arg7[%c0_559, %c0_560, %c0_561, %c0_562] : memref<1x1x4x110xbf16, #tpu.memory_space<vmem>>, vector<1x1x4x80xbf16>
    %298 = vector.shape_cast %297 : vector<1x1x4x80xbf16> to vector<4x80xbf16>
    %c72_563 = arith.constant 72 : index
    %c240_564 = arith.constant 240 : index
    %299 = vector.load %arg11[%c72_563, %c240_564] : memref<108x320xbf16, #tpu.memory_space<vmem>>, vector<4x80xbf16>
    tpu.vector_store %arg11[%c72_563, %c240_564], %298 {strides = array<i32>} : memref<108x320xbf16, #tpu.memory_space<vmem>>, vector<4x80xbf16>,
    %c0_565 = arith.constant 0 : index
    %c0_566 = arith.constant 0 : index
    %c0_567 = arith.constant 0 : index
    %c1_568 = arith.constant 1 : index
    %300 = vector.load %arg7[%c0_565, %c0_566, %c0_567, %c1_568] : memref<1x1x4x110xbf16, #tpu.memory_space<vmem>>, vector<1x1x4x80xbf16>
    %301 = vector.shape_cast %300 : vector<1x1x4x80xbf16> to vector<4x80xbf16>
    %c76_569 = arith.constant 76 : index
    %c240_570 = arith.constant 240 : index
    %302 = vector.load %arg11[%c76_569, %c240_570] : memref<108x320xbf16, #tpu.memory_space<vmem>>, vector<4x80xbf16>
    tpu.vector_store %arg11[%c76_569, %c240_570], %301 {strides = array<i32>} : memref<108x320xbf16, #tpu.memory_space<vmem>>, vector<4x80xbf16>,
    %c0_571 = arith.constant 0 : index
    %c0_572 = arith.constant 0 : index
    %c0_573 = arith.constant 0 : index
    %c2_574 = arith.constant 2 : index
    %303 = vector.load %arg7[%c0_571, %c0_572, %c0_573, %c2_574] : memref<1x1x4x110xbf16, #tpu.memory_space<vmem>>, vector<1x1x4x80xbf16>
    %304 = vector.shape_cast %303 : vector<1x1x4x80xbf16> to vector<4x80xbf16>
    %c80_575 = arith.constant 80 : index
    %c240_576 = arith.constant 240 : index
    %305 = vector.load %arg11[%c80_575, %c240_576] : memref<108x320xbf16, #tpu.memory_space<vmem>>, vector<4x80xbf16>
    tpu.vector_store %arg11[%c80_575, %c240_576], %304 {strides = array<i32>} : memref<108x320xbf16, #tpu.memory_space<vmem>>, vector<4x80xbf16>,
    %c0_577 = arith.constant 0 : index
    %c0_578 = arith.constant 0 : index
    %c0_579 = arith.constant 0 : index
    %c10_580 = arith.constant 10 : index
    %306 = vector.load %arg7[%c0_577, %c0_578, %c0_579, %c10_580] : memref<1x1x4x110xbf16, #tpu.memory_space<vmem>>, vector<1x1x4x80xbf16>
    %307 = vector.shape_cast %306 : vector<1x1x4x80xbf16> to vector<4x80xbf16>
    %c84_581 = arith.constant 84 : index
    %c240_582 = arith.constant 240 : index
    %308 = vector.load %arg11[%c84_581, %c240_582] : memref<108x320xbf16, #tpu.memory_space<vmem>>, vector<4x80xbf16>
    tpu.vector_store %arg11[%c84_581, %c240_582], %307 {strides = array<i32>} : memref<108x320xbf16, #tpu.memory_space<vmem>>, vector<4x80xbf16>,
    %c0_583 = arith.constant 0 : index
    %c0_584 = arith.constant 0 : index
    %c0_585 = arith.constant 0 : index
    %c11_586 = arith.constant 11 : index
    %309 = vector.load %arg7[%c0_583, %c0_584, %c0_585, %c11_586] : memref<1x1x4x110xbf16, #tpu.memory_space<vmem>>, vector<1x1x4x80xbf16>
    %310 = vector.shape_cast %309 : vector<1x1x4x80xbf16> to vector<4x80xbf16>
    %c88_587 = arith.constant 88 : index
    %c240_588 = arith.constant 240 : index
    %311 = vector.load %arg11[%c88_587, %c240_588] : memref<108x320xbf16, #tpu.memory_space<vmem>>, vector<4x80xbf16>
    tpu.vector_store %arg11[%c88_587, %c240_588], %310 {strides = array<i32>} : memref<108x320xbf16, #tpu.memory_space<vmem>>, vector<4x80xbf16>,
    %c0_589 = arith.constant 0 : index
    %c0_590 = arith.constant 0 : index
    %c0_591 = arith.constant 0 : index
    %c12_592 = arith.constant 12 : index
    %312 = vector.load %arg7[%c0_589, %c0_590, %c0_591, %c12_592] : memref<1x1x4x110xbf16, #tpu.memory_space<vmem>>, vector<1x1x4x80xbf16>
    %313 = vector.shape_cast %312 : vector<1x1x4x80xbf16> to vector<4x80xbf16>
    %c92_593 = arith.constant 92 : index
    %c240_594 = arith.constant 240 : index
    %314 = vector.load %arg11[%c92_593, %c240_594] : memref<108x320xbf16, #tpu.memory_space<vmem>>, vector<4x80xbf16>
    tpu.vector_store %arg11[%c92_593, %c240_594], %313 {strides = array<i32>} : memref<108x320xbf16, #tpu.memory_space<vmem>>, vector<4x80xbf16>,
    %c0_595 = arith.constant 0 : index
    %c0_596 = arith.constant 0 : index
    %c0_597 = arith.constant 0 : index
    %c20_598 = arith.constant 20 : index
    %315 = vector.load %arg7[%c0_595, %c0_596, %c0_597, %c20_598] : memref<1x1x4x110xbf16, #tpu.memory_space<vmem>>, vector<1x1x4x80xbf16>
    %316 = vector.shape_cast %315 : vector<1x1x4x80xbf16> to vector<4x80xbf16>
    %c96_599 = arith.constant 96 : index
    %c240_600 = arith.constant 240 : index
    %317 = vector.load %arg11[%c96_599, %c240_600] : memref<108x320xbf16, #tpu.memory_space<vmem>>, vector<4x80xbf16>
    tpu.vector_store %arg11[%c96_599, %c240_600], %316 {strides = array<i32>} : memref<108x320xbf16, #tpu.memory_space<vmem>>, vector<4x80xbf16>,
    %c0_601 = arith.constant 0 : index
    %c0_602 = arith.constant 0 : index
    %c0_603 = arith.constant 0 : index
    %c21_604 = arith.constant 21 : index
    %318 = vector.load %arg7[%c0_601, %c0_602, %c0_603, %c21_604] : memref<1x1x4x110xbf16, #tpu.memory_space<vmem>>, vector<1x1x4x80xbf16>
    %319 = vector.shape_cast %318 : vector<1x1x4x80xbf16> to vector<4x80xbf16>
    %c100_605 = arith.constant 100 : index
    %c240_606 = arith.constant 240 : index
    %320 = vector.load %arg11[%c100_605, %c240_606] : memref<108x320xbf16, #tpu.memory_space<vmem>>, vector<4x80xbf16>
    tpu.vector_store %arg11[%c100_605, %c240_606], %319 {strides = array<i32>} : memref<108x320xbf16, #tpu.memory_space<vmem>>, vector<4x80xbf16>,
    %c0_607 = arith.constant 0 : index
    %c0_608 = arith.constant 0 : index
    %c0_609 = arith.constant 0 : index
    %c22_610 = arith.constant 22 : index
    %321 = vector.load %arg7[%c0_607, %c0_608, %c0_609, %c22_610] : memref<1x1x4x110xbf16, #tpu.memory_space<vmem>>, vector<1x1x4x80xbf16>
    %322 = vector.shape_cast %321 : vector<1x1x4x80xbf16> to vector<4x80xbf16>
    %c104_611 = arith.constant 104 : index
    %c240_612 = arith.constant 240 : index
    %323 = vector.load %arg11[%c104_611, %c240_612] : memref<108x320xbf16, #tpu.memory_space<vmem>>, vector<4x80xbf16>
    tpu.vector_store %arg11[%c104_611, %c240_612], %322 {strides = array<i32>} : memref<108x320xbf16, #tpu.memory_space<vmem>>, vector<4x80xbf16>,
    %c0_613 = arith.constant 0 : index
    %c0_614 = arith.constant 0 : index
    %324 = vector.load %arg8[%c0_613, %c0_614] : memref<8x108xbf16, #tpu.memory_space<vmem>>, vector<8x108xbf16>
    %c0_615 = arith.constant 0 : index
    %c0_616 = arith.constant 0 : index
    %325 = vector.load %arg11[%c0_615, %c0_616] : memref<108x320xbf16, #tpu.memory_space<vmem>>, vector<108x320xbf16>
    %cst = arith.constant dense<0.000000e+00> : vector<8x320xf32>
    %326 = tpu.matmul %324, %325, %cst {dimension_numbers = #tpu.dot_dimension_numbers<[1], [0], [0], [1], [0, 0, 1, 1], [], []>} : vector<8x108xbf16>, vector<108x320xbf16>, vector<8x320xf32> -> vector<8x320xf32>
    %c0_617 = arith.constant 0 : index
    %c0_618 = arith.constant 0 : index
    %327 = vector.load %arg9[%c0_617, %c0_618] : memref<8x1xf32, #tpu.memory_space<vmem>>, vector<8x1xf32>
    %328 = vector.broadcast %327 : vector<8x1xf32> to vector<8x320xf32>
    %329 = arith.addf %326, %328 : vector<8x320xf32>
    %330 = arith.truncf %329 : vector<8x320xf32> to vector<8x320xbf16>
    %c0_619 = arith.constant 0 : index
    %c0_620 = arith.constant 0 : index
    %c0_621 = arith.constant 0 : index
    %c0_622 = arith.constant 0 : index
    %331 = vector.load %arg10[%c0_619, %c0_620, %c0_621, %c0_622] : memref<1x1x8x320xbf16, #tpu.memory_space<vmem>>, vector<1x1x8x320xbf16>
    %332 = vector.shape_cast %331 : vector<1x1x8x320xbf16> to vector<8x320xbf16>
    %333 = vector.shape_cast %330 : vector<8x320xbf16> to vector<1x1x8x320xbf16>
    tpu.vector_store %arg10[%c0_619, %c0_620, %c0_621, %c0_622], %333 {strides = array<i32>} : memref<1x1x8x320xbf16, #tpu.memory_space<vmem>>, vector<1x1x8x320xbf16>,
    return
  }
  func.func @transform_0(%arg0: i32, %arg1: i32) -> (i32, i32, i32, i32) {
    %c4_i32 = arith.constant 4 : i32
    %0 = arith.muli %arg1, %c4_i32 : i32
    %c0_i32 = arith.constant 0 : i32
    %1 = arith.addi %0, %c0_i32 : i32
    %c2_i32 = arith.constant 2 : i32
    %2 = arith.subi %1, %c2_i32 : i32
    %c3_i32 = arith.constant 3 : i32
    %3 = arith.minsi %2, %c3_i32 : i32
    %c0_i32_0 = arith.constant 0 : i32
    %4 = arith.maxsi %3, %c0_i32_0 : i32
    %c0_i32_1 = arith.constant 0 : i32
    %c0_i32_2 = arith.constant 0 : i32
    %c0_i32_3 = arith.constant 0 : i32
    return %arg0, %4, %c0_i32_1, %c0_i32_2 : i32, i32, i32, i32
  }
  func.func @transform_1(%arg0: i32, %arg1: i32) -> (i32, i32, i32, i32) {
    %c4_i32 = arith.constant 4 : i32
    %0 = arith.muli %arg1, %c4_i32 : i32
    %c1_i32 = arith.constant 1 : i32
    %1 = arith.addi %0, %c1_i32 : i32
    %c2_i32 = arith.constant 2 : i32
    %2 = arith.subi %1, %c2_i32 : i32
    %c3_i32 = arith.constant 3 : i32
    %3 = arith.minsi %2, %c3_i32 : i32
    %c0_i32 = arith.constant 0 : i32
    %4 = arith.maxsi %3, %c0_i32 : i32
    %c0_i32_0 = arith.constant 0 : i32
    %c0_i32_1 = arith.constant 0 : i32
    %c0_i32_2 = arith.constant 0 : i32
    return %arg0, %4, %c0_i32_0, %c0_i32_1 : i32, i32, i32, i32
  }
  func.func @transform_2(%arg0: i32, %arg1: i32) -> (i32, i32, i32, i32) {
    %c4_i32 = arith.constant 4 : i32
    %0 = arith.muli %arg1, %c4_i32 : i32
    %c2_i32 = arith.constant 2 : i32
    %1 = arith.addi %0, %c2_i32 : i32
    %c2_i32_0 = arith.constant 2 : i32
    %2 = arith.subi %1, %c2_i32_0 : i32
    %c3_i32 = arith.constant 3 : i32
    %3 = arith.minsi %2, %c3_i32 : i32
    %c0_i32 = arith.constant 0 : i32
    %4 = arith.maxsi %3, %c0_i32 : i32
    %c0_i32_1 = arith.constant 0 : i32
    %c0_i32_2 = arith.constant 0 : i32
    %c0_i32_3 = arith.constant 0 : i32
    return %arg0, %4, %c0_i32_1, %c0_i32_2 : i32, i32, i32, i32
  }
  func.func @transform_3(%arg0: i32, %arg1: i32) -> (i32, i32, i32, i32) {
    %c4_i32 = arith.constant 4 : i32
    %0 = arith.muli %arg1, %c4_i32 : i32
    %c3_i32 = arith.constant 3 : i32
    %1 = arith.addi %0, %c3_i32 : i32
    %c2_i32 = arith.constant 2 : i32
    %2 = arith.subi %1, %c2_i32 : i32
    %c3_i32_0 = arith.constant 3 : i32
    %3 = arith.minsi %2, %c3_i32_0 : i32
    %c0_i32 = arith.constant 0 : i32
    %4 = arith.maxsi %3, %c0_i32 : i32
    %c0_i32_1 = arith.constant 0 : i32
    %c0_i32_2 = arith.constant 0 : i32
    %c0_i32_3 = arith.constant 0 : i32
    return %arg0, %4, %c0_i32_1, %c0_i32_2 : i32, i32, i32, i32
  }
  func.func @transform_4(%arg0: i32, %arg1: i32) -> (i32, i32, i32, i32) {
    %c4_i32 = arith.constant 4 : i32
    %0 = arith.muli %arg1, %c4_i32 : i32
    %c4_i32_0 = arith.constant 4 : i32
    %1 = arith.addi %0, %c4_i32_0 : i32
    %c2_i32 = arith.constant 2 : i32
    %2 = arith.subi %1, %c2_i32 : i32
    %c3_i32 = arith.constant 3 : i32
    %3 = arith.minsi %2, %c3_i32 : i32
    %c0_i32 = arith.constant 0 : i32
    %4 = arith.maxsi %3, %c0_i32 : i32
    %c0_i32_1 = arith.constant 0 : i32
    %c0_i32_2 = arith.constant 0 : i32
    %c0_i32_3 = arith.constant 0 : i32
    return %arg0, %4, %c0_i32_1, %c0_i32_2 : i32, i32, i32, i32
  }
  func.func @transform_5(%arg0: i32, %arg1: i32) -> (i32, i32, i32, i32) {
    %c4_i32 = arith.constant 4 : i32
    %0 = arith.muli %arg1, %c4_i32 : i32
    %c5_i32 = arith.constant 5 : i32
    %1 = arith.addi %0, %c5_i32 : i32
    %c2_i32 = arith.constant 2 : i32
    %2 = arith.subi %1, %c2_i32 : i32
    %c3_i32 = arith.constant 3 : i32
    %3 = arith.minsi %2, %c3_i32 : i32
    %c0_i32 = arith.constant 0 : i32
    %4 = arith.maxsi %3, %c0_i32 : i32
    %c0_i32_0 = arith.constant 0 : i32
    %c0_i32_1 = arith.constant 0 : i32
    %c0_i32_2 = arith.constant 0 : i32
    return %arg0, %4, %c0_i32_0, %c0_i32_1 : i32, i32, i32, i32
  }
  func.func @transform_6(%arg0: i32, %arg1: i32) -> (i32, i32) {
    %c0_i32 = arith.constant 0 : i32
    %c0_i32_0 = arith.constant 0 : i32
    %c0_i32_1 = arith.constant 0 : i32
    return %c0_i32, %c0_i32_0 : i32, i32
  }
  func.func @transform_7(%arg0: i32, %arg1: i32) -> (i32, i32) {
    %c0_i32 = arith.constant 0 : i32
    %c0_i32_0 = arith.constant 0 : i32
    %c0_i32_1 = arith.constant 0 : i32
    return %c0_i32, %c0_i32_0 : i32, i32
  }
  func.func @transform_8(%arg0: i32, %arg1: i32) -> (i32, i32, i32, i32) {
    %c0_i32 = arith.constant 0 : i32
    %c0_i32_0 = arith.constant 0 : i32
    %c0_i32_1 = arith.constant 0 : i32
    return %arg0, %arg1, %c0_i32, %c0_i32_0 : i32, i32, i32, i32
  }
}

</mosaic_0001>

<bundles_post_ra>
// kernel: causal_conv3d.1
= control target key start
LH: loop header
LB: loop body
LE: loop exit
PB: predicated region body
PF: predicated region fallthrough
CT: control target
= control target key end

     0   :  { %s2577_s27 = smov 0   ;;  %s2579_s28 = smov 0   ;;  %s3170_s0 = inlined_call_operand.vmem [shape: bf16[2,4,4,110], index: 0, kind: input, shape index: {}, may-alias: {0,1,2,3,4,5}]   ;;  %s3171_s1 = inlined_call_operand.vmem [shape: bf16[2,4,4,110], index: 1, kind: input, shape index: {}, may-alias: {0,1,2,3,4,5}]   ;;  %s3172_s2 = inlined_call_operand.vmem [shape: bf16[2,4,4,110], index: 2, kind: input, shape index: {}, may-alias: {0,1,2,3,4,5}]   ;;  %s3173_s3 = inlined_call_operand.vmem [shape: bf16[2,4,4,110], index: 3, kind: input, shape index: {}, may-alias: {0,1,2,3,4,5}]   ;;  %s3174_s4 = inlined_call_operand.vmem [shape: bf16[2,4,4,110], index: 4, kind: input, shape index: {}, may-alias: {0,1,2,3,4,5}]   ;;  %s3175_s5 = inlined_call_operand.vmem [shape: bf16[2,4,4,110], index: 5, kind: input, shape index: {}, may-alias: {0,1,2,3,4,5}]   ;;  %s3176_s6 = inlined_call_operand.vmem [shape: bf16[8,108], index: 6, kind: input, shape index: {}]   ;;  %s3177_s7 = inlined_call_operand.vmem [shape: f32[8,1], index: 7, kind: input, shape index: {}]   ;;  %s3178_s8 = inlined_call_operand.vmem [shape: bf16[2,1,8,320], index: 8, kind: output, shape index: {}]  }
   0x1   :  { %s2581_s29 = smov 0  }
   0x2 LB: > { %s30_s30 = sadd.s32 1, %s2490_s28  ;;  %p2274_p0 = scmp.ge.s32.totalorder %s2494_s29, 1  ;;  %s2494_s29 = sphi %s2581_s29, %s18_s29   ;;  %s2490_s28 = sphi %s2579_s28, %s3198_s28   ;;  %s2486_s27 = sphi %s2577_s27, %s3197_s27  }
   0x3   : > { %p32_p1 = scmp.ge.s32.totalorder %s30_s30, 2  ;;  %p496_p2 = scmp.lt.s32.totalorder %s2494_s29, 3 }
   0x5   : > { %s3200_s30 = smov (%p32_p1, %s30_s30), 0  ;;  %p497_p3 = pnand %p2274_p0, %p496_p2 }
   0x6   : > { %p618_p4 = scmp.lt.s32.totalorder (!%p497_p3), %s2486_s27, 1  ;;  %s2496_s13 = smov (!%p497_p3), 127  }
   0x7   : > { %500 = sbr.rel (%p497_p3) target bundleno = 1165 (0x48d), region = 52  ;;  %s2497_s14 = smov (!%p497_p3), 126  }
   0x8   : > { %s2498_s15 = smov (!%p497_p3), 118   ;;  %s2499_s16 = smov (!%p497_p3), 117  }
   0x9   : > { %s2500_s17 = smov (!%p497_p3), 116   ;;  %s2501_s18 = smov (!%p497_p3), 108  }
   0xa   : > { %s2502_s19 = smov (!%p497_p3), 107   ;;  %s2503_s23 = smov (!%p497_p3), 106  }
   0xb   : > { %s2504_s10 = smov (!%p497_p3), 80   ;;  %s2505_s11 = smov (!%p497_p3), 79  }
   0xc   : > { %s3202_s27 = smov (!%p618_p4, %s2486_s27), 1  ;;  %vm752_vm0 = vcmask 650242   ;;  %vm741_vm1 = vcmask 648192   ;;  %vm992_vm2 = vcmask 1042048   ;;  %vm993_vm3 = vcmask 259076   ;;  %s3182_s24 = smov 32  }
   0xd   : > { %s2598_s9 = sshll.u32 %s3202_s27, 3  ;;  %vm989_vm4 = vcmask 654336   ;;  %vm2757_vm5 = vmor %vm993_vm3, %vm992_vm2  ;;  %vm1008_vm6 = vcmask 1044098   ;;  %vm1009_vm7 = vcmask 261126   ;;  %vm1033_vm8 = vcmask 572416   ;;  %s3179_s25 = smov 31  }
   0xe   : > { %s2604_s12 = scalar_lea.vmem %s3170_s0, %s2598_s9  ;;  %s2625_s22 = scalar_lea.vmem %s3171_s1, %s2598_s9  ;;  %vm2769_vm9 = vmor %vm1009_vm7, %vm1008_vm6  ;;  %vm1005_vm10 = vcmask 646144   ;;  %vm1070_vm11 = vcmask 490496   ;;  %vm1045_vm12 = vcmask 564224   ;;  %vm1020_vm13 = vcmask 637952  }
   0xf   : > { %v743_v0 = vld [vmem:[%s2604_s12] sm:$0x3]  ;;  %s2650_s26 = scalar_lea.vmem %s3172_s2, %s2598_s9  ;;  %s2381_s20 = sadd.s32 2, %s2598_s9  ;;  %vm1083_vm14 = vcmask 482304   ;;  %vm1058_vm15 = vcmask 556032   ;;  %vm1325_vm2 = vcmask 912642  }
  0x10   : > { %746 = vst [vmem:[#allocation1 + $0x1] ss:$2 sm:$0xff] %v743_v0  ;;  %v754_v1 = vld [vmem:[%s2604_s12] sm:$0x3]  ;;  %s2523_s21 = smov 100   ;;  %vm1314_vm3 = vcmask 910592  }
  0x11   : > { %v763_v3 = vld [vmem:[%s2604_s12] sm:$0x3]  ;;  %vm1588_vm6 = vcmask 908288  }
  0x12   : > { %v773_v5 = vld [vmem:[%s2604_s12] sm:$0x3] }
  0x13   : > { %v782_v7 = vld [vmem:[%s2604_s12] sm:$0x3] }
  0x14   : > { %v792_v9 = vld [vmem:[%s2604_s12] sm:$0x3] }
  0x15   : > { %v801_v11 = vld [vmem:[%s2604_s12] sm:$0x3] }
  0x16   : > { %v811_v13 = vld [vmem:[%s2604_s12] sm:$0x3] }
  0x17   : > { %v747_v2 = vld.sshfl [vmem:[#allocation1] sm:$0xff pattern:$0x75643120] }
  0x18   : > { %749 = vrot.lane.b32.xlu0 %v747_v2, %s2496_s13  ;;  %756 = vst [vmem:[#allocation1] ss:$2 sm:$0xff] %v754_v1  ;;  %v820_v15 = vld [vmem:[%s2625_s22] sm:$0x3] }
  0x19   : > { %v827_v17 = vld [vmem:[%s2625_s22] sm:$0x3] }
  0x1a   : > { %v836_v19 = vld [vmem:[%s2625_s22] sm:$0x3] }
  0x1b   : > { %v846_v21 = vld [vmem:[%s2625_s22] sm:$0x3] }
  0x1c   : > { %v855_v23 = vld [vmem:[%s2625_s22] sm:$0x3] }
  0x1d   : > { %v865_v25 = vld [vmem:[%s2625_s22] sm:$0x3] }
  0x1e   : > { %v874_v27 = vld [vmem:[%s2625_s22] sm:$0x3] }
  0x1f   : > { %v757_v4 = vld.sshfl [vmem:[#allocation1] sm:$0xff pattern:$0x75643120] }
  0x20   : > { %759 = vrot.lane.b32.xlu0 %v757_v4, %s2497_s14  ;;  %766 = vst [vmem:[#allocation1 + $0x1] ss:$2 sm:$0xff] %v763_v3  ;;  %v884_v29 = vld [vmem:[%s2625_s22] sm:$0x3] }
  0x21   : > { %v893_v31 = vld [vmem:[%s2625_s22] sm:$0x3] }
  0x22   : > { %v905_v33 = vld [vmem:[%s2650_s26] sm:$0x3] }
  0x23   : > { %v915_v35 = vld [vmem:[%s2650_s26] sm:$0x3] }
  0x24   : > { %v924_v37 = vld [vmem:[%s2650_s26] sm:$0x3] }
  0x25   : > { %v934_v39 = vld [vmem:[%s2650_s26] sm:$0x3] }
  0x26   : > { %v943_v41 = vld [vmem:[%s2650_s26] sm:$0x3] }
  0x27   : > { %v767_v6 = vld.sshfl [vmem:[#allocation1] sm:$0xff pattern:$0x75643120] }
  0x28   : > { %769 = vrot.lane.b32.xlu1 %v767_v6, %s2498_s15  ;;  %775 = vst [vmem:[#allocation1] ss:$2 sm:$0xff] %v773_v5  ;;  %v953_v43 = vld [vmem:[%s2650_s26] sm:$0x3] }
  0x29   : > { %v962_v45 = vld [vmem:[%s2650_s26] sm:$0x3] }
  0x2a   : > { %v972_v47 = vld [vmem:[%s2650_s26] sm:$0x3] }
  0x2b   : > { %v981_v49 = vld [vmem:[%s2625_s22] sm:$0x3] }
  0x2c   : > { %v996_v51 = vld [vmem:[%s2625_s22] sm:$0x3] }
  0x2d   : > { %v1012_v53 = vld [vmem:[%s2625_s22] sm:$0x3] }
  0x2e   : > { %v1024_v55 = vld [vmem:[%s2625_s22] sm:$0x3] }
  0x2f   : > { %v776_v8 = vld.sshfl [vmem:[#allocation1] sm:$0xff pattern:$0x75643120] }
  0x30   : > { %785 = vst [vmem:[#allocation1 + $0x1] ss:$2 sm:$0xff] %v782_v7  ;;  %778 = vrot.lane.b32.xlu1 %v776_v8, %s2499_s16  ;;  %v1037_v57 = vld [vmem:[%s2625_s22] sm:$0x3] }
  0x31   : > { %v1049_v59 = vld [vmem:[%s2625_s22] sm:$0x3] }
  0x32   : > { %v1062_v61 = vld [vmem:[%s2625_s22] sm:$0x3] }
  0x33   : > { %v1074_v63 = vld [vmem:[%s2625_s22] sm:$0x3] }
  0x34   : > { %v1087_v1 = vld [vmem:[%s2625_s22] sm:$0x3]  ;;  %s2524_s22 = smov 92  }
  0x35   : > { %v1099_v3 = vld [vmem:[%s2650_s26] sm:$0x3] }
  0x36   : > { %v1111_v5 = vld [vmem:[%s2650_s26] sm:$0x3] }
  0x37   : > { %v786_v10 = vld.sshfl [vmem:[#allocation1] sm:$0xff pattern:$0x75643120] }
  0x38   : > { %794 = vst [vmem:[#allocation1] ss:$2 sm:$0xff] %v792_v9  ;;  %788 = vrot.lane.b32.xlu2 %v786_v10, %s2500_s17  ;;  %v1122_v7 = vld [vmem:[%s2650_s26] sm:$0x3] }
  0x39   : > { %v1134_v9 = vld [vmem:[%s2650_s26] sm:$0x3] }
  0x3f   : > { %v795_v12 = vld.sshfl [vmem:[#allocation1] sm:$0xff pattern:$0x75643120] }
  0x40   : > { %804 = vst [vmem:[#allocation1 + $0x1] ss:$2 sm:$0xff] %v801_v11  ;;  %797 = vrot.lane.b32.xlu2 %v795_v12, %s2501_s18  ;;  %v1145_v12 = vld [vmem:[%s2650_s26] sm:$0x3] }
  0x47   : > { %v805_v14 = vld.sshfl [vmem:[#allocation1] sm:$0xff pattern:$0x75643120] }
  0x48   : > { %807 = vrot.lane.b32.xlu0 %v805_v14, %s2502_s19  ;;  %813 = vst [vmem:[#allocation1] ss:$2 sm:$0xff] %v811_v13  ;;  %v1157_v14 = vld [vmem:[%s2650_s26] sm:$0x3] }
  0x4f   : > { %v814_v16 = vld.sshfl [vmem:[#allocation1] sm:$0xff pattern:$0x75643120] }
  0x50   : > { %823 = vst [vmem:[#allocation1 + $0x1] ss:$2 sm:$0xff] %v820_v15  ;;  %816 = vrot.lane.b32.xlu1 %v814_v16, %s2503_s23 }
  0x57   : > { %v2630_v18 = vld.sshfl [vmem:[#allocation1] sm:$0xff pattern:$0x75643120] }
  0x58   : > { %829 = vst [vmem:[#allocation1] ss:$2 sm:$0xff] %v827_v17  ;;  %v1168_v17 = vld [vmem:[%s2650_s26] sm:$0x3] }
  0x59   : > { %826 = vst.msk [vmem:[#allocation2 + $0x30] sm:$0xc] %vm752_vm0, %v2630_v18  ;;  %v1180_v18 = vld [vmem:[%s2650_s26] sm:$0x3] }
  0x5f   : > { %v830_v20 = vld.sshfl [vmem:[#allocation1] sm:$0xff pattern:$0x75643120] }
  0x60   : > { %839 = vst [vmem:[#allocation1 + $0x1] ss:$2 sm:$0xff] %v836_v19  ;;  %832 = vrot.lane.b32.xlu2 %v830_v20, %s2496_s13 }
  0x67   : > { %v840_v22 = vld.sshfl [vmem:[#allocation1] sm:$0xff pattern:$0x75643120] }
  0x68   : > { %842 = vrot.lane.b32.xlu0 %v840_v22, %s2497_s14  ;;  %848 = vst [vmem:[#allocation1] ss:$2 sm:$0xff] %v846_v21  ;;  %v1191_v21 = vld [vmem:[%s2650_s26] sm:$0x3] }
  0x6f   : > { %v849_v24 = vld.sshfl [vmem:[#allocation1] sm:$0xff pattern:$0x75643120] }
  0x70   : > { %858 = vst [vmem:[#allocation1 + $0x1] ss:$2 sm:$0xff] %v855_v23  ;;  %851 = vrot.lane.b32.xlu1 %v849_v24, %s2498_s15 }
  0x77   : > { %v859_v26 = vld.sshfl [vmem:[#allocation1] sm:$0xff pattern:$0x75643120] }
  0x78   : > { %867 = vst [vmem:[#allocation1] ss:$2 sm:$0xff] %v865_v25  ;;  %861 = vrot.lane.b32.xlu2 %v859_v26, %s2499_s16 }
  0x7f   : > { %v868_v28 = vld.sshfl [vmem:[#allocation1] sm:$0xff pattern:$0x75643120] }
  0x80   : > { %870 = vrot.lane.b32.xlu0 %v868_v28, %s2500_s17  ;;  %877 = vst [vmem:[#allocation1 + $0x1] ss:$2 sm:$0xff] %v874_v27 }
  0x87   : > { %v878_v30 = vld.sshfl [vmem:[#allocation1] sm:$0xff pattern:$0x75643120] }
  0x88   : > { %886 = vst [vmem:[#allocation1] ss:$2 sm:$0xff] %v884_v29  ;;  %880 = vrot.lane.b32.xlu1 %v878_v30, %s2501_s18 }
  0x8a   : > { %v750_v11 = vpop.permute.xlu0 %749 }
  0x8b   : > { %753 = vst.msk [vmem:[#allocation2] sm:$0xc] %vm752_vm0, %v750_v11 }
  0x8f   : > { %v887_v32 = vld.sshfl [vmem:[#allocation1] sm:$0xff pattern:$0x75643120] }
  0x90   : > { %896 = vst [vmem:[#allocation1 + $0x1] ss:$2 sm:$0xff] %v893_v31  ;;  %889 = vrot.lane.b32.xlu2 %v887_v32, %s2502_s19 }
  0x92   : > { %v760_v16 = vpop.permute.xlu0 %759 }
  0x93   : > { %762 = vst.msk [vmem:[#allocation2 + $0xc] sm:$0x3] %vm741_vm1, %v760_v16 }
  0x97   : > { %v897_v34 = vld.sshfl [vmem:[#allocation1] sm:$0xff pattern:$0x75643120] }
  0x98   : > { %899 = vrot.lane.b32.xlu0 %v897_v34, %s2503_s23  ;;  %908 = vst [vmem:[#allocation1 + $0x1] ss:$2 sm:$0xff] %v905_v33 }
  0x9a   : > { %v770_v23 = vpop.permute.xlu1 %769 }
  0x9b   : > { %772 = vst.msk [vmem:[#allocation2 + $0xc] sm:$0xc] %vm752_vm0, %v770_v23  ;;  %v1346_v23 = vld [vmem:[%s2650_s26] sm:$0x3] }
  0x9f   : > { %v909_v36 = vld.sshfl [vmem:[#allocation1] sm:$0xff pattern:$0x75643120] }
  0xa0   : > { %917 = vst [vmem:[#allocation1] ss:$2 sm:$0xff] %v915_v35  ;;  %911 = vrot.lane.b32.xlu1 %v909_v36, %s2496_s13  ;;  %s2506_s13 = smov 78  }
  0xa2   : > { %v779_v31 = vpop.permute.xlu1 %778 }
  0xa3   : > { %781 = vst.msk [vmem:[#allocation2 + $0x18] sm:$0x3] %vm741_vm1, %v779_v31 }
  0xa7   : > { %v918_v38 = vld.sshfl [vmem:[#allocation1] sm:$0xff pattern:$0x75643120] }
  0xa8   : > { %927 = vst [vmem:[#allocation1 + $0x1] ss:$2 sm:$0xff] %v924_v37  ;;  %920 = vrot.lane.b32.xlu2 %v918_v38, %s2497_s14  ;;  %s2507_s14 = smov 70  }
  0xaf   : > { %v928_v40 = vld.sshfl [vmem:[#allocation1] sm:$0xff pattern:$0x75643120] }
  0xb0   : > { %930 = vrot.lane.b32.xlu0 %v928_v40, %s2498_s15  ;;  %936 = vst [vmem:[#allocation1] ss:$2 sm:$0xff] %v934_v39  ;;  %s2508_s15 = smov 69  }
  0xb7   : > { %v937_v42 = vld.sshfl [vmem:[#allocation1] sm:$0xff pattern:$0x75643120] }
  0xb8   : > { %946 = vst [vmem:[#allocation1 + $0x1] ss:$2 sm:$0xff] %v943_v41  ;;  %939 = vrot.lane.b32.xlu1 %v937_v42, %s2499_s16  ;;  %s2509_s16 = smov 68   ;;  %v789_v41 = vpop.permute.xlu2 %788 }
  0xb9   : > { %791 = vst.msk [vmem:[#allocation2 + $0x18] sm:$0xc] %vm752_vm0, %v789_v41  ;;  %v1365_v41 = vld [vmem:[%s2650_s26] sm:$0x3] }
  0xba   : > { %v808_v24 = vpop.permute.xlu0 %807 }
  0xbb   : > { %810 = vst.msk [vmem:[#allocation2 + $0x24] sm:$0xc] %vm752_vm0, %v808_v24 }
  0xbf   : > { %v947_v44 = vld.sshfl [vmem:[#allocation1] sm:$0xff pattern:$0x75643120] }
  0xc0   : > { %955 = vst [vmem:[#allocation1] ss:$2 sm:$0xff] %v953_v43  ;;  %949 = vrot.lane.b32.xlu2 %v947_v44, %s2500_s17  ;;  %s2510_s17 = smov 60   ;;  %v740_v44 = vld [vmem:[%s2604_s12] sm:$0x3]  ;;  %s2513_s12 = smov 10  }
  0xc1   : > { %742 = vst.msk [vmem:[#allocation2] sm:$0x3] %vm741_vm1, %v740_v44 }
  0xc2   : > { %v817_v42 = vpop.permute.xlu1 %816 }
  0xc3   : > { %819 = vst.msk [vmem:[#allocation2 + $0x30] sm:$0x3] %vm741_vm1, %v817_v42 }
  0xc7   : > { %v956_v46 = vld.sshfl [vmem:[#allocation1] sm:$0xff pattern:$0x75643120] }
  0xc8   : > { %958 = vrot.lane.b32.xlu0 %v956_v46, %s2501_s18  ;;  %965 = vst [vmem:[#allocation1 + $0x1] ss:$2 sm:$0xff] %v962_v45  ;;  %s2511_s18 = smov 59  }
  0xcf   : > { %v966_v48 = vld.sshfl [vmem:[#allocation1] sm:$0xff pattern:$0x75643120] }
  0xd0   : > { %974 = vst [vmem:[#allocation1] ss:$2 sm:$0xff] %v972_v47  ;;  %968 = vrot.lane.b32.xlu1 %v966_v48, %s2502_s19  ;;  %s2512_s19 = smov 58   ;;  %v798_v47 = vpop.permute.xlu2 %797 }
  0xd1   : > { %800 = vst.msk [vmem:[#allocation2 + $0x24] sm:$0x3] %vm741_vm1, %v798_v47 }
  0xd7   : > { %v975_v50 = vld.sshfl [vmem:[#allocation1] sm:$0xff pattern:$0x75643120] }
  0xd8   : > { %983 = vst [vmem:[#allocation1] ss:$2 sm:$0xff] %v981_v49  ;;  %977 = vrot.lane.b32.xlu2 %v975_v50, %s2503_s23  ;;  %s2713_s23 = scalar_lea.vmem %s3173_s3, %s2381_s20  ;;  %s2522_s20 = smov 101  }
  0xd9   : > { %v1203_v25 = vld [vmem:[%s2713_s23] sm:$0x3] }
  0xda   : > { %v1214_v27 = vld [vmem:[%s2713_s23] sm:$0x3]  ;;  %v843_v32 = vpop.permute.xlu0 %842 }
  0xdb   : > { %v1226_v29 = vld [vmem:[%s2713_s23] sm:$0x3]  ;;  %845 = vst.msk [vmem:[#allocation2 + $0x3c] sm:$0xc] %vm752_vm0, %v843_v32 }
  0xdc   : > { %v1237_v33 = vld [vmem:[%s2713_s23] sm:$0x3] }
  0xdd   : > { %v1249_v35 = vld [vmem:[%s2713_s23] sm:$0x3] }
  0xde   : > { %v1260_v37 = vld [vmem:[%s2713_s23] sm:$0x3] }
  0xdf   : > { %v984_v52 = vld.sshfl [vmem:[#allocation1] sm:$0xff pattern:$0x75643120] }
  0xe0   : > { %986 = vrot.lane.b32.xlu0 %v984_v52, %s2504_s10  ;;  %999 = vst [vmem:[#allocation1 + $0x1] ss:$2 sm:$0xff] %v996_v51  ;;  %v1272_v39 = vld [vmem:[%s2713_s23] sm:$0x3]  ;;  %v833_v52 = vpop.permute.xlu2 %832 }
  0xe1   : > { %v1283_v45 = vld [vmem:[%s2713_s23] sm:$0x3]  ;;  %835 = vst.msk [vmem:[#allocation2 + $0x3c] sm:$0x3] %vm741_vm1, %v833_v52 }
  0xe2   : > { %v852_v48 = vpop.permute.xlu1 %851  ;;  %v1295_v50 = vld [vmem:[%s2713_s23] sm:$0x3] }
  0xe3   : > { %854 = vst.msk [vmem:[#allocation2 + $0x48] sm:$0x3] %vm741_vm1, %v852_v48  ;;  %v1355_v32 = vld [vmem:[%s2650_s26] sm:$0x3] }
  0xe4   : > { %v1374_v52 = vld [vmem:[%s2650_s26] sm:$0x3] }
  0xe7   : > { %v1000_v54 = vld.sshfl [vmem:[#allocation1] sm:$0xff pattern:$0x75643120] }
  0xe8   : > { %1014 = vst [vmem:[#allocation1] ss:$2 sm:$0xff] %v1012_v53  ;;  %1002 = vrot.lane.b32.xlu1 %v1000_v54, %s2505_s11 }
  0xef   : > { %v1015_v56 = vld.sshfl [vmem:[#allocation1] sm:$0xff pattern:$0x75643120] }
  0xf0   : > { %1027 = vst [vmem:[#allocation1 + $0x1] ss:$2 sm:$0xff] %v1024_v55  ;;  %1017 = vrot.lane.b32.xlu2 %v1015_v56, %s2506_s13  ;;  %v1306_v55 = vld [vmem:[%s2650_s26] sm:$0x3] }
  0xf2   : > { %v871_v43 = vpop.permute.xlu0 %870 }
  0xf3   : > { %873 = vst.msk [vmem:[#allocation2 + $0x54] sm:$0x3] %vm741_vm1, %v871_v43 }
  0xf7   : > { %v1028_v58 = vld.sshfl [vmem:[#allocation1] sm:$0xff pattern:$0x75643120] }
  0xf8   : > { %1030 = vrot.lane.b32.xlu0 %v1028_v58, %s2507_s14  ;;  %1039 = vst [vmem:[#allocation1] ss:$2 sm:$0xff] %v1037_v57  ;;  %v862_v57 = vpop.permute.xlu2 %861 }
  0xf9   : > { %864 = vst.msk [vmem:[#allocation2 + $0x48] sm:$0xc] %vm752_vm0, %v862_v57 }
  0xfa   : > { %v881_v53 = vpop.permute.xlu1 %880 }
  0xfb   : > { %883 = vst.msk [vmem:[#allocation2 + $0x54] sm:$0xc] %vm752_vm0, %v881_v53 }
  0xff   : > { %v1040_v60 = vld.sshfl [vmem:[#allocation1] sm:$0xff pattern:$0x75643120] }
 0x100   : > { %1052 = vst [vmem:[#allocation1 + $0x1] ss:$2 sm:$0xff] %v1049_v59  ;;  %1042 = vrot.lane.b32.xlu1 %v1040_v60, %s2508_s15 }
 0x107   : > { %v1053_v62 = vld.sshfl [vmem:[#allocation1] sm:$0xff pattern:$0x75643120] }
 0x108   : > { %1064 = vst [vmem:[#allocation1] ss:$2 sm:$0xff] %v1062_v61  ;;  %1055 = vrot.lane.b32.xlu2 %v1053_v62, %s2509_s16  ;;  %v890_v61 = vpop.permute.xlu2 %889 }
 0x109   : > { %892 = vst.msk [vmem:[#allocation2 + $0x60] sm:$0x3] %vm741_vm1, %v890_v61 }
 0x10a   : > { %v900_v49 = vpop.permute.xlu0 %899 }
 0x10b   : > { %902 = vst.msk [vmem:[#allocation2 + $0x60] sm:$0xc] %vm752_vm0, %v900_v49 }
 0x10f   : > { %v1065_v0 = vld.sshfl [vmem:[#allocation1] sm:$0xff pattern:$0x75643120] }
 0x110   : > { %1067 = vrot.lane.b32.xlu0 %v1065_v0, %s2510_s17  ;;  %1077 = vst [vmem:[#allocation1 + $0x1] ss:$2 sm:$0xff] %v1074_v63  ;;  %v1316_v63 = vld [vmem:[%s2650_s26] sm:$0x3] }
 0x112   : > { %v912_v58 = vpop.permute.xlu1 %911 }
 0x113   : > { %914 = vst.msk [vmem:[#allocation2 + $0x6c] sm:$0xc] %vm752_vm0, %v912_v58 }
 0x117   : > { %v1078_v2 = vld.sshfl [vmem:[#allocation1] sm:$0xff pattern:$0x75643120] }
 0x118   : > { %1089 = vst [vmem:[#allocation1] ss:$2 sm:$0xff] %v1087_v1  ;;  %1080 = vrot.lane.b32.xlu1 %v1078_v2, %s2511_s18 }
 0x11f   : > { %v1090_v4 = vld.sshfl [vmem:[#allocation1] sm:$0xff pattern:$0x75643120] }
 0x120   : > { %1102 = vst [vmem:[#allocation1 + $0x1] ss:$2 sm:$0xff] %v1099_v3  ;;  %1092 = vrot.lane.b32.xlu2 %v1090_v4, %s2512_s19  ;;  %v921_v4 = vpop.permute.xlu2 %920 }
 0x121   : > { %923 = vst.msk [vmem:[#allocation2 + $0x78] sm:$0x3] %vm741_vm1, %v921_v4 }
 0x122   : > { %v931_v54 = vpop.permute.xlu0 %930 }
 0x123   : > { %933 = vst.msk [vmem:[#allocation2 + $0x78] sm:$0xc] %vm752_vm0, %v931_v54  ;;  %v1384_v54 = vld [vmem:[%s2650_s26] sm:$0x3] }
 0x127   : > { %v1103_v6 = vld.sshfl [vmem:[#allocation1] sm:$0xff pattern:$0x75643120] }
 0x128   : > { %1105 = vrot.lane.b32.xlu0 %v1103_v6, %s2504_s10  ;;  %1113 = vst [vmem:[#allocation1] ss:$2 sm:$0xff] %v1111_v5  ;;  %v1327_v6 = vld [vmem:[%s2650_s26] sm:$0x3] }
 0x12a   : > { %v940_v62 = vpop.permute.xlu1 %939 }
 0x12b   : > { %942 = vst.msk [vmem:[#allocation2 + $0x84] sm:$0x3] %vm741_vm1, %v940_v62 }
 0x12f   : > { %v1114_v8 = vld.sshfl [vmem:[#allocation1] sm:$0xff pattern:$0x75643120] }
 0x130   : > { %1116 = vrot.lane.b32.xlu0 %v1114_v8, %s2505_s11  ;;  %1125 = vst [vmem:[#allocation1 + $0x1] ss:$2 sm:$0xff] %v1122_v7 }
 0x137   : > { %v1126_v10 = vld.sshfl [vmem:[#allocation1] sm:$0xff pattern:$0x75643120] }
 0x138   : > { %1128 = vrot.lane.b32.xlu1 %v1126_v10, %s2506_s13  ;;  %1136 = vst [vmem:[#allocation1] ss:$2 sm:$0xff] %v1134_v9 }
 0x13a   : > { %v959_v59 = vpop.permute.xlu0 %958 }
 0x13b   : > { %961 = vst.msk [vmem:[#allocation2 + $0x90] sm:$0x3] %vm741_vm1, %v959_v59 }
 0x13f   : > { %v1137_v13 = vld.sshfl [vmem:[#allocation1] sm:$0xff pattern:$0x75643120] }
 0x140   : > { %1139 = vrot.lane.b32.xlu0 %v1137_v13, %s2507_s14  ;;  %1148 = vst [vmem:[#allocation1 + $0x1] ss:$2 sm:$0xff] %v1145_v12  ;;  %v950_v12 = vpop.permute.xlu2 %949 }
 0x141   : > { %952 = vst.msk [vmem:[#allocation2 + $0x84] sm:$0xc] %vm752_vm0, %v950_v12 }
 0x142   : > { %v969_v5 = vpop.permute.xlu1 %968 }
 0x143   : > { %971 = vst.msk [vmem:[#allocation2 + $0x90] sm:$0xc] %vm752_vm0, %v969_v5  ;;  %vm1095_vm0 = vcmask 474112   ;;  %v1403_v5 = vld [vmem:[%s2713_s23] sm:$0x3] }
 0x147   : > { %v1149_v15 = vld.sshfl [vmem:[#allocation1] sm:$0xff pattern:$0x75643120] }
 0x148   : > { %1151 = vrot.lane.b32.xlu1 %v1149_v15, %s2508_s15  ;;  %1159 = vst [vmem:[#allocation1] ss:$2 sm:$0xff] %v1157_v14  ;;  %v1336_v14 = vld [vmem:[%s2650_s26] sm:$0x3] }
 0x14f   : > { %v1160_v19 = vld.sshfl [vmem:[#allocation1] sm:$0xff pattern:$0x75643120] }
 0x150   : > { %1171 = vst [vmem:[#allocation1 + $0x1] ss:$2 sm:$0xff] %v1168_v17  ;;  %1162 = vrot.lane.b32.xlu2 %v1160_v19, %s2509_s16 }
 0x152   : > { %v987_v0 = vpop.permute.xlu0 %986 }
 0x153   : > { %v988_v1 = vrot.slane %v987_v0, 4 }
 0x155   : > { %v990_v3 = vsel %vm989_vm4, %v988_v1, %v987_v0 }
 0x156   : > { %995 = vst.msk [vmem:[#allocation2] sm:$0x33] %vm2757_vm5, %v990_v3  ;;  %v1393_v3 = vld [vmem:[%s2713_s23] sm:$0x3] }
 0x157   : > { %v1172_v20 = vld.sshfl [vmem:[#allocation1] sm:$0xff pattern:$0x75643120] }
 0x158   : > { %1174 = vrot.lane.b32.xlu0 %v1172_v20, %s2510_s17  ;;  %1182 = vst [vmem:[#allocation1] ss:$2 sm:$0xff] %v1180_v18 }
 0x15a   : > { %v1003_v13 = vpop.permute.xlu1 %1002 }
 0x15b   : > { %v1004_v15 = vrot.slane %v1003_v13, 4 }
 0x15d   : > { %v1006_v18 = vsel %vm1005_vm10, %v1004_v15, %v1003_v13 }
 0x15e   : > { %1011 = vst.msk [vmem:[#allocation2] sm:$0xcc] %vm2769_vm9, %v1006_v18 }
 0x15f   : > { %v1183_v22 = vld.sshfl [vmem:[#allocation1] sm:$0xff pattern:$0x75643120] }
 0x160   : > { %1185 = vrot.lane.b32.xlu0 %v1183_v22, %s2511_s18  ;;  %1194 = vst [vmem:[#allocation1 + $0x1] ss:$2 sm:$0xff] %v1191_v21  ;;  %v978_v21 = vpop.permute.xlu2 %977 }
 0x161   : > { %980 = vst.msk [vmem:[#allocation2 + $0x9c] sm:$0x3] %vm741_vm1, %v978_v21  ;;  %v1422_v21 = vld [vmem:[%s2713_s23] sm:$0x3] }
 0x167   : > { %v1195_v26 = vld.sshfl [vmem:[#allocation1] sm:$0xff pattern:$0x75643120] }
 0x168   : > { %1197 = vrot.lane.b32.xlu1 %v1195_v26, %s2512_s19  ;;  %1205 = vst [vmem:[#allocation1] ss:$2 sm:$0xff] %v1203_v25 }
 0x16a   : > { %v1031_v7 = vpop.permute.xlu0 %1030 }
 0x16b   : > { %v1032_v8 = vrot.slane %v1031_v7, 4 }
 0x16d   : > { %v1034_v11 = vsel %vm1033_vm8, %v1032_v8, %v1031_v7  ;;  %v1412_v7 = vld [vmem:[%s2713_s23] sm:$0x3] }
 0x16e   : > { %1036 = vst.msk [vmem:[#allocation2 + $0xc] sm:$0xcc] %vm2769_vm9, %v1034_v11 }
 0x16f   : > { %v1206_v28 = vld.sshfl [vmem:[#allocation1] sm:$0xff pattern:$0x75643120] }
 0x170   : > { %1217 = vst [vmem:[#allocation1 + $0x1] ss:$2 sm:$0xff] %v1214_v27  ;;  %1208 = vrot.lane.b32.xlu2 %v1206_v28, %s2504_s10  ;;  %s3181_s10 = smov 30  }
 0x172   : > { %v1043_v22 = vpop.permute.xlu1 %1042 }
 0x173   : > { %v1044_v24 = vrot.slane %v1043_v22, 4 }
 0x175   : > { %v1046_v28 = vsel %vm1045_vm12, %v1044_v24, %v1043_v22 }
 0x176   : > { %1048 = vst.msk [vmem:[#allocation2 + $0x18] sm:$0x33] %vm2757_vm5, %v1046_v28 }
 0x177   : > { %v1218_v30 = vld.sshfl [vmem:[#allocation1] sm:$0xff pattern:$0x75643120] }
 0x178   : > { %1220 = vrot.lane.b32.xlu0 %v1218_v30, %s2505_s11  ;;  %1228 = vst [vmem:[#allocation1] ss:$2 sm:$0xff] %v1226_v29  ;;  %v1018_v30 = vpop.permute.xlu2 %1017  ;;  %s3180_s11 = smov 22  }
 0x17f   : > { %v1229_v34 = vld.sshfl [vmem:[#allocation1] sm:$0xff pattern:$0x75643120] }
 0x180   : > { %1231 = vrot.lane.b32.xlu1 %v1229_v34, %s2506_s13  ;;  %1240 = vst [vmem:[#allocation1 + $0x1] ss:$2 sm:$0xff] %v1237_v33  ;;  %v1019_v33 = vrot.slane %v1018_v30, 4  ;;  %v1056_v42 = vpop.permute.xlu2 %1055  ;;  %s2519_s13 = smov 20  }
 0x181   : > { %v1057_v44 = vrot.slane %v1056_v42, 4 }
 0x182   : > { %v1068_v16 = vpop.permute.xlu0 %1067 }
 0x183   : > { %v1069_v17 = vrot.slane %v1068_v16, 4  ;;  %v1059_v49 = vsel %vm1058_vm15, %v1057_v44, %v1056_v42 }
 0x184   : > { %1061 = vst.msk [vmem:[#allocation2 + $0x18] sm:$0xcc] %vm2769_vm9, %v1059_v49 }
 0x185   : > { %v1071_v20 = vsel %vm1070_vm11, %v1069_v17, %v1068_v16 }
 0x186   : > { %1073 = vst.msk [vmem:[#allocation2 + $0x24] sm:$0x33] %vm2757_vm5, %v1071_v20 }
 0x187   : > { %v1241_v36 = vld.sshfl [vmem:[#allocation1] sm:$0xff pattern:$0x75643120] }
 0x188   : > { %1251 = vst [vmem:[#allocation1] ss:$2 sm:$0xff] %v1249_v35  ;;  %1243 = vrot.lane.b32.xlu2 %v1241_v36, %s2507_s14  ;;  %s2520_s14 = smov 12  }
 0x18a   : > { %v1081_v31 = vpop.permute.xlu1 %1080 }
 0x18b   : > { %v1082_v34 = vrot.slane %v1081_v31, 4 }
 0x18f   : > { %v1252_v38 = vld.sshfl [vmem:[#allocation1] sm:$0xff pattern:$0x75643120] }
 0x190   : > { %1254 = vrot.lane.b32.xlu0 %v1252_v38, %s2508_s15  ;;  %1263 = vst [vmem:[#allocation1 + $0x1] ss:$2 sm:$0xff] %v1260_v37  ;;  %v1021_v38 = vsel %vm1020_vm13, %v1019_v33, %v1018_v30  ;;  %s2383_s15 = sadd.s32 4, %s2598_s9 }
 0x191   : > { %1023 = vst.msk [vmem:[#allocation2 + $0xc] sm:$0x33] %vm2757_vm5, %v1021_v38 }
 0x197   : > { %v1264_v40 = vld.sshfl [vmem:[#allocation1] sm:$0xff pattern:$0x75643120] }
 0x198   : > { %1266 = vrot.lane.b32.xlu1 %v1264_v40, %s2509_s16  ;;  %1274 = vst [vmem:[#allocation1] ss:$2 sm:$0xff] %v1272_v39  ;;  %v1084_v39 = vsel %vm1083_vm14, %v1082_v34, %v1081_v31  ;;  %s3183_s16 = smov 11  }
 0x199   : > { %1086 = vst.msk [vmem:[#allocation2 + $0x24] sm:$0xcc] %vm2769_vm9, %v1084_v39  ;;  %v1450_v39 = vld [vmem:[%s2713_s23] sm:$0x3] }
 0x19a   : > { %v1106_v25 = vpop.permute.xlu0 %1105 }
 0x19b   : > { %v1107_v26 = vrot.slane %v1106_v25, 4 }
 0x19d   : > { %v1108_v29 = vsel %vm989_vm4, %v1107_v26, %v1106_v25  ;;  %v903_v25 = vld [vmem:[%s2650_s26] sm:$0x3]  ;;  %s2518_s26 = smov 21  }
 0x19e   : > { %1110 = vst.msk [vmem:[#allocation2 + $0x30] sm:$0xcc] %vm2769_vm9, %v1108_v29 }
 0x19f   : > { %v1275_v46 = vld.sshfl [vmem:[#allocation1] sm:$0xff pattern:$0x75643120]  ;;  %904 = vst.msk [vmem:[#allocation2 + $0x6c] sm:$0x3] %vm741_vm1, %v903_v25  ;;  %vm2037_vm1 = vcmask 1045504  }
 0x1a0   : > { %1277 = vrot.lane.b32.xlu1 %v1275_v46, %s2510_s17  ;;  %1286 = vst [vmem:[#allocation1 + $0x1] ss:$2 sm:$0xff] %v1283_v45  ;;  %v1579_v25 = vld [vmem:[%s2713_s23] sm:$0x3]  ;;  %s2528_s17 = smov 111  }
 0x1a2   : > { %v1117_v35 = vpop.permute.xlu0 %1116 }
 0x1a3   : > { %v1118_v36 = vrot.slane %v1117_v35, 4 }
 0x1a5   : > { %v1119_v40 = vsel %vm1005_vm10, %v1118_v36, %v1117_v35  ;;  %v1441_v36 = vld [vmem:[%s2713_s23] sm:$0x3] }
 0x1a6   : > { %1121 = vst.msk [vmem:[#allocation2 + $0x3c] sm:$0x33] %vm2757_vm5, %v1119_v40 }
 0x1a7   : > { %v1287_v51 = vld.sshfl [vmem:[#allocation1] sm:$0xff pattern:$0x75643120] }
 0x1a8   : > { %1297 = vst [vmem:[#allocation1] ss:$2 sm:$0xff] %v1295_v50  ;;  %1289 = vrot.lane.b32.xlu2 %v1287_v51, %s2511_s18  ;;  %s2529_s18 = smov 110  }
 0x1aa   : > { %v1129_v43 = vpop.permute.xlu1 %1128 }
 0x1ab   : > { %v1130_v45 = vrot.slane %v1129_v43, 4 }
 0x1ad   : > { %v1131_v50 = vsel %vm1020_vm13, %v1130_v45, %v1129_v43 }
 0x1ae   : > { %1133 = vst.msk [vmem:[#allocation2 + $0x3c] sm:$0xcc] %vm2769_vm9, %v1131_v50 }
 0x1af   : > { %v1298_v56 = vld.sshfl [vmem:[#allocation1] sm:$0xff pattern:$0x75643120] }
 0x1b0   : > { %1300 = vrot.lane.b32.xlu0 %v1298_v56, %s2512_s19  ;;  %1308 = vst [vmem:[#allocation1] ss:$2 sm:$0xff] %v1306_v55  ;;  %v1093_v56 = vpop.permute.xlu2 %1092  ;;  %s2886_s19 = scalar_lea.vmem %s3174_s4, %s2383_s15  ;;  %s2526_s15 = smov 90  }
 0x1b1   : > { %v1094_v58 = vrot.slane %v1093_v56, 4  ;;  %v1536_v10 = vld [vmem:[%s2886_s19] sm:$0x3] }
 0x1b2   : > { %v1140_v46 = vpop.permute.xlu0 %1139 }
 0x1b3   : > { %v1141_v48 = vrot.slane %v1140_v46, 4 }
 0x1b5   : > { %v1142_v51 = vsel %vm1033_vm8, %v1141_v48, %v1140_v46 }
 0x1b6   : > { %1144 = vst.msk [vmem:[#allocation2 + $0x48] sm:$0x33] %vm2757_vm5, %v1142_v51 }
 0x1b7   : > { %v2752_v60 = vld.sshfl [vmem:[#allocation1] sm:$0xff pattern:$0x75643120] }
 0x1b8   : > { %1319 = vst [vmem:[#allocation1 + $0x1] ss:$2 sm:$0xff] %v1316_v63  ;;  %v1096_v63 = vsel %vm1095_vm0, %v1094_v58, %v1093_v56  ;;  %v1163_v11 = vpop.permute.xlu2 %1162 }
 0x1b9   : > { %1098 = vst.msk [vmem:[#allocation2 + $0x30] sm:$0x33] %vm2757_vm5, %v1096_v63  ;;  %v1164_v13 = vrot.slane %v1163_v11, 4 }
 0x1ba   : > { %v1152_v57 = vpop.permute.xlu1 %1151 }
 0x1bb   : > { %v1153_v59 = vrot.slane %v1152_v57, 4  ;;  %v1165_v17 = vsel %vm1058_vm15, %v1164_v13, %v1163_v11 }
 0x1bc   : > { %1167 = vst.msk [vmem:[#allocation2 + $0x54] sm:$0x33] %vm2757_vm5, %v1165_v17 }
 0x1bd   : > { %v1154_v0 = vsel %vm1045_vm12, %v1153_v59, %v1152_v57  ;;  %v1479_v57 = vld [vmem:[%s2886_s19] sm:$0x3] }
 0x1be   : > { %1156 = vst.msk [vmem:[#allocation2 + $0x48] sm:$0xcc] %vm2769_vm9, %v1154_v0  ;;  %v1488_v59 = vld [vmem:[%s2886_s19] sm:$0x3] }
 0x1bf   : > { %v2767_v9 = vld.sshfl [vmem:[#allocation1] sm:$0xff pattern:$0x75643120] }
 0x1c0   : > { %1329 = vst [vmem:[#allocation1] ss:$2 sm:$0xff] %v1327_v6 }
 0x1c7   : > { %v2778_v19 = vld.sshfl [vmem:[#allocation1] sm:$0xff pattern:$0x75643120] }
 0x1c8   : > { %1339 = vst [vmem:[#allocation1 + $0x1] ss:$2 sm:$0xff] %v1336_v14 }
 0x1ca   : > { %v1175_v61 = vpop.permute.xlu0 %1174  ;;  %v1209_v26 = vpop.permute.xlu2 %1208 }
 0x1cb   : > { %v1176_v62 = vrot.slane %v1175_v61, 4  ;;  %v1210_v29 = vrot.slane %v1209_v26, 4 }
 0x1cd   : > { %v1177_v1 = vsel %vm1070_vm11, %v1176_v62, %v1175_v61  ;;  %v1211_v33 = vsel %vm989_vm4, %v1210_v29, %v1209_v26  ;;  %v1498_v62 = vld [vmem:[%s2886_s19] sm:$0x3]  ;;  %vm1575_vm4 = vcmask 1042304  }
 0x1ce   : > { %1179 = vst.msk [vmem:[#allocation2 + $0x54] sm:$0xcc] %vm2769_vm9, %v1177_v1 }
 0x1cf   : > { %v2788_v27 = vld.sshfl [vmem:[#allocation1] sm:$0xff pattern:$0x75643120]  ;;  %1213 = vst.msk [vmem:[#allocation2 + $0x6c] sm:$0x33] %vm2757_vm5, %v1211_v33 }
 0x1d0   : > { %1348 = vst [vmem:[#allocation1] ss:$2 sm:$0xff] %v1346_v23  ;;  %v1431_v23 = vld [vmem:[%s2713_s23] sm:$0x3] }
 0x1d2   : > { %v1186_v12 = vpop.permute.xlu0 %1185 }
 0x1d3   : > { %v1187_v14 = vrot.slane %v1186_v12, 4 }
 0x1d5   : > { %v1188_v18 = vsel %vm1083_vm14, %v1187_v14, %v1186_v12  ;;  %v1507_v12 = vld [vmem:[%s2886_s19] sm:$0x3] }
 0x1d6   : > { %1190 = vst.msk [vmem:[#allocation2 + $0x60] sm:$0x33] %vm2757_vm5, %v1188_v18  ;;  %v1517_v14 = vld [vmem:[%s2886_s19] sm:$0x3] }
 0x1d7   : > { %v2797_v37 = vld.sshfl [vmem:[#allocation1] sm:$0xff pattern:$0x75643120] }
 0x1d8   : > { %1358 = vst [vmem:[#allocation1 + $0x1] ss:$2 sm:$0xff] %v1355_v32  ;;  %v1545_v18 = vld [vmem:[%s2886_s19] sm:$0x3] }
 0x1da   : > { %v1198_v15 = vpop.permute.xlu1 %1197 }
 0x1db   : > { %v1199_v16 = vrot.slane %v1198_v15, 4 }
 0x1dd   : > { %v1200_v20 = vsel %vm1095_vm0, %v1199_v16, %v1198_v15  ;;  %v1526_v16 = vld [vmem:[%s2886_s19] sm:$0x3] }
 0x1de   : > { %1202 = vst.msk [vmem:[#allocation2 + $0x60] sm:$0xcc] %vm2769_vm9, %v1200_v20 }
 0x1df   : > { %v2809_v47 = vld.sshfl [vmem:[#allocation1] sm:$0xff pattern:$0x75643120] }
 0x1e0   : > { %1367 = vst [vmem:[#allocation1] ss:$2 sm:$0xff] %v1365_v41  ;;  %v1460_v41 = vld [vmem:[%s2713_s23] sm:$0x3] }
 0x1e2   : > { %v1244_v43 = vpop.permute.xlu2 %1243 }
 0x1e3   : > { %v1245_v45 = vrot.slane %v1244_v43, 4 }
 0x1e5   : > { %v1246_v50 = vsel %vm1033_vm8, %v1245_v45, %v1244_v43  ;;  %v1632_v45 = vld [vmem:[%s2713_s23] sm:$0x3]  ;;  %vm1616_vm8 = vcmask 834560  }
 0x1e6   : > { %1248 = vst.msk [vmem:[#allocation2 + $0x78] sm:$0xcc] %vm2769_vm9, %v1246_v50  ;;  %v1657_v50 = vld [vmem:[%s2713_s23] sm:$0x3] }
 0x1e7   : > { %v2821_v53 = vld.sshfl [vmem:[#allocation1] sm:$0xff pattern:$0x75643120] }
 0x1e8   : > { %1377 = vst [vmem:[#allocation1 + $0x1] ss:$2 sm:$0xff] %v1374_v52 }
 0x1ea   : > { %v1221_v28 = vpop.permute.xlu0 %1220 }
 0x1eb   : > { %v1222_v30 = vrot.slane %v1221_v28, 4 }
 0x1ed   : > { %v1223_v34 = vsel %vm1005_vm10, %v1222_v30, %v1221_v28  ;;  %vm1592_vm10 = vcmask 523270  }
 0x1ee   : > { %1225 = vst.msk [vmem:[#allocation2 + $0x6c] sm:$0xcc] %vm2769_vm9, %v1223_v34  ;;  %v1607_v34 = vld [vmem:[%s2713_s23] sm:$0x3] }
 0x1ef   : > { %v2824_v55 = vld.sshfl [vmem:[#allocation1] sm:$0xff pattern:$0x75643120] }
 0x1f0   : > { %1386 = vst [vmem:[#allocation1] ss:$2 sm:$0xff] %v1384_v54  ;;  %v1469_v54 = vld [vmem:[%s2713_s23] sm:$0x3] }
 0x1f2   : > { %v1232_v31 = vpop.permute.xlu1 %1231 }
 0x1f3   : > { %v1233_v32 = vrot.slane %v1232_v31, 4 }
 0x1f5   : > { %v1234_v35 = vsel %vm1020_vm13, %v1233_v32, %v1232_v31  ;;  %v1595_v32 = vld [vmem:[%s2713_s23] sm:$0x3]  ;;  %v2399_v43 = vld [vmem:[#allocation2 + $0x68] sm:$0xf0] }
 0x1f6   : > { %1236 = vst.msk [vmem:[#allocation2 + $0x78] sm:$0x33] %vm2757_vm5, %v1234_v35 }
 0x1f7   : > { %v1387_v4 = vld.sshfl [vmem:[#allocation1] sm:$0xff pattern:$0x75643120] }
 0x1f8   : > { %1389 = vrot.lane.b32.xlu1 %v1387_v4, %s2513_s12  ;;  %1396 = vst [vmem:[#allocation1 + $0x1] ss:$2 sm:$0xff] %v1393_v3 }
 0x1ff   : > { %v1397_v6 = vld.sshfl [vmem:[#allocation1] sm:$0xff pattern:$0x75643120] }
 0x200   : > { %1399 = vrot.lane.b32.xlu2 %v1397_v6, %s3182_s24  ;;  %1405 = vst [vmem:[#allocation1] ss:$2 sm:$0xff] %v1403_v5 }
 0x202   : > { %v1255_v44 = vpop.permute.xlu0 %1254  ;;  %v1290_v1 = vpop.permute.xlu2 %1289 }
 0x203   : > { %v1256_v46 = vrot.slane %v1255_v44, 4  ;;  %v1291_v4 = vrot.slane %v1290_v1, 4 }
 0x205   : > { %v1257_v51 = vsel %vm1045_vm12, %v1256_v46, %v1255_v44  ;;  %vm1678_vm12 = vcmask 736256  }
 0x206   : > { %1259 = vst.msk [vmem:[#allocation2 + $0x84] sm:$0x33] %vm2757_vm5, %v1257_v51 }
 0x207   : > { %v1406_v8 = vld.sshfl [vmem:[#allocation1] sm:$0xff pattern:$0x75643120] }
 0x208   : > { %1415 = vst [vmem:[#allocation1 + $0x1] ss:$2 sm:$0xff] %v1412_v7  ;;  %1408 = vrot.lane.b32.xlu0 %v1406_v8, %s3179_s25  ;;  %v1292_v8 = vsel %vm1083_vm14, %v1291_v4, %v1290_v1  ;;  %v2302_v1 = vld [vmem:[#allocation2 + $0x18] sm:$0xf]  ;;  %vm1603_vm14 = vcmask 900096  }
 0x209   : > { %1294 = vst.msk [vmem:[#allocation2 + $0x90] sm:$0xcc] %vm2769_vm9, %v1292_v8 }
 0x20a   : > { %v1267_v48 = vpop.permute.xlu1 %1266 }
 0x20b   : > { %v1268_v49 = vrot.slane %v1267_v48, 4 }
 0x20d   : > { %v1269_v52 = vsel %vm1058_vm15, %v1268_v49, %v1267_v48  ;;  %v1645_v48 = vld [vmem:[%s2713_s23] sm:$0x3]  ;;  %vm1572_vm15 = vcmask 916480  }
 0x20e   : > { %1271 = vst.msk [vmem:[#allocation2 + $0x84] sm:$0xcc] %vm2769_vm9, %v1269_v52  ;;  %v2326_v52 = vld [vmem:[#allocation2 + $0x48] sm:$0xf]  ;;  %vm1591_vm9 = vcmask 1044354  }
 0x20f   : > { %v1416_v22 = vld.sshfl [vmem:[#allocation1] sm:$0xff pattern:$0x75643120]  ;;  %vm3030_vm13 = vmor %vm1592_vm10, %vm1591_vm9  ;;  %vm2033_vm9 = vcmask 883712  }
 0x210   : > { %1418 = vrot.lane.b32.xlu1 %v1416_v22, %s3181_s10  ;;  %1424 = vst [vmem:[#allocation1] ss:$2 sm:$0xff] %v1422_v21  ;;  %v1555_v21 = vld [vmem:[%s2886_s19] sm:$0x3] }
 0x212   : > { %v1278_v0 = vpop.permute.xlu1 %1277 }
 0x213   : > { %v1279_v3 = vrot.slane %v1278_v0, 4 }
 0x215   : > { %v1280_v7 = vsel %vm1070_vm11, %v1279_v3, %v1278_v0  ;;  %v2390_v3 = vld [vmem:[#allocation2 + $0x20] sm:$0xf0]  ;;  %vm1653_vm11 = vcmask 752640  }
 0x216   : > { %1282 = vst.msk [vmem:[#allocation2 + $0x90] sm:$0x33] %vm2757_vm5, %v1280_v7  ;;  %v2303_v4 = vor.u32 %v2390_v3, %v2302_v1  ;;  %v1705_v7 = vld [vmem:[%s2886_s19] sm:$0x3] }
 0x217   : > { %v1425_v24 = vld.sshfl [vmem:[#allocation1] sm:$0xff pattern:$0x75643120] }
 0x218   : > { %1427 = vrot.lane.b32.xlu2 %v1425_v24, %s3180_s11  ;;  %1434 = vst [vmem:[#allocation1 + $0x1] ss:$2 sm:$0xff] %v1431_v23  ;;  %v1564_v23 = vld [vmem:[%s2713_s23] sm:$0x3] }
 0x21d   : > { %v2362_v28 = vld [vmem:[#allocation2 + $0x90] sm:$0xf] }
 0x21f   : > { %v1435_v38 = vld.sshfl [vmem:[#allocation1] sm:$0xff pattern:$0x75643120] }
 0x220   : > { %1443 = vst [vmem:[#allocation1] ss:$2 sm:$0xff] %v1441_v36  ;;  %1437 = vrot.lane.b32.xlu0 %v1435_v38, %s2518_s26  ;;  %v1620_v36 = vld [vmem:[%s2713_s23] sm:$0x3] }
 0x222   : > { %v1301_v5 = vpop.permute.xlu0 %1300 }
 0x223   : > { %v1302_v6 = vrot.slane %v1301_v5, 4 }
 0x225   : > { %v1303_v11 = vsel %vm1095_vm0, %v1302_v6, %v1301_v5  ;;  %v1694_v5 = vld [vmem:[%s2886_s19] sm:$0x3]  ;;  %vm1666_vm0 = vcmask 744448  }
 0x226   : > { %1305 = vst.msk [vmem:[#allocation2 + $0x9c] sm:$0x33] %vm2757_vm5, %v1303_v11  ;;  %v2290_v11 = vld [vmem:[#allocation2] sm:$0xf]  ;;  %vm1576_vm5 = vcmask 521220  }
 0x227   : > { %v1444_v40 = vld.sshfl [vmem:[#allocation1] sm:$0xff pattern:$0x75643120]  ;;  %vm3002_vm7 = vmor %vm1576_vm5, %vm1575_vm4  ;;  %vm1641_vm4 = vcmask 818176   ;;  %vm1628_vm5 = vcmask 826368  }
 0x228   : > { %1446 = vrot.lane.b32.xlu1 %v1444_v40, %s2519_s13  ;;  %1453 = vst [vmem:[#allocation1 + $0x1] ss:$2 sm:$0xff] %v1450_v39  ;;  %v2350_v39 = vld [vmem:[#allocation2 + $0x78] sm:$0xf]  ;;  %v2402_v40 = vld [vmem:[#allocation2 + $0x80] sm:$0xf0] }
 0x22d   : > { %v2405_v29 = vld [vmem:[#allocation2 + $0x98] sm:$0x30] }
 0x22e   : > { %v2363_v30 = vor.u32 %v2405_v29, %v2362_v28 }
 0x22f   : > { %v1454_v42 = vld.sshfl [vmem:[#allocation1] sm:$0xff pattern:$0x75643120] }
 0x230   : > { %1456 = vrot.lane.b32.xlu2 %v1454_v42, %s2520_s14  ;;  %1462 = vst [vmem:[#allocation1] ss:$2 sm:$0xff] %v1460_v41  ;;  %v2039_v31 = vsel %vm2037_vm1, %v2363_v30, 0  ;;  %v2351_v41 = vor.u32 %v2402_v40, %v2350_v39  ;;  %v2338_v42 = vld [vmem:[#allocation2 + $0x60] sm:$0xf] }
 0x231   : > { %2048 = vmatpush.bf16.msra.mxu0 %v2039_v31  ;;  %v2339_v44 = vor.u32 %v2399_v43, %v2338_v42 }
 0x235   : > { %2049 = vmatpush.bf16.msra.mxu0 %v2351_v41 }
 0x237   : > { %v1463_v56 = vld.sshfl [vmem:[#allocation1] sm:$0xff pattern:$0x75643120] }
 0x238   : > { %1465 = vrot.lane.b32.xlu1 %v1463_v56, %s3183_s16  ;;  %1472 = vst [vmem:[#allocation1 + $0x1] ss:$2 sm:$0xff] %v1469_v54  ;;  %v2396_v54 = vld [vmem:[#allocation2 + $0x50] sm:$0xf0] }
 0x239   : > { %2050 = vmatpush.bf16.msra.mxu0 %v2339_v44  ;;  %v2327_v56 = vor.u32 %v2396_v54, %v2326_v52 }
 0x23d   : > { %2051 = vmatpush.bf16.msra.mxu0 %v2327_v56 }
 0x23f   : > { %v1473_v58 = vld.sshfl [vmem:[#allocation1] sm:$0xff pattern:$0x75643120] }
 0x240   : > { %1475 = vrot.lane.b32.xlu2 %v1473_v58, %s2513_s12  ;;  %1481 = vst [vmem:[#allocation1] ss:$2 sm:$0xff] %v1479_v57  ;;  %v1670_v57 = vld [vmem:[%s2713_s23] sm:$0x3]  ;;  %s2527_s23 = smov 112  }
 0x247   : > { %v1482_v61 = vld.sshfl [vmem:[#allocation1] sm:$0xff pattern:$0x75643120] }
 0x248   : > { %1484 = vrot.lane.b32.xlu0 %v1482_v61, %s3182_s24  ;;  %1491 = vst [vmem:[#allocation1 + $0x1] ss:$2 sm:$0xff] %v1488_v59  ;;  %v2314_v59 = vld [vmem:[#allocation2 + $0x30] sm:$0xf]  ;;  %v2393_v61 = vld [vmem:[#allocation2 + $0x38] sm:$0xf0] }
 0x249   : > { %s3193_s24 = smov 32  }
 0x24f   : > { %v1492_v63 = vld.sshfl [vmem:[#allocation1] sm:$0xff pattern:$0x75643120] }
 0x250   : > { %1494 = vrot.lane.b32.xlu1 %v1492_v63, %s3179_s25  ;;  %1500 = vst [vmem:[#allocation1] ss:$2 sm:$0xff] %v1498_v62  ;;  %v2315_v62 = vor.u32 %v2393_v61, %v2314_v59  ;;  %v1682_v63 = vld [vmem:[%s2886_s19] sm:$0x3]  ;;  %s2530_s25 = smov 102  }
 0x252   : > { %2052 = vmatpush.bf16.msra.mxu0 %v2315_v62 }
 0x256   : > { %2053 = vmatpush.bf16.msra.mxu0 %v2303_v4 }
 0x257   : > { %v1501_v13 = vld.sshfl [vmem:[#allocation1] sm:$0xff pattern:$0x75643120] }
 0x258   : > { %1510 = vst [vmem:[#allocation1 + $0x1] ss:$2 sm:$0xff] %v1507_v12  ;;  %1503 = vrot.lane.b32.xlu1 %v1501_v13, %s3181_s10  ;;  %v2387_v12 = vld [vmem:[#allocation2 + $0x8] sm:$0xf0]  ;;  %s3195_s10 = smov 22  }
 0x259   : > { %v2291_v13 = vor.u32 %v2387_v12, %v2290_v11 }
 0x25b   : > { %2054 = vmatpush.bf16.msra.mxu0 %v2291_v13 }
 0x25f   : > { %v1511_v15 = vld.sshfl [vmem:[#allocation1] sm:$0xff pattern:$0x75643120] }
 0x260   : > { %1513 = vrot.lane.b32.xlu2 %v1511_v15, %s3180_s11  ;;  %1519 = vst [vmem:[#allocation1] ss:$2 sm:$0xff] %v1517_v14  ;;  %v1717_v14 = vld [vmem:[%s2886_s19] sm:$0x3]  ;;  %s2385_s11 = sadd.s32 6, %s2598_s9  ;;  %s3192_s9 = smov 11  }
 0x267   : > { %v1520_v17 = vld.sshfl [vmem:[#allocation1] sm:$0xff pattern:$0x75643120] }
 0x268   : > { %1529 = vst [vmem:[#allocation1 + $0x1] ss:$2 sm:$0xff] %v1526_v16  ;;  %1522 = vrot.lane.b32.xlu0 %v1520_v17, %s2518_s26  ;;  %v1728_v16 = vld [vmem:[%s2886_s19] sm:$0x3] }
 0x26f   : > { %v1530_v2 = vld.sshfl [vmem:[#allocation1] sm:$0xff pattern:$0x75643120] }
 0x270   : > { %1538 = vst [vmem:[#allocation1] ss:$2 sm:$0xff] %v1536_v10  ;;  %1532 = vrot.lane.b32.xlu1 %v1530_v2, %s2519_s13  ;;  %v1400_v10 = vpop.permute.xlu2 %1399  ;;  %v1740_v2 = vld [vmem:[%s2886_s19] sm:$0x3] }
 0x271   : > { %1402 = vst.msk [vmem:[#allocation2 + $0x34] sm:$0xc] %vm1325_vm2, %v1400_v10 }
 0x277   : > { %v1539_v20 = vld.sshfl [vmem:[#allocation1] sm:$0xff pattern:$0x75643120] }
 0x278   : > { %1548 = vst [vmem:[#allocation1 + $0x1] ss:$2 sm:$0xff] %v1545_v18  ;;  %1541 = vrot.lane.b32.xlu1 %v1539_v20, %s2520_s14  ;;  %v1751_v20 = vld [vmem:[%s2886_s19] sm:$0x3] }
 0x27f   : > { %v1549_v22 = vld.sshfl [vmem:[#allocation1] sm:$0xff pattern:$0x75643120] }
 0x280   : > { %1551 = vrot.lane.b32.xlu2 %v1549_v22, %s3183_s16  ;;  %1557 = vst [vmem:[#allocation1] ss:$2 sm:$0xff] %v1555_v21  ;;  %v1763_v22 = vld [vmem:[%s2886_s19] sm:$0x3]  ;;  %s2962_s16 = scalar_lea.vmem %s3175_s5, %s2385_s11  ;;  %s3196_s11 = smov 31  }
 0x281   : > { %v1786_v29 = vld [vmem:[%s2962_s16] sm:$0x3] }
 0x282   : > { %v1797_v31 = vld [vmem:[%s2962_s16] sm:$0x3] }
 0x283   : > { %v1809_v39 = vld [vmem:[%s2962_s16] sm:$0x3] }
 0x284   : > { %v1820_v41 = vld [vmem:[%s2962_s16] sm:$0x3] }
 0x287   : > { %v1558_v24 = vld.sshfl [vmem:[#allocation1] sm:$0xff pattern:$0x75643120] }
 0x288   : > { %1560 = vrot.lane.b32.xlu0 %v1558_v24, %s2513_s12  ;;  %1566 = vst [vmem:[#allocation1] ss:$2 sm:$0xff] %v1564_v23  ;;  %s2525_s12 = smov 91   ;;  %v1428_v24 = vpop.permute.xlu2 %1427 }
 0x289   : > { %1430 = vst.msk [vmem:[#allocation2 + $0x4c] sm:$0x3] %vm1314_vm3, %v1428_v24 }
 0x28f   : > { %v2918_v26 = vld.sshfl [vmem:[#allocation1] sm:$0xff pattern:$0x75643120] }
 0x290   : > { %1582 = vst [vmem:[#allocation1 + $0x1] ss:$2 sm:$0xff] %v1579_v25  ;;  %v1774_v25 = vld [vmem:[%s2886_s19] sm:$0x3]  ;;  %s2410_s19 = smul.u32 12, %s3202_s27 }
 0x297   : > { %v2922_v33 = vld.sshfl [vmem:[#allocation1] sm:$0xff pattern:$0x75643120] }
 0x298   : > { %1597 = vst [vmem:[#allocation1] ss:$2 sm:$0xff] %v1595_v32 }
 0x29f   : > { %v2925_v35 = vld.sshfl [vmem:[#allocation1] sm:$0xff pattern:$0x75643120] }
 0x2a0   : > { %1610 = vst [vmem:[#allocation1 + $0x1] ss:$2 sm:$0xff] %v1607_v34  ;;  %v1457_v34 = vpop.permute.xlu2 %1456 }
 0x2a1   : > { %1459 = vst.msk [vmem:[#allocation2 + $0x58] sm:$0xc] %vm1325_vm2, %v1457_v34 }
 0x2a7   : > { %v2928_v38 = vld.sshfl [vmem:[#allocation1] sm:$0xff pattern:$0x75643120] }
 0x2a8   : > { %1622 = vst [vmem:[#allocation1] ss:$2 sm:$0xff] %v1620_v36  ;;  %v1390_v36 = vpop.permute.xlu1 %1389  ;;  %v1476_v43 = vpop.permute.xlu2 %1475 }
 0x2a9   : > { %1392 = vst.msk [vmem:[#allocation2 + $0x34] sm:$0x3] %vm1314_vm3, %v1390_v36 }
 0x2aa   : > { %1478 = vst.msk [vmem:[#allocation2 + $0x64] sm:$0xc] %vm1325_vm2, %v1476_v43 }
 0x2af   : > { %v1623_v46 = vld.sshfl [vmem:[#allocation1] sm:$0xff pattern:$0x75643120] }
 0x2b0   : > { %1625 = vrot.lane.b32.xlu2 %v1623_v46, %s2522_s20  ;;  %1635 = vst [vmem:[#allocation1 + $0x1] ss:$2 sm:$0xff] %v1632_v45  ;;  %v1419_v44 = vpop.permute.xlu1 %1418  ;;  %v1832_v45 = vld [vmem:[%s2962_s16] sm:$0x3] }
 0x2b1   : > { %1421 = vst.msk [vmem:[#allocation2 + $0x40] sm:$0xc] %vm1325_vm2, %v1419_v44 }
 0x2b7   : > { %v1636_v49 = vld.sshfl [vmem:[#allocation1] sm:$0xff pattern:$0x75643120] }
 0x2b8   : > { %1638 = vrot.lane.b32.xlu0 %v1636_v49, %s2523_s21  ;;  %1647 = vst [vmem:[#allocation1] ss:$2 sm:$0xff] %v1645_v48  ;;  %v1409_v49 = vpop.permute.xlu0 %1408 }
 0x2b9   : > { %1411 = vst.msk [vmem:[#allocation2 + $0x40] sm:$0x3] %vm1314_vm3, %v1409_v49 }
 0x2ba   : > { %v1514_v48 = vpop.permute.xlu2 %1513 }
 0x2bb   : > { %1516 = vst.msk [vmem:[#allocation2 + $0x7c] sm:$0xc] %vm1325_vm2, %v1514_v48 }
 0x2bf   : > { %v1648_v51 = vld.sshfl [vmem:[#allocation1] sm:$0xff pattern:$0x75643120] }
 0x2c0   : > { %1660 = vst [vmem:[#allocation1 + $0x1] ss:$2 sm:$0xff] %v1657_v50  ;;  %1650 = vrot.lane.b32.xlu1 %v1648_v51, %s2524_s22  ;;  %v1447_v50 = vpop.permute.xlu1 %1446  ;;  %v1843_v51 = vld [vmem:[%s2962_s16] sm:$0x3]  ;;  %v1438_v56 = vpop.permute.xlu0 %1437 }
 0x2c1   : > { %1449 = vst.msk [vmem:[#allocation2 + $0x58] sm:$0x3] %vm1314_vm3, %v1447_v50 }
 0x2c2   : > { %1440 = vst.msk [vmem:[#allocation2 + $0x4c] sm:$0xc] %vm1325_vm2, %v1438_v56 }
 0x2c7   : > { %v1661_v58 = vld.sshfl [vmem:[#allocation1] sm:$0xff pattern:$0x75643120] }
 0x2c8   : > { %1663 = vrot.lane.b32.xlu2 %v1661_v58, %s2525_s12  ;;  %1672 = vst [vmem:[#allocation1] ss:$2 sm:$0xff] %v1670_v57  ;;  %v1466_v57 = vpop.permute.xlu1 %1465  ;;  %v1855_v58 = vld [vmem:[%s2962_s16] sm:$0x3]  ;;  %v1485_v62 = vpop.permute.xlu0 %1484 }
 0x2c9   : > { %1468 = vst.msk [vmem:[#allocation2 + $0x64] sm:$0x3] %vm1314_vm3, %v1466_v57 }
 0x2ca   : > { %1487 = vst.msk [vmem:[#allocation2 + $0x70] sm:$0x3] %vm1314_vm3, %v1485_v62 }
 0x2cf   : > { %v1673_v0 = vld.sshfl [vmem:[#allocation1] sm:$0xff pattern:$0x75643120] }
 0x2d0   : > { %1675 = vrot.lane.b32.xlu0 %v1673_v0, %s2526_s15  ;;  %1685 = vst [vmem:[#allocation1 + $0x1] ss:$2 sm:$0xff] %v1682_v63  ;;  %v1495_v63 = vpop.permute.xlu1 %1494  ;;  %v1866_v0 = vld [vmem:[%s2962_s16] sm:$0x3] }
 0x2d1   : > { %1497 = vst.msk [vmem:[#allocation2 + $0x70] sm:$0xc] %vm1325_vm2, %v1495_v63 }
 0x2d7   : > { %v1686_v6 = vld.sshfl [vmem:[#allocation1] sm:$0xff pattern:$0x75643120] }
 0x2d8   : > { %1696 = vst [vmem:[#allocation1] ss:$2 sm:$0xff] %v1694_v5  ;;  %1688 = vrot.lane.b32.xlu1 %v1686_v6, %s2527_s23  ;;  %v1504_v5 = vpop.permute.xlu1 %1503  ;;  %v1878_v6 = vld [vmem:[%s2962_s16] sm:$0x3] }
 0x2d9   : > { %1506 = vst.msk [vmem:[#allocation2 + $0x7c] sm:$0x3] %vm1314_vm3, %v1504_v5 }
 0x2da   : > { %v1552_v54 = vpop.permute.xlu2 %1551  ;;  %v1523_v4 = vpop.permute.xlu0 %1522 }
 0x2db   : > { %1554 = vst.msk [vmem:[#allocation2 + $0x94] sm:$0xc] %vm1325_vm2, %v1552_v54 }
 0x2dc   : > { %1525 = vst.msk [vmem:[#allocation2 + $0x88] sm:$0x3] %vm1314_vm3, %v1523_v4 }
 0x2df   : > { %v1697_v8 = vld.sshfl [vmem:[#allocation1] sm:$0xff pattern:$0x75643120] }
 0x2e0   : > { %1699 = vrot.lane.b32.xlu2 %v1697_v8, %s2528_s17  ;;  %1708 = vst [vmem:[#allocation1 + $0x1] ss:$2 sm:$0xff] %v1705_v7 }
 0x2e7   : > { %v1709_v15 = vld.sshfl [vmem:[#allocation1] sm:$0xff pattern:$0x75643120] }
 0x2e8   : > { %1711 = vrot.lane.b32.xlu0 %v1709_v15, %s2529_s18  ;;  %1719 = vst [vmem:[#allocation1] ss:$2 sm:$0xff] %v1717_v14  ;;  %v1533_v14 = vpop.permute.xlu1 %1532 }
 0x2e9   : > { %1535 = vst.msk [vmem:[#allocation2 + $0x88] sm:$0xc] %vm1325_vm2, %v1533_v14 }
 0x2ef   : > { %v1720_v17 = vld.sshfl [vmem:[#allocation1] sm:$0xff pattern:$0x75643120] }
 0x2f0   : > { %1722 = vrot.lane.b32.xlu2 %v1720_v17, %s2530_s25  ;;  %1731 = vst [vmem:[#allocation1 + $0x1] ss:$2 sm:$0xff] %v1728_v16 }
 0x2f7   : > { %v1732_v18 = vld.sshfl [vmem:[#allocation1] sm:$0xff pattern:$0x75643120] }
 0x2f8   : > { %1734 = vrot.lane.b32.xlu0 %v1732_v18, %s2522_s20  ;;  %1742 = vst [vmem:[#allocation1] ss:$2 sm:$0xff] %v1740_v2  ;;  %v1542_v2 = vpop.permute.xlu1 %1541 }
 0x2f9   : > { %1544 = vst.msk [vmem:[#allocation2 + $0x94] sm:$0x3] %vm1314_vm3, %v1542_v2 }
 0x2fa   : > { %v1561_v11 = vpop.permute.xlu0 %1560 }
 0x2fb   : > { %1563 = vst.msk [vmem:[#allocation2 + $0xa0] sm:$0x3] %vm1314_vm3, %v1561_v11 }
 0x2ff   : > { %v1743_v21 = vld.sshfl [vmem:[#allocation1] sm:$0xff pattern:$0x75643120] }
 0x300   : > { %1745 = vrot.lane.b32.xlu1 %v1743_v21, %s2523_s21  ;;  %1754 = vst [vmem:[#allocation1 + $0x1] ss:$2 sm:$0xff] %v1751_v20 }
 0x307   : > { %v1755_v23 = vld.sshfl [vmem:[#allocation1] sm:$0xff pattern:$0x75643120] }
 0x308   : > { %1757 = vrot.lane.b32.xlu2 %v1755_v23, %s2524_s22  ;;  %1765 = vst [vmem:[#allocation1] ss:$2 sm:$0xff] %v1763_v22 }
 0x30a   : > { %v2988_v61 = vpop.permute.xlu2 %1625 }
 0x30f   : > { %v1766_v28 = vld.sshfl [vmem:[#allocation1] sm:$0xff pattern:$0x75643120] }
 0x310   : > { %1768 = vrot.lane.b32.xlu2 %v1766_v28, %s2525_s12  ;;  %1777 = vst [vmem:[#allocation1 + $0x1] ss:$2 sm:$0xff] %v1774_v25 }
 0x317   : > { %v1778_v30 = vld.sshfl [vmem:[#allocation1] sm:$0xff pattern:$0x75643120] }
 0x318   : > { %1780 = vrot.lane.b32.xlu0 %v1778_v30, %s2526_s15  ;;  %1788 = vst [vmem:[#allocation1] ss:$2 sm:$0xff] %v1786_v29 }
 0x31f   : > { %v1789_v32 = vld.sshfl [vmem:[#allocation1] sm:$0xff pattern:$0x75643120] }
 0x320   : > { %1791 = vrot.lane.b32.xlu1 %v1789_v32, %s2527_s23  ;;  %1800 = vst [vmem:[#allocation1 + $0x1] ss:$2 sm:$0xff] %v1797_v31 }
 0x322   : > { %v2994_v3 = vpop.permute.xlu2 %1663 }
 0x327   : > { %v1801_v40 = vld.sshfl [vmem:[#allocation1] sm:$0xff pattern:$0x75643120] }
 0x328   : > { %1803 = vrot.lane.b32.xlu2 %v1801_v40, %s2528_s17  ;;  %1811 = vst [vmem:[#allocation1] ss:$2 sm:$0xff] %v1809_v39 }
 0x32a   : > { %v3014_v17 = vpop.permute.xlu0 %1638 }
 0x32f   : > { %v1812_v42 = vld.sshfl [vmem:[#allocation1] sm:$0xff pattern:$0x75643120] }
 0x330   : > { %1814 = vrot.lane.b32.xlu2 %v1812_v42, %s2529_s18  ;;  %1823 = vst [vmem:[#allocation1 + $0x1] ss:$2 sm:$0xff] %v1820_v41 }
 0x332   : > { %v3028_v21 = vpop.permute.xlu1 %1650 }
 0x333   : > { %v1652_v5 = vrot.slane %v3028_v21, 4 }
 0x337   : > { %v1824_v46 = vld.sshfl [vmem:[#allocation1] sm:$0xff pattern:$0x75643120] }
 0x338   : > { %1834 = vst [vmem:[#allocation1] ss:$2 sm:$0xff] %v1832_v45  ;;  %1826 = vrot.lane.b32.xlu0 %v1824_v46, %s2530_s25 }
 0x33a   : > { %v1700_v8 = vpop.permute.xlu2 %1699 }
 0x33b   : > { %v1701_v13 = vrot.slane %v1700_v8, 4 }
 0x33f   : > { %v1835_v52 = vld.sshfl [vmem:[#allocation1] sm:$0xff pattern:$0x75643120] }
 0x340   : > { %1837 = vrot.lane.b32.xlu1 %v1835_v52, %s2522_s20  ;;  %1846 = vst [vmem:[#allocation1 + $0x1] ss:$2 sm:$0xff] %v1843_v51 }
 0x347   : > { %v1847_v59 = vld.sshfl [vmem:[#allocation1] sm:$0xff pattern:$0x75643120] }
 0x348   : > { %1849 = vrot.lane.b32.xlu2 %v1847_v59, %s2523_s21  ;;  %1857 = vst [vmem:[#allocation1] ss:$2 sm:$0xff] %v1855_v58 }
 0x34a   : > { %v1723_v16 = vpop.permute.xlu2 %1722  ;;  %v1689_v28 = vpop.permute.xlu1 %1688 }
 0x34b   : > { %v1724_v10 = vrot.slane %v1723_v16, 4  ;;  %v1690_v30 = vrot.slane %v1689_v28, 4 }
 0x34d   : > { %v1725_v18 = vsel %vm1616_vm8, %v1724_v10, %v1723_v16 }
 0x34e   : > { %1727 = vst.msk [vmem:[#allocation2 + $0x4c] sm:$0x33] %vm3002_vm7, %v1725_v18 }
 0x34f   : > { %v1858_v1 = vld.sshfl [vmem:[#allocation1] sm:$0xff pattern:$0x75643120] }
 0x350   : > { %1860 = vrot.lane.b32.xlu1 %v1858_v1, %s2524_s22  ;;  %1869 = vst [vmem:[#allocation1 + $0x1] ss:$2 sm:$0xff] %v1866_v0  ;;  %s738_s22 = scalar_lea.vmem %s3178_s8, %s2410_s19 }
 0x357   : > { %v1870_v7 = vld.sshfl [vmem:[#allocation1] sm:$0xff pattern:$0x75643120] }
 0x358   : > { %1361 = vrot.lane.b32.xlu1 %v2809_v47, %s2519_s13  ;;  %1872 = vrot.lane.b32.xlu2 %v1870_v7, %s2525_s12  ;;  %1880 = vst [vmem:[#allocation1] ss:$2 sm:$0xff] %v1878_v6  ;;  %v1702_v47 = vsel %vm1588_vm6, %v1701_v13, %v1700_v8  ;;  %v1654_v7 = vsel %vm1653_vm11, %v1652_v5, %v3028_v21 }
 0x359   : > { %1704 = vst.msk [vmem:[#allocation2 + $0x40] sm:$0x33] %vm3002_vm7, %v1702_v47  ;;  %v1640_v47 = vrot.slane %v3014_v17, 4 }
 0x35b   : > { %v1642_v10 = vsel %vm1641_vm4, %v1640_v47, %v3014_v17 }
 0x35f   : > { %v1881_v15 = vld.sshfl [vmem:[#allocation1] sm:$0xff pattern:$0x75643120] }
 0x360   : > { %1370 = vrot.lane.b32.xlu2 %v2821_v53, %s2520_s14  ;;  %1883 = vrot.lane.b32.xlu0 %v1881_v15, %s2526_s15 }
 0x361   : > { %1569 = vrot.lane.b32.xlu1 %v2918_v26, %s2527_s23  ;;  %v1676_v26 = vpop.permute.xlu0 %1675 }
 0x362   : > { %v1758_v53 = vpop.permute.xlu2 %1757  ;;  %v1677_v22 = vrot.slane %v1676_v26, 4 }
 0x363   : > { %v1759_v20 = vrot.slane %v1758_v53, 4 }
 0x368   : > { %1351 = vrot.lane.b32.xlu0 %v2797_v37, %s2518_s26  ;;  %1585 = vrot.lane.b32.xlu2 %v2922_v33, %s2528_s17  ;;  %v1760_v37 = vsel %vm1653_vm11, %v1759_v20, %v1758_v53  ;;  %v1679_v33 = vsel %vm1678_vm12, %v1677_v22, %v1676_v26  ;;  %v1627_v22 = vrot.slane %v2988_v61, 4 }
 0x369   : > { %1613 = vrot.lane.b32.xlu1 %v2928_v38, %s2530_s25  ;;  %1762 = vst.msk [vmem:[#allocation2 + $0x58] sm:$0xcc] %vm3030_vm13, %v1760_v37  ;;  %v1712_v24 = vpop.permute.xlu0 %1711  ;;  %s3194_s25 = smov 30  }
 0x36a   : > { %1681 = vst.msk [vmem:[#allocation2 + $0x34] sm:$0x33] %vm3002_vm7, %v1679_v33  ;;  %v1769_v38 = vpop.permute.xlu2 %1768  ;;  %v1713_v29 = vrot.slane %v1712_v24, 4  ;;  %v1629_v33 = vsel %vm1628_vm5, %v1627_v22, %v2988_v61  ;;  %v3127_v61 = vld [vmem:[%s3176_s6] sm:$0xf] }
 0x36b   : > { %v1770_v25 = vrot.slane %v1769_v38, 4  ;;  %2372 = vmatmul.msk.bf16.vlgmr.msra.gmra.mxu0 %vm2033_vm9, %v3127_v61 }
 0x36c   : > { %v1714_v32 = vsel %vm1603_vm14, %v1713_v29, %v1712_v24  ;;  %v1665_v24 = vrot.slane %v2994_v3, 4 }
 0x36d   : > { %v1771_v31 = vsel %vm1666_vm0, %v1770_v25, %v1769_v38  ;;  %1716 = vst.msk [vmem:[#allocation2 + $0x40] sm:$0xcc] %vm3030_vm13, %v1714_v32 }
 0x36e   : > { %1773 = vst.msk [vmem:[#allocation2 + $0x64] sm:$0x33] %vm3002_vm7, %v1771_v31 }
 0x370   : > { %1380 = vrot.lane.b32.xlu0 %v2824_v55, %s3192_s9  ;;  %1311 = vrot.lane.b32.xlu2 %v2752_v60, %s3193_s24  ;;  %v1691_v60 = vsel %vm1572_vm15, %v1690_v30, %v1689_v28 }
 0x371   : > { %1332 = vrot.lane.b32.xlu1 %v2778_v19, %s3194_s25  ;;  %1693 = vst.msk [vmem:[#allocation2 + $0x34] sm:$0xcc] %vm3030_vm13, %v1691_v60  ;;  %v1735_v19 = vpop.permute.xlu0 %1734 }
 0x372   : > { %v1736_v55 = vrot.slane %v1735_v19, 4  ;;  %v1746_v34 = vpop.permute.xlu1 %1745 }
 0x373   : > { %v1747_v36 = vrot.slane %v1746_v34, 4 }
 0x374   : > { %v1737_v39 = vsel %vm1628_vm5, %v1736_v55, %v1735_v19  ;;  %v2394_v5 = vld [vmem:[#allocation2 + $0x40] sm:$0xf0] }
 0x375   : > { %1739 = vst.msk [vmem:[#allocation2 + $0x4c] sm:$0xcc] %vm3030_vm13, %v1737_v39  ;;  %v1748_v40 = vsel %vm1641_vm4, %v1747_v36, %v1746_v34 }
 0x376   : > { %1750 = vst.msk [vmem:[#allocation2 + $0x58] sm:$0x33] %vm3002_vm7, %v1748_v40 }
 0x378   : > { %1600 = vrot.lane.b32.xlu0 %v2925_v35, %s2529_s18  ;;  %1342 = vrot.lane.b32.xlu2 %v2788_v27, %s3195_s10 }
 0x380   : > { %1322 = vrot.lane.b32.xlu0 %v2767_v9, %s3196_s11 }
 0x382   : > { %v1804_v27 = vpop.permute.xlu2 %1803 }
 0x383   : > { %v1805_v35 = vrot.slane %v1804_v27, 4 }
 0x385   : > { %v1806_v41 = vsel %vm1588_vm6, %v1805_v35, %v1804_v27  ;;  %v1918_v35 = vld [vmem:[%s3177_s7] sm:$0xff] }
 0x386   : > { %1808 = vst.msk [vmem:[#allocation2 + $0x70] sm:$0xcc] %vm3030_vm13, %v1806_v41 }
 0x38a   : > { %v1815_v42 = vpop.permute.xlu2 %1814  ;;  %v1781_v43 = vpop.permute.xlu0 %1780 }
 0x38b   : > { %v1816_v44 = vrot.slane %v1815_v42, 4  ;;  %v1782_v45 = vrot.slane %v1781_v43, 4 }
 0x38d   : > { %v1817_v46 = vsel %vm1603_vm14, %v1816_v44, %v1815_v42  ;;  %v1783_v48 = vsel %vm1678_vm12, %v1782_v45, %v1781_v43  ;;  %v2531_v42 = vmov 0   ;;  %v1667_v43 = vsel %vm1666_vm0, %v1665_v24, %v2994_v3  ;;  %v2395_v3 = vld [vmem:[#allocation2 + $0x4c] sm:$0xf] }
 0x38e   : > { %1819 = vst.msk [vmem:[#allocation2 + $0x7c] sm:$0x33] %vm3002_vm7, %v1817_v46  ;;  %2471 = vset.pattern.permute.xlu0 %v2531_v42 }
 0x38f   : > { %1785 = vst.msk [vmem:[#allocation2 + $0x64] sm:$0xcc] %vm3030_vm13, %v1783_v48  ;;  %1921 = vperm.xlu0 %2471, %v1918_v35  }
 0x392   : > { %v1792_v9 = vpop.permute.xlu1 %1791 }
 0x393   : > { %v1793_v49 = vrot.slane %v1792_v9, 4 }
 0x395   : > { %v1794_v50 = vsel %vm1572_vm15, %v1793_v49, %v1792_v9 }
 0x396   : > { %1796 = vst.msk [vmem:[#allocation2 + $0x70] sm:$0x33] %vm3002_vm7, %v1794_v50  ;;  %v2398_v46 = vld [vmem:[#allocation2 + $0x64] sm:$0xf]  ;;  %v2346_v48 = vld [vmem:[#allocation2 + $0x68] sm:$0xf] }
 0x39d   : > { %v2340_v49 = vld [vmem:[#allocation2 + $0x6c] sm:$0xf0]  ;;  %v2400_v50 = vld [vmem:[#allocation2 + $0x70] sm:$0xf0] }
 0x3a2   : > { %v1850_v51 = vpop.permute.xlu2 %1849 }
 0x3a3   : > { %v1851_v52 = vrot.slane %v1850_v51, 4 }
 0x3a5   : > { %v1852_v54 = vsel %vm1641_vm4, %v1851_v52, %v1850_v51  ;;  %v2343_v51 = vor.u32 %v2398_v46, %v2340_v49  ;;  %v2347_v52 = vor.u32 %v2400_v50, %v2346_v48 }
 0x3a6   : > { %1854 = vst.msk [vmem:[#allocation2 + $0x88] sm:$0xcc] %vm3030_vm13, %v1852_v54  ;;  %v2328_v54 = vld [vmem:[#allocation2 + $0x54] sm:$0xf0] }
 0x3aa   : > { %v1827_v56 = vpop.permute.xlu0 %1826 }
 0x3ab   : > { %v1828_v57 = vrot.slane %v1827_v56, 4 }
 0x3ad   : > { %v1829_v58 = vsel %vm1616_vm8, %v1828_v57, %v1827_v56  ;;  %v2334_v56 = vld [vmem:[#allocation2 + $0x50] sm:$0xf]  ;;  %v2397_v57 = vld [vmem:[#allocation2 + $0x58] sm:$0xf0] }
 0x3ae   : > { %1831 = vst.msk [vmem:[#allocation2 + $0x7c] sm:$0xcc] %vm3030_vm13, %v1829_v58 }
 0x3b2   : > { %v1873_v59 = vpop.permute.xlu2 %1872  ;;  %v1838_v62 = vpop.permute.xlu1 %1837 }
 0x3b3   : > { %v1874_v63 = vrot.slane %v1873_v59, 4  ;;  %v1839_v0 = vrot.slane %v1838_v62, 4 }
 0x3b5   : > { %v1875_v1 = vsel %vm1666_vm0, %v1874_v63, %v1873_v59  ;;  %v1840_v4 = vsel %vm1628_vm5, %v1839_v0, %v1838_v62  ;;  %v2401_v55 = vld [vmem:[#allocation2 + $0x7c] sm:$0xf]  ;;  %v2358_v34 = vld [vmem:[#allocation2 + $0x80] sm:$0xf]  ;;  %v2331_v62 = vor.u32 %v2395_v3, %v2328_v54  ;;  %v2335_v63 = vor.u32 %v2397_v57, %v2334_v56  ;;  %v2392_v0 = vld [vmem:[#allocation2 + $0x34] sm:$0xf] }
 0x3b6   : > { %1877 = vst.msk [vmem:[#allocation2 + $0x94] sm:$0xcc] %vm3030_vm13, %v1875_v1  ;;  %v2316_v1 = vld [vmem:[#allocation2 + $0x3c] sm:$0xf0] }
 0x3b7   : > { %1842 = vst.msk [vmem:[#allocation2 + $0x88] sm:$0x33] %vm3002_vm7, %v1840_v4  ;;  %v2322_v4 = vld [vmem:[#allocation2 + $0x38] sm:$0xf] }
 0x3ba   : > { %v1371_v6 = vpop.permute.xlu2 %1370 }
 0x3bb   : > { %1373 = vst.msk [vmem:[#allocation2 + $0x28] sm:$0x3] %vm1314_vm3, %v1371_v6 }
 0x3bc   : > { %1656 = vst.msk [vmem:[#allocation2 + $0x28] sm:$0x33] %vm3002_vm7, %v1654_v7 }
 0x3be   : > { %v2352_v40 = vld [vmem:[#allocation2 + $0x84] sm:$0xf0]  ;;  %v2403_v27 = vld [vmem:[#allocation2 + $0x88] sm:$0xf0] }
 0x3bf   : > { %v2355_v44 = vor.u32 %v2401_v55, %v2352_v40  ;;  %v2359_v45 = vor.u32 %v2403_v27, %v2358_v34 }
 0x3c2   : > { %v1861_v8 = vpop.permute.xlu1 %1860  ;;  %v3097_v11 = vpop.permute.xlu2 %1585 }
 0x3c3   : > { %v1862_v13 = vrot.slane %v1861_v8, 4  ;;  %v1587_v7 = vrot.slane %v3097_v11, 4 }
 0x3c5   : > { %v1863_v14 = vsel %vm1653_vm11, %v1862_v13, %v1861_v8  ;;  %v2319_v8 = vor.u32 %v2392_v0, %v2316_v1  ;;  %v2323_v13 = vor.u32 %v2394_v5, %v2322_v4 }
 0x3c6   : > { %1865 = vst.msk [vmem:[#allocation2 + $0x94] sm:$0x33] %vm3002_vm7, %v1863_v14 }
 0x3ca   : > { %v1362_v15 = vpop.permute.xlu1 %1361  ;;  %v1312_v16 = vpop.permute.xlu2 %1311 }
 0x3cb   : > { %1364 = vst.msk [vmem:[#allocation2 + $0x1c] sm:$0xc] %vm1325_vm2, %v1362_v15 }
 0x3cc   : > { %1644 = vst.msk [vmem:[#allocation2 + $0x1c] sm:$0xcc] %vm3030_vm13, %v1642_v10 }
 0x3cd   : > { %1315 = vst.msk [vmem:[#allocation2 + $0x4] sm:$0x3] %vm1314_vm3, %v1312_v16  ;;  %v2404_v25 = vld [vmem:[#allocation2 + $0x94] sm:$0xf]  ;;  %v2370_v30 = vld [vmem:[#allocation2 + $0x98] sm:$0xf] }
 0x3d2   : > { %v1884_v2 = vpop.permute.xlu0 %1883  ;;  %v1343_v18 = vpop.permute.xlu2 %1342 }
 0x3d3   : > { %v1885_v53 = vrot.slane %v1884_v2, 4  ;;  %v1570_v26 = vpop.permute.xlu1 %1569  ;;  %1345 = vst.msk [vmem:[#allocation2 + $0x10] sm:$0xc] %vm1325_vm2, %v1343_v18 }
 0x3d4   : > { %v1571_v20 = vrot.slane %v1570_v26, 4 }
 0x3d5   : > { %v1886_v21 = vsel %vm1678_vm12, %v1885_v53, %v1884_v2  ;;  %v1589_v2 = vsel %vm1588_vm6, %v1587_v7, %v3097_v11 }
 0x3d6   : > { %1888 = vst.msk [vmem:[#allocation2 + $0xa0] sm:$0x33] %vm3002_vm7, %v1886_v21  ;;  %v1573_v17 = vsel %vm1572_vm15, %v1571_v20, %v1570_v26 }
 0x3d7   : > { %1578 = vst.msk [vmem:[#allocation2 + $0x4] sm:$0x33] %vm3002_vm7, %v1573_v17 }
 0x3da   : > { %v1352_v37 = vpop.permute.xlu0 %1351 }
 0x3db   : > { %1354 = vst.msk [vmem:[#allocation2 + $0x1c] sm:$0x3] %vm1314_vm3, %v1352_v37  ;;  %v1614_v38 = vpop.permute.xlu1 %1613 }
 0x3dc   : > { %1631 = vst.msk [vmem:[#allocation2 + $0x1c] sm:$0x33] %vm3002_vm7, %v1629_v33  ;;  %v1615_v28 = vrot.slane %v1614_v38, 4 }
 0x3dd   : > { %v2364_v29 = vld [vmem:[#allocation2 + $0x9c] sm:$0x30]  ;;  %v2406_v31 = vld [vmem:[#allocation2 + $0xa0] sm:$0x30] }
 0x3de   : > { %v2367_v32 = vor.u32 %v2404_v25, %v2364_v29  ;;  %v2371_v60 = vor.u32 %v2406_v31, %v2370_v30  ;;  %v1617_v19 = vsel %vm1616_vm8, %v1615_v28, %v1614_v38 }
 0x3df   : > { %1619 = vst.msk [vmem:[#allocation2 + $0x10] sm:$0xcc] %vm3030_vm13, %v1617_v19 }
 0x3e0   : > { %v2042_v36 = vsel %vm2037_vm1, %v2367_v32, 0  ;;  %v2045_v39 = vsel %vm2037_vm1, %v2371_v60, 0  ;;  %vm2089_vm1 = vcmask 519168  }
 0x3e1   : > { %2061 = vmatpush.bf16.msra.mxu1 %v2042_v36  ;;  %2074 = vmatpush.bf16.msra.mxu2 %v2045_v39 }
 0x3e2   : > { %v1381_v41 = vpop.permute.xlu0 %1380 }
 0x3e3   : > { %1383 = vst.msk [vmem:[#allocation2 + $0x28] sm:$0xc] %vm1325_vm2, %v1381_v41  ;;  %v1333_v9 = vpop.permute.xlu1 %1332  ;;  %v2389_v16 = vld [vmem:[#allocation2 + $0x1c] sm:$0xf]  ;;  %v2310_v10 = vld [vmem:[#allocation2 + $0x20] sm:$0xf] }
 0x3e4   : > { %1669 = vst.msk [vmem:[#allocation2 + $0x28] sm:$0xcc] %vm3030_vm13, %v1667_v43 }
 0x3e5   : > { %2062 = vmatpush.bf16.msra.mxu1 %v2355_v44  ;;  %2075 = vmatpush.bf16.msra.mxu2 %v2359_v45  ;;  %1335 = vst.msk [vmem:[#allocation2 + $0x10] sm:$0x3] %vm1314_vm3, %v1333_v9 }
 0x3e8   : > { %v2056_v11 = vpop.f32.mrf.mxu0 }
 0x3e9   : > { %2063 = vmatpush.bf16.msra.mxu1 %v2343_v51  ;;  %2076 = vmatpush.bf16.msra.mxu2 %v2347_v52 }
 0x3ea   : > { %v1601_v58 = vpop.permute.xlu0 %1600 }
 0x3eb   : > { %v1602_v59 = vrot.slane %v1601_v58, 4  ;;  %v2304_v14 = vld [vmem:[#allocation2 + $0x24] sm:$0xf0]  ;;  %v2391_v47 = vld [vmem:[#allocation2 + $0x28] sm:$0xf0] }
 0x3ec   : > { %v2307_v18 = vor.u32 %v2389_v16, %v2304_v14  ;;  %v2311_v53 = vor.u32 %v2391_v47, %v2310_v10 }
 0x3ed   : > { %v1604_v6 = vsel %vm1603_vm14, %v1602_v59, %v1601_v58  ;;  %2064 = vmatpush.bf16.msra.mxu1 %v2331_v62  ;;  %2077 = vmatpush.bf16.msra.mxu2 %v2335_v63 }
 0x3ee   : > { %1606 = vst.msk [vmem:[#allocation2 + $0x10] sm:$0x33] %vm3002_vm7, %v1604_v6 }
 0x3f0   : > { %v2058_v23 = vpop.f32.mrf.mxu0 }
 0x3f1   : > { %2065 = vmatpush.bf16.msra.mxu1 %v2319_v8  ;;  %2078 = vmatpush.bf16.msra.mxu2 %v2323_v13 }
 0x3f2   : > { %v1323_v15 = vpop.permute.xlu0 %1322 }
 0x3f3   : > { %1326 = vst.msk [vmem:[#allocation2 + $0x4] sm:$0xc] %vm1325_vm2, %v1323_v15 }
 0x3f4   : > { %1594 = vst.msk [vmem:[#allocation2 + $0x4] sm:$0xcc] %vm3030_vm13, %v1589_v2 }
 0x3f5   : > { %2066 = vmatpush.bf16.msra.mxu1 %v2307_v18  ;;  %2079 = vmatpush.bf16.msra.mxu2 %v2311_v53  ;;  %v2292_v12 = vld [vmem:[#allocation2 + $0xc] sm:$0xf0]  ;;  %v2388_v21 = vld [vmem:[#allocation2 + $0x10] sm:$0xf0] }
 0x3fb   : > { %v2386_v26 = vld [vmem:[#allocation2 + $0x4] sm:$0xf]  ;;  %v2298_v20 = vld [vmem:[#allocation2 + $0x8] sm:$0xf] }
 0x3fc   : > { %v2295_v17 = vor.u32 %v2386_v26, %v2292_v12  ;;  %v2299_v22 = vor.u32 %v2388_v21, %v2298_v20 }
 0x3fe   : > { %2067 = vmatpush.bf16.msra.mxu1 %v2295_v17  ;;  %2080 = vmatpush.bf16.msra.mxu2 %v2299_v22 }
 0x401   : > { %2373 = vmatmul.msk.bf16.vlgmr.msra.gmra.mxu1 %vm2033_vm9, %v3127_v61  ;;  %2374 = vmatmul.msk.bf16.vlgmr.msra.gmra.mxu2 %vm2033_vm9, %v3127_v61  ;;  %v1922_v37 = vpop.permute.xlu0 %1921 }
 0x402   : > { %v2057_v33 = vadd.f32 %v2056_v11, %v1922_v37 }
 0x47e   : > { %v2069_v38 = vpop.f32.mrf.mxu1 }
 0x47f   : > { %v2070_v24 = vadd.f32 %v2069_v38, %v1922_v37 }
 0x481   : > { %v2086_v25 = vpack.c.bf16 %v2070_v24, %v2057_v33 }
 0x483   : > { %2088 = vst [vmem:[%s738_s22] sm:$0xff] %v2086_v25 }
 0x484   : > { %v2082_v28 = vpop.f32.mrf.mxu2 }
 0x485   : > { %v2083_v29 = vadd.f32 %v2082_v28, %v1922_v37 }
 0x486   : > { %v2071_v30 = vpop.f32.mrf.mxu1 }
 0x487   : > { %v2087_v31 = vpack.c.bf16 %v2083_v29, %v2083_v29 }
 0x489   : > { %2090 = vst.msk [vmem:[%s738_s22 + $0x8] sm:$0xf] %vm2089_vm1, %v2087_v31 }
 0x48c   : > { %v2084_v32 = vpop.f32.mrf.mxu2 }
 0x48d PF: > { %s18_s29 = sadd.s32 1, %s2494_s29   ;;  %s3197_s27 = smov %s2490_s28 }
 0x48e   : > { %p15_p5 = scmp.ge.s32.totalorder %s18_s29, 4   ;;  %s3198_s28 = smov %s3200_s30 }
 0x490   :  { %17 = sbr.rel (!%p15_p5) target bundleno = 2 (0x2), region = 149 }

</bundles_post_ra>
